<compile_context>
chip_gen: v7x
topology: tpu7x:2x2x1
jax: 0.10.0
libtpu: 0.0.40
codegen_flags: <defaults>
</compile_context>

<pallas_src>
import math

import jax
import jax.numpy as jnp
from jax.experimental import pallas as pl
from jax.experimental.pallas import tpu as pltpu

# ---------------- configuration (small, TPU-tile-aligned) ----------------
B = 2          # batch
H = W = 8      # spatial size of the decoded feature map (L = 64)
N = H * W      # tokens per image
BN = B * N     # fused token count (one grid step)
C = 128        # input_dim of ColorMemory (nf // 2 in the real model)
E = 128        # embed_dim
NC = 128       # n_color (number of color / semantic centers)
CE = 128       # color_embed
SEM = 128      # raw semantic-center feature dim
D = C + CE     # concat width (input_dim + color_embed); also MLP hidden width
LN_EPS = 1e-5  # PyTorch nn.LayerNorm default


def _layernorm(v, gamma, beta, eps=LN_EPS):
    """Single-pass LayerNorm: var = E[v^2] - mu^2 (statistics kept in f32)."""
    mu = jnp.mean(v, axis=-1, keepdims=True)
    msq = jnp.mean(v * v, axis=-1, keepdims=True)
    var = msq - mu * mu
    return (v - mu) * jax.lax.rsqrt(var + eps) * gamma + beta


# --------------------------- Pallas kernel --------------------------------
def color_memory_kernel(x_ref, kT_ref, v_ref,
                        g1_ref, be1_ref, wq_ref, bq_ref,
                        g2_ref, be2_ref,
                        w1_ref, b1_ref, w2_ref, b2_ref,
                        g3_ref, be3_ref, wl_ref, bl_ref,
                        o_ref):
    x = x_ref[...]                                                  # (BN, C) f32

    # q = proj_q(norm1(x))  — kept f32 (softmax-temperature sensitive, tiny matmul)
    xn = _layernorm(x, g1_ref[...], be1_ref[...])
    q = jnp.dot(xn, wq_ref[...], preferred_element_type=jnp.float32) + bq_ref[...]

    # scores = q @ K^T ; softmax with 1/sum folded into the V matmul
    s = jnp.dot(q, kT_ref[...], preferred_element_type=jnp.float32)     # (BN, NC)
    s = s - jnp.max(s, axis=-1, keepdims=True)
    p = jnp.exp(s)
    inv_den = pl.reciprocal(jnp.sum(p, axis=-1, keepdims=True), approx=True)

    # color_prior = softmax @ V ; V is per-batch -> B static row-slice dots (bf16)
    p16 = p.astype(jnp.bfloat16)
    cp_parts = []
    for b in range(B):
        cp_parts.append(
            jnp.dot(p16[b * N:(b + 1) * N], v_ref[b],
                    preferred_element_type=jnp.float32))
    cp = jnp.concatenate(cp_parts, axis=0) * inv_den                    # (BN, CE)

    # cat -> norm2 -> residual MLP (tanh GELU) -> norm3 -> 1x1 conv (as linear)
    y = jnp.concatenate([x, cp], axis=-1)                               # (BN, D)
    y = _layernorm(y, g2_ref[...], be2_ref[...])
    h = jnp.dot(y.astype(jnp.bfloat16), w1_ref[...],
                preferred_element_type=jnp.float32) + b1_ref[...]
    h = jax.nn.gelu(h, approximate=True)                                # tanh GELU (EUP)
    y = y + (jnp.dot(h.astype(jnp.bfloat16), w2_ref[...],
                     preferred_element_type=jnp.float32) + b2_ref[...])
    y = _layernorm(y, g3_ref[...], be3_ref[...])
    out = jnp.dot(y.astype(jnp.bfloat16), wl_ref[...],
                  preferred_element_type=jnp.float32) + bl_ref[...]
    o_ref[...] = out.astype(o_ref.dtype)


def color_memory_tokens(x_tok, kT, v, p):
    """x_tok: (B, N, C) float32 -> (B, N, C) float32 via one fused Pallas step."""
    x2 = x_tok.reshape(BN, C)                     # free reshape (contiguous)
    v16 = v.astype(jnp.bfloat16)
    w1 = p["W_fc1"].astype(jnp.bfloat16)
    w2 = p["W_fc2"].astype(jnp.bfloat16)
    wl = p["W_last"].astype(jnp.bfloat16)

    full = lambda shape: pl.BlockSpec(shape, lambda i: (0,) * len(shape))

    flops = 2 * BN * (C * E + E * NC + NC * CE + D * D + D * D + D * C)
    transcendentals = BN * NC + BN * D + BN       # exp + gelu(tanh) + reciprocal
    operands = (x2, kT, v16, p["g1"], p["beta1"], p["W_q"], p["b_q"],
                p["g2"], p["beta2"], w1, p["b_fc1"], w2, p["b_fc2"],
                p["g3"], p["beta3"], wl, p["b_last"])
    bytes_accessed = sum(a.size * a.dtype.itemsize for a in operands) + BN * C * 4

    out2 = pl.pallas_call(
        color_memory_kernel,
        out_shape=jax.ShapeDtypeStruct((BN, C), jnp.float32),
        grid_spec=pltpu.PrefetchScalarGridSpec(
            num_scalar_prefetch=0,
            grid=(1,),                           # batch fused: one 128-row step
            in_specs=[
                full((BN, C)),                   # x tokens (all batches fused)
                full((E, NC)),                   # K^T (f32)
                full((B, NC, CE)),               # V (per-batch, cls-weighted, bf16)
                full((1, C)), full((1, C)),      # norm1 gamma/beta
                full((C, E)), full((1, E)),      # proj_q W/b (f32)
                full((1, D)), full((1, D)),      # norm2 gamma/beta
                full((D, D)), full((1, D)),      # mlp.fc1 W (bf16) / b
                full((D, D)), full((1, D)),      # mlp.fc2 W (bf16) / b
                full((1, D)), full((1, D)),      # norm3 gamma/beta
                full((D, C)), full((1, C)),      # last_conv 1x1 W (bf16) / b
            ],
            out_specs=full((BN, C)),
        ),
        compiler_params=pltpu.CompilerParams(
            dimension_semantics=("arbitrary",)),
        cost_estimate=pl.CostEstimate(flops=flops,
                                      transcendentals=transcendentals,
                                      bytes_accessed=bytes_accessed),
    )(*operands)
    return out2.reshape(B, N, C)


# --------------------- glue: parameter & K/V setup -------------------------
def make_params(key):
    ks = jax.random.split(key, 24)
    w = lambda k, shape, s=0.05: s * jax.random.normal(k, shape, jnp.float32)
    p = {}
    # non-trainable buffers (synthetic stand-ins for the .npy center files)
    p["color_centers"] = jax.random.randint(ks[0], (4, NC, 2), 0, 256)   # int in [0,255]
    p["semantic_centers"] = w(ks[1], (NC, SEM), 1.0)
    # embeddings & per-center linears
    p["a_embed"] = w(ks[2], (256, CE))
    p["b_embed"] = w(ks[3], (256, CE))
    for i in range(4):
        p[f"W_ce{i}"] = w(ks[4 + i], (2 * CE, CE))
        p[f"b_ce{i}"] = w(ks[8 + i], (1, CE))
    p["W_sem"] = w(ks[12], (SEM, E)); p["b_sem"] = w(ks[13], (1, E))
    # trainable ColorMemory params (weights stored as (in, out), i.e. W^T)
    p["W_q"] = w(ks[14], (C, E)); p["b_q"] = w(ks[15], (1, E))
    p["g1"] = jnp.ones((1, C), jnp.float32); p["beta1"] = jnp.zeros((1, C), jnp.float32)
    p["g2"] = jnp.ones((1, D), jnp.float32); p["beta2"] = jnp.zeros((1, D), jnp.float32)
    p["g3"] = jnp.ones((1, D), jnp.float32); p["beta3"] = jnp.zeros((1, D), jnp.float32)
    p["W_fc1"] = w(ks[16], (D, D)); p["b_fc1"] = w(ks[17], (1, D))
    p["W_fc2"] = w(ks[18], (D, D)); p["b_fc2"] = w(ks[19], (1, D))
    p["W_last"] = w(ks[20], (D, C)); p["b_last"] = w(ks[21], (1, C))
    return p


def compute_kv(p, cls):
    """Token-independent parameter prep (tiny): semantic K and cls-weighted V."""
    K = p["semantic_centers"] @ p["W_sem"] + p["b_sem"]                  # (NC, E)
    kT = K.T                                                             # (E, NC)
    ce_list = []
    for i in range(4):
        cc = p["color_centers"][i]                                       # (NC, 2)
        ab = jnp.concatenate([p["a_embed"][cc[:, 0]],
                              p["b_embed"][cc[:, 1]]], axis=-1)          # (NC, 2*CE)
        ce_list.append(ab @ p[f"W_ce{i}"] + p[f"b_ce{i}"])               # (NC, CE)
    ce_stack = jnp.stack(ce_list, axis=0)                                # (4, NC, CE)
    V = jnp.einsum("bi,ind->bnd", cls, ce_stack)                         # (B, NC, CE)
    return kT, V


# --------------------------- module wrapper --------------------------------
def trdecoder_forward(encode_feat, cls, p):
    """encode_feat: (B, L, num_feat) tokens; returns NCHW like ColorMemory."""
    bs, L, num_feat = encode_feat.shape
    s = int(math.sqrt(L))
    # TODO(synk): layers[0..2] (UnetBlockWide w/ hooks, spectral-norm convs) were not
    # provided in the source snippet — treated as identity on the encoder feature.
    # Since they are identity, the NCHW<->token permutes around them cancel, so the
    # tokens feed the kernel directly (no NCHW round-trip, per perf review).
    kT, V = compute_kv(p, cls)
    y_tok = color_memory_tokens(encode_feat, kT, V, p)                   # (B, N, C)
    out = jnp.transpose(y_tok.reshape(bs, s, s, num_feat), (0, 3, 1, 2)) # -> NCHW
    # TODO(synk): last_shuf (CustomPixelShuffle_ICNR: conv1x1 + PixelShuffle(4) + blur)
    # definition not provided — omitted.
    return out


# --------------------------- reference (plain JAX) --------------------------
def _layernorm_ref(v, gamma, beta, eps=LN_EPS):
    mu = jnp.mean(v, axis=-1, keepdims=True)
    var = jnp.mean((v - mu) ** 2, axis=-1, keepdims=True)
    return (v - mu) * jax.lax.rsqrt(var + eps) * gamma + beta


def reference_tokens(x, kT, V, p):
    xn = _layernorm_ref(x, p["g1"], p["beta1"])
    q = xn @ p["W_q"] + p["b_q"]
    attn = jax.nn.softmax(jnp.einsum("bne,ec->bnc", q, kT), axis=-1)
    cp = jnp.einsum("bnc,bcd->bnd", attn, V)
    y = jnp.concatenate([x, cp], axis=-1)
    y = _layernorm_ref(y, p["g2"], p["beta2"])
    h = jax.nn.gelu(y @ p["W_fc1"] + p["b_fc1"], approximate=False)      # exact nn.GELU
    y = y + (h @ p["W_fc2"] + p["b_fc2"])
    y = _layernorm_ref(y, p["g3"], p["beta3"])
    return y @ p["W_last"] + p["b_last"]


if __name__ == "__main__":
    key = jax.random.PRNGKey(0)
    k_feat, k_cls, k_par = jax.random.split(key, 3)

    # encoder hook feature (bs, L, num_feat) and 4-way class logits -> probs
    encode_feat = jax.random.normal(k_feat, (B, N, C), jnp.float32)
    cls = jax.nn.softmax(jax.random.normal(k_cls, (B, 4), jnp.float32), axis=-1)
    params = make_params(k_par)

    out = jax.jit(trdecoder_forward)(encode_feat, cls, params)
    out = jax.block_until_ready(out)
    assert out.shape == (B, C, H, W), out.shape

    # correctness check vs. plain-JAX reference (f32 / exact GELU)
    kT, V = compute_kv(params, cls)
    ref = reference_tokens(encode_feat, kT, V, params)
    ref_nchw = jnp.transpose(ref.reshape(B, H, W, C), (0, 3, 1, 2))
    err = float(jnp.max(jnp.abs(out - ref_nchw)))
    assert err < 5e-2, f"kernel/reference mismatch: max abs err = {err}"

    print("KERNEL_OK")
</pallas_src>

<mosaic_0001>
module attributes {stable_mosaic.version = 11 : i64} {
  func.func @color_memory_kernel(%arg0: i32, %arg1: memref<128x128xf32, #tpu.memory_space<vmem>>, %arg2: memref<128x128xf32, #tpu.memory_space<vmem>>, %arg3: memref<2x128x128xbf16, #tpu.memory_space<vmem>>, %arg4: memref<1x128xf32, #tpu.memory_space<vmem>>, %arg5: memref<1x128xf32, #tpu.memory_space<vmem>>, %arg6: memref<128x128xf32, #tpu.memory_space<vmem>>, %arg7: memref<1x128xf32, #tpu.memory_space<vmem>>, %arg8: memref<1x256xf32, #tpu.memory_space<vmem>>, %arg9: memref<1x256xf32, #tpu.memory_space<vmem>>, %arg10: memref<256x256xbf16, #tpu.memory_space<vmem>>, %arg11: memref<1x256xf32, #tpu.memory_space<vmem>>, %arg12: memref<256x256xbf16, #tpu.memory_space<vmem>>, %arg13: memref<1x256xf32, #tpu.memory_space<vmem>>, %arg14: memref<1x256xf32, #tpu.memory_space<vmem>>, %arg15: memref<1x256xf32, #tpu.memory_space<vmem>>, %arg16: memref<256x128xbf16, #tpu.memory_space<vmem>>, %arg17: memref<1x128xf32, #tpu.memory_space<vmem>>, %arg18: memref<128x128xf32, #tpu.memory_space<vmem>>) attributes {dimension_semantics = [#tpu.dimension_semantics<arbitrary>], iteration_bounds = array<i64: 1>, scalar_prefetch = 0 : i64, scratch_operands = 0 : i64, tpu.core_type = #tpu.core_type<tc>, window_params = [{pipeline_mode = #tpu.pipeline_mode<synchronous>, transform_indices = @transform_0, window_bounds = array<i64: 128, 128>}, {pipeline_mode = #tpu.pipeline_mode<synchronous>, transform_indices = @transform_1, window_bounds = array<i64: 128, 128>}, {pipeline_mode = #tpu.pipeline_mode<synchronous>, transform_indices = @transform_2, window_bounds = array<i64: 2, 128, 128>}, {pipeline_mode = #tpu.pipeline_mode<synchronous>, transform_indices = @transform_3, window_bounds = array<i64: 1, 128>}, {pipeline_mode = #tpu.pipeline_mode<synchronous>, transform_indices = @transform_4, window_bounds = array<i64: 1, 128>}, {pipeline_mode = #tpu.pipeline_mode<synchronous>, transform_indices = @transform_5, window_bounds = array<i64: 128, 128>}, {pipeline_mode = #tpu.pipeline_mode<synchronous>, transform_indices = @transform_6, window_bounds = array<i64: 1, 128>}, {pipeline_mode = #tpu.pipeline_mode<synchronous>, transform_indices = @transform_7, window_bounds = array<i64: 1, 256>}, {pipeline_mode = #tpu.pipeline_mode<synchronous>, transform_indices = @transform_8, window_bounds = array<i64: 1, 256>}, {pipeline_mode = #tpu.pipeline_mode<synchronous>, transform_indices = @transform_9, window_bounds = array<i64: 256, 256>}, {pipeline_mode = #tpu.pipeline_mode<synchronous>, transform_indices = @transform_10, window_bounds = array<i64: 1, 256>}, {pipeline_mode = #tpu.pipeline_mode<synchronous>, transform_indices = @transform_11, window_bounds = array<i64: 256, 256>}, {pipeline_mode = #tpu.pipeline_mode<synchronous>, transform_indices = @transform_12, window_bounds = array<i64: 1, 256>}, {pipeline_mode = #tpu.pipeline_mode<synchronous>, transform_indices = @transform_13, window_bounds = array<i64: 1, 256>}, {pipeline_mode = #tpu.pipeline_mode<synchronous>, transform_indices = @transform_14, window_bounds = array<i64: 1, 256>}, {pipeline_mode = #tpu.pipeline_mode<synchronous>, transform_indices = @transform_15, window_bounds = array<i64: 256, 128>}, {pipeline_mode = #tpu.pipeline_mode<synchronous>, transform_indices = @transform_16, window_bounds = array<i64: 1, 128>}, {pipeline_mode = #tpu.pipeline_mode<synchronous>, transform_indices = @transform_17, window_bounds = array<i64: 128, 128>}]} {
    %c0 = arith.constant 0 : index
    %c0_0 = arith.constant 0 : index
    %0 = vector.load %arg1[%c0, %c0_0] : memref<128x128xf32, #tpu.memory_space<vmem>>, vector<128x128xf32>
    %c0_1 = arith.constant 0 : index
    %c0_2 = arith.constant 0 : index
    %1 = vector.load %arg4[%c0_1, %c0_2] : memref<1x128xf32, #tpu.memory_space<vmem>>, vector<1x128xf32>
    %c0_3 = arith.constant 0 : index
    %c0_4 = arith.constant 0 : index
    %2 = vector.load %arg5[%c0_3, %c0_4] : memref<1x128xf32, #tpu.memory_space<vmem>>, vector<1x128xf32>
    %cst = arith.constant dense<0.000000e+00> : vector<128xf32>
    %3 = vector.multi_reduction <add>, %0, %cst [1] : vector<128x128xf32> to vector<128xf32>
    %4 = vector.shape_cast %3 : vector<128xf32> to vector<128x1xf32>
    %cst_5 = arith.constant 1.280000e+02 : f32
    %5 = vector.broadcast %cst_5 : f32 to vector<128x1xf32>
    %6 = arith.divf %4, %5 : vector<128x1xf32>
    %7 = arith.mulf %0, %0 : vector<128x128xf32>
    %cst_6 = arith.constant dense<0.000000e+00> : vector<128xf32>
    %8 = vector.multi_reduction <add>, %7, %cst_6 [1] : vector<128x128xf32> to vector<128xf32>
    %9 = vector.shape_cast %8 : vector<128xf32> to vector<128x1xf32>
    %cst_7 = arith.constant 1.280000e+02 : f32
    %10 = vector.broadcast %cst_7 : f32 to vector<128x1xf32>
    %11 = arith.divf %9, %10 : vector<128x1xf32>
    %12 = arith.mulf %6, %6 : vector<128x1xf32>
    %13 = arith.subf %11, %12 : vector<128x1xf32>
    %14 = vector.broadcast %6 : vector<128x1xf32> to vector<128x128xf32>
    %15 = arith.subf %0, %14 : vector<128x128xf32>
    %cst_8 = arith.constant 9.99999974E-6 : f32
    %16 = vector.broadcast %cst_8 : f32 to vector<128x1xf32>
    %17 = arith.addf %13, %16 : vector<128x1xf32>
    %18 = math.rsqrt %17 : vector<128x1xf32>
    %19 = vector.broadcast %18 : vector<128x1xf32> to vector<128x128xf32>
    %20 = arith.mulf %15, %19 : vector<128x128xf32>
    %21 = vector.broadcast %1 : vector<1x128xf32> to vector<128x128xf32>
    %22 = arith.mulf %20, %21 : vector<128x128xf32>
    %23 = vector.broadcast %2 : vector<1x128xf32> to vector<128x128xf32>
    %24 = arith.addf %22, %23 : vector<128x128xf32>
    %c0_9 = arith.constant 0 : index
    %c0_10 = arith.constant 0 : index
    %25 = vector.load %arg6[%c0_9, %c0_10] : memref<128x128xf32, #tpu.memory_space<vmem>>, vector<128x128xf32>
    %cst_11 = arith.constant dense<0.000000e+00> : vector<128x128xf32>
    %26 = tpu.matmul %24, %25, %cst_11 {dimension_numbers = #tpu.dot_dimension_numbers<[1], [0], [0], [1], [0, 0, 1, 1], [], []>} : vector<128x128xf32>, vector<128x128xf32>, vector<128x128xf32> -> vector<128x128xf32>
    %c0_12 = arith.constant 0 : index
    %c0_13 = arith.constant 0 : index
    %27 = vector.load %arg7[%c0_12, %c0_13] : memref<1x128xf32, #tpu.memory_space<vmem>>, vector<1x128xf32>
    %28 = vector.broadcast %27 : vector<1x128xf32> to vector<128x128xf32>
    %29 = arith.addf %26, %28 : vector<128x128xf32>
    %c0_14 = arith.constant 0 : index
    %c0_15 = arith.constant 0 : index
    %30 = vector.load %arg2[%c0_14, %c0_15] : memref<128x128xf32, #tpu.memory_space<vmem>>, vector<128x128xf32>
    %cst_16 = arith.constant dense<0.000000e+00> : vector<128x128xf32>
    %31 = tpu.matmul %29, %30, %cst_16 {dimension_numbers = #tpu.dot_dimension_numbers<[1], [0], [0], [1], [0, 0, 1, 1], [], []>} : vector<128x128xf32>, vector<128x128xf32>, vector<128x128xf32> -> vector<128x128xf32>
    %cst_17 = arith.constant dense<0xFF800000> : vector<128xf32>
    %32 = vector.multi_reduction <maximumf>, %31, %cst_17 [1] : vector<128x128xf32> to vector<128xf32>
    %33 = vector.shape_cast %32 : vector<128xf32> to vector<128x1xf32>
    %34 = vector.broadcast %33 : vector<128x1xf32> to vector<128x128xf32>
    %35 = arith.subf %31, %34 : vector<128x128xf32>
    %36 = math.exp %35 : vector<128x128xf32>
    %cst_18 = arith.constant dense<0.000000e+00> : vector<128xf32>
    %37 = vector.multi_reduction <add>, %36, %cst_18 [1] : vector<128x128xf32> to vector<128xf32>
    %38 = vector.shape_cast %37 : vector<128xf32> to vector<128x1xf32>
    %39 = tpu.reciprocal %38 {approx = true} : vector<128x1xf32> -> vector<128x1xf32>
    %40 = arith.truncf %36 : vector<128x128xf32> to vector<128x128xbf16>
    %41 = vector.extract_strided_slice %40 {offsets = [0, 0], sizes = [64, 128], strides = [1, 1]} : vector<128x128xbf16> to vector<64x128xbf16>
    %c0_19 = arith.constant 0 : index
    %c0_20 = arith.constant 0 : index
    %c0_21 = arith.constant 0 : index
    %42 = vector.load %arg3[%c0_19, %c0_20, %c0_21] : memref<2x128x128xbf16, #tpu.memory_space<vmem>>, vector<1x128x128xbf16>
    %43 = vector.shape_cast %42 : vector<1x128x128xbf16> to vector<128x128xbf16>
    %cst_22 = arith.constant dense<0.000000e+00> : vector<64x128xf32>
    %44 = tpu.matmul %41, %43, %cst_22 {dimension_numbers = #tpu.dot_dimension_numbers<[1], [0], [0], [1], [0, 0, 1, 1], [], []>} : vector<64x128xbf16>, vector<128x128xbf16>, vector<64x128xf32> -> vector<64x128xf32>
    %45 = vector.extract_strided_slice %40 {offsets = [64, 0], sizes = [64, 128], strides = [1, 1]} : vector<128x128xbf16> to vector<64x128xbf16>
    %c1 = arith.constant 1 : index
    %c0_23 = arith.constant 0 : index
    %c0_24 = arith.constant 0 : index
    %46 = vector.load %arg3[%c1, %c0_23, %c0_24] : memref<2x128x128xbf16, #tpu.memory_space<vmem>>, vector<1x128x128xbf16>
    %47 = vector.shape_cast %46 : vector<1x128x128xbf16> to vector<128x128xbf16>
    %cst_25 = arith.constant dense<0.000000e+00> : vector<64x128xf32>
    %48 = tpu.matmul %45, %47, %cst_25 {dimension_numbers = #tpu.dot_dimension_numbers<[1], [0], [0], [1], [0, 0, 1, 1], [], []>} : vector<64x128xbf16>, vector<128x128xbf16>, vector<64x128xf32> -> vector<64x128xf32>
    %49 = tpu.concatenate %44, %48 in 0 : vector<64x128xf32>, vector<64x128xf32> -> vector<128x128xf32>
    %50 = vector.broadcast %39 : vector<128x1xf32> to vector<128x128xf32>
    %51 = arith.mulf %49, %50 : vector<128x128xf32>
    %52 = tpu.concatenate %0, %51 in 1 : vector<128x128xf32>, vector<128x128xf32> -> vector<128x256xf32>
    %c0_26 = arith.constant 0 : index
    %c0_27 = arith.constant 0 : index
    %53 = vector.load %arg8[%c0_26, %c0_27] : memref<1x256xf32, #tpu.memory_space<vmem>>, vector<1x256xf32>
    %c0_28 = arith.constant 0 : index
    %c0_29 = arith.constant 0 : index
    %54 = vector.load %arg9[%c0_28, %c0_29] : memref<1x256xf32, #tpu.memory_space<vmem>>, vector<1x256xf32>
    %cst_30 = arith.constant dense<0.000000e+00> : vector<128xf32>
    %55 = vector.multi_reduction <add>, %52, %cst_30 [1] : vector<128x256xf32> to vector<128xf32>
    %56 = vector.shape_cast %55 : vector<128xf32> to vector<128x1xf32>
    %cst_31 = arith.constant 2.560000e+02 : f32
    %57 = vector.broadcast %cst_31 : f32 to vector<128x1xf32>
    %58 = arith.divf %56, %57 : vector<128x1xf32>
    %59 = arith.mulf %52, %52 : vector<128x256xf32>
    %cst_32 = arith.constant dense<0.000000e+00> : vector<128xf32>
    %60 = vector.multi_reduction <add>, %59, %cst_32 [1] : vector<128x256xf32> to vector<128xf32>
    %61 = vector.shape_cast %60 : vector<128xf32> to vector<128x1xf32>
    %cst_33 = arith.constant 2.560000e+02 : f32
    %62 = vector.broadcast %cst_33 : f32 to vector<128x1xf32>
    %63 = arith.divf %61, %62 : vector<128x1xf32>
    %64 = arith.mulf %58, %58 : vector<128x1xf32>
    %65 = arith.subf %63, %64 : vector<128x1xf32>
    %66 = vector.broadcast %58 : vector<128x1xf32> to vector<128x256xf32>
    %67 = arith.subf %52, %66 : vector<128x256xf32>
    %cst_34 = arith.constant 9.99999974E-6 : f32
    %68 = vector.broadcast %cst_34 : f32 to vector<128x1xf32>
    %69 = arith.addf %65, %68 : vector<128x1xf32>
    %70 = math.rsqrt %69 : vector<128x1xf32>
    %71 = vector.broadcast %70 : vector<128x1xf32> to vector<128x256xf32>
    %72 = arith.mulf %67, %71 : vector<128x256xf32>
    %73 = vector.broadcast %53 : vector<1x256xf32> to vector<128x256xf32>
    %74 = arith.mulf %72, %73 : vector<128x256xf32>
    %75 = vector.broadcast %54 : vector<1x256xf32> to vector<128x256xf32>
    %76 = arith.addf %74, %75 : vector<128x256xf32>
    %77 = arith.truncf %76 : vector<128x256xf32> to vector<128x256xbf16>
    %c0_35 = arith.constant 0 : index
    %c0_36 = arith.constant 0 : index
    %78 = vector.load %arg10[%c0_35, %c0_36] : memref<256x256xbf16, #tpu.memory_space<vmem>>, vector<256x256xbf16>
    %cst_37 = arith.constant dense<0.000000e+00> : vector<128x256xf32>
    %79 = tpu.matmul %77, %78, %cst_37 {dimension_numbers = #tpu.dot_dimension_numbers<[1], [0], [0], [1], [0, 0, 1, 1], [], []>} : vector<128x256xbf16>, vector<256x256xbf16>, vector<128x256xf32> -> vector<128x256xf32>
    %c0_38 = arith.constant 0 : index
    %c0_39 = arith.constant 0 : index
    %80 = vector.load %arg11[%c0_38, %c0_39] : memref<1x256xf32, #tpu.memory_space<vmem>>, vector<1x256xf32>
    %81 = vector.broadcast %80 : vector<1x256xf32> to vector<128x256xf32>
    %82 = arith.addf %79, %81 : vector<128x256xf32>
    %83 = arith.mulf %82, %82 : vector<128x256xf32>
    %84 = arith.mulf %82, %83 : vector<128x256xf32>
    %cst_40 = arith.constant 4.471500e-02 : f32
    %85 = vector.broadcast %cst_40 : f32 to vector<128x256xf32>
    %86 = arith.mulf %85, %84 : vector<128x256xf32>
    %87 = arith.addf %82, %86 : vector<128x256xf32>
    %cst_41 = arith.constant 0.797884583 : f32
    %88 = vector.broadcast %cst_41 : f32 to vector<128x256xf32>
    %89 = arith.mulf %88, %87 : vector<128x256xf32>
    %90 = math.tanh %89 : vector<128x256xf32>
    %cst_42 = arith.constant 1.000000e+00 : f32
    %91 = vector.broadcast %cst_42 : f32 to vector<128x256xf32>
    %92 = arith.addf %91, %90 : vector<128x256xf32>
    %cst_43 = arith.constant 5.000000e-01 : f32
    %93 = vector.broadcast %cst_43 : f32 to vector<128x256xf32>
    %94 = arith.mulf %93, %92 : vector<128x256xf32>
    %95 = arith.mulf %82, %94 : vector<128x256xf32>
    %96 = arith.truncf %95 : vector<128x256xf32> to vector<128x256xbf16>
    %c0_44 = arith.constant 0 : index
    %c0_45 = arith.constant 0 : index
    %97 = vector.load %arg12[%c0_44, %c0_45] : memref<256x256xbf16, #tpu.memory_space<vmem>>, vector<256x256xbf16>
    %cst_46 = arith.constant dense<0.000000e+00> : vector<128x256xf32>
    %98 = tpu.matmul %96, %97, %cst_46 {dimension_numbers = #tpu.dot_dimension_numbers<[1], [0], [0], [1], [0, 0, 1, 1], [], []>} : vector<128x256xbf16>, vector<256x256xbf16>, vector<128x256xf32> -> vector<128x256xf32>
    %c0_47 = arith.constant 0 : index
    %c0_48 = arith.constant 0 : index
    %99 = vector.load %arg13[%c0_47, %c0_48] : memref<1x256xf32, #tpu.memory_space<vmem>>, vector<1x256xf32>
    %100 = vector.broadcast %99 : vector<1x256xf32> to vector<128x256xf32>
    %101 = arith.addf %98, %100 : vector<128x256xf32>
    %102 = arith.addf %76, %101 : vector<128x256xf32>
    %c0_49 = arith.constant 0 : index
    %c0_50 = arith.constant 0 : index
    %103 = vector.load %arg14[%c0_49, %c0_50] : memref<1x256xf32, #tpu.memory_space<vmem>>, vector<1x256xf32>
    %c0_51 = arith.constant 0 : index
    %c0_52 = arith.constant 0 : index
    %104 = vector.load %arg15[%c0_51, %c0_52] : memref<1x256xf32, #tpu.memory_space<vmem>>, vector<1x256xf32>
    %cst_53 = arith.constant dense<0.000000e+00> : vector<128xf32>
    %105 = vector.multi_reduction <add>, %102, %cst_53 [1] : vector<128x256xf32> to vector<128xf32>
    %106 = vector.shape_cast %105 : vector<128xf32> to vector<128x1xf32>
    %cst_54 = arith.constant 2.560000e+02 : f32
    %107 = vector.broadcast %cst_54 : f32 to vector<128x1xf32>
    %108 = arith.divf %106, %107 : vector<128x1xf32>
    %109 = arith.mulf %102, %102 : vector<128x256xf32>
    %cst_55 = arith.constant dense<0.000000e+00> : vector<128xf32>
    %110 = vector.multi_reduction <add>, %109, %cst_55 [1] : vector<128x256xf32> to vector<128xf32>
    %111 = vector.shape_cast %110 : vector<128xf32> to vector<128x1xf32>
    %cst_56 = arith.constant 2.560000e+02 : f32
    %112 = vector.broadcast %cst_56 : f32 to vector<128x1xf32>
    %113 = arith.divf %111, %112 : vector<128x1xf32>
    %114 = arith.mulf %108, %108 : vector<128x1xf32>
    %115 = arith.subf %113, %114 : vector<128x1xf32>
    %116 = vector.broadcast %108 : vector<128x1xf32> to vector<128x256xf32>
    %117 = arith.subf %102, %116 : vector<128x256xf32>
    %cst_57 = arith.constant 9.99999974E-6 : f32
    %118 = vector.broadcast %cst_57 : f32 to vector<128x1xf32>
    %119 = arith.addf %115, %118 : vector<128x1xf32>
    %120 = math.rsqrt %119 : vector<128x1xf32>
    %121 = vector.broadcast %120 : vector<128x1xf32> to vector<128x256xf32>
    %122 = arith.mulf %117, %121 : vector<128x256xf32>
    %123 = vector.broadcast %103 : vector<1x256xf32> to vector<128x256xf32>
    %124 = arith.mulf %122, %123 : vector<128x256xf32>
    %125 = vector.broadcast %104 : vector<1x256xf32> to vector<128x256xf32>
    %126 = arith.addf %124, %125 : vector<128x256xf32>
    %127 = arith.truncf %126 : vector<128x256xf32> to vector<128x256xbf16>
    %c0_58 = arith.constant 0 : index
    %c0_59 = arith.constant 0 : index
    %128 = vector.load %arg16[%c0_58, %c0_59] : memref<256x128xbf16, #tpu.memory_space<vmem>>, vector<256x128xbf16>
    %cst_60 = arith.constant dense<0.000000e+00> : vector<128x128xf32>
    %129 = tpu.matmul %127, %128, %cst_60 {dimension_numbers = #tpu.dot_dimension_numbers<[1], [0], [0], [1], [0, 0, 1, 1], [], []>} : vector<128x256xbf16>, vector<256x128xbf16>, vector<128x128xf32> -> vector<128x128xf32>
    %c0_61 = arith.constant 0 : index
    %c0_62 = arith.constant 0 : index
    %130 = vector.load %arg17[%c0_61, %c0_62] : memref<1x128xf32, #tpu.memory_space<vmem>>, vector<1x128xf32>
    %131 = vector.broadcast %130 : vector<1x128xf32> to vector<128x128xf32>
    %132 = arith.addf %129, %131 : vector<128x128xf32>
    %c0_63 = arith.constant 0 : index
    %c0_64 = arith.constant 0 : index
    %133 = vector.load %arg18[%c0_63, %c0_64] : memref<128x128xf32, #tpu.memory_space<vmem>>, vector<128x128xf32>
    tpu.vector_store %arg18[%c0_63, %c0_64], %132 {strides = array<i32>} : memref<128x128xf32, #tpu.memory_space<vmem>>, vector<128x128xf32>,
    return
  }
  func.func @transform_0(%arg0: i32) -> (i32, i32) {
    %c0_i32 = arith.constant 0 : i32
    %c0_i32_0 = arith.constant 0 : i32
    %c0_i32_1 = arith.constant 0 : i32
    return %c0_i32, %c0_i32_0 : i32, i32
  }
  func.func @transform_1(%arg0: i32) -> (i32, i32) {
    %c0_i32 = arith.constant 0 : i32
    %c0_i32_0 = arith.constant 0 : i32
    %c0_i32_1 = arith.constant 0 : i32
    return %c0_i32, %c0_i32_0 : i32, i32
  }
  func.func @transform_2(%arg0: i32) -> (i32, i32, i32) {
    %c0_i32 = arith.constant 0 : i32
    %c0_i32_0 = arith.constant 0 : i32
    %c0_i32_1 = arith.constant 0 : i32
    %c0_i32_2 = arith.constant 0 : i32
    return %c0_i32, %c0_i32_0, %c0_i32_1 : i32, i32, i32
  }
  func.func @transform_3(%arg0: i32) -> (i32, i32) {
    %c0_i32 = arith.constant 0 : i32
    %c0_i32_0 = arith.constant 0 : i32
    %c0_i32_1 = arith.constant 0 : i32
    return %c0_i32, %c0_i32_0 : i32, i32
  }
  func.func @transform_4(%arg0: i32) -> (i32, i32) {
    %c0_i32 = arith.constant 0 : i32
    %c0_i32_0 = arith.constant 0 : i32
    %c0_i32_1 = arith.constant 0 : i32
    return %c0_i32, %c0_i32_0 : i32, i32
  }
  func.func @transform_5(%arg0: i32) -> (i32, i32) {
    %c0_i32 = arith.constant 0 : i32
    %c0_i32_0 = arith.constant 0 : i32
    %c0_i32_1 = arith.constant 0 : i32
    return %c0_i32, %c0_i32_0 : i32, i32
  }
  func.func @transform_6(%arg0: i32) -> (i32, i32) {
    %c0_i32 = arith.constant 0 : i32
    %c0_i32_0 = arith.constant 0 : i32
    %c0_i32_1 = arith.constant 0 : i32
    return %c0_i32, %c0_i32_0 : i32, i32
  }
  func.func @transform_7(%arg0: i32) -> (i32, i32) {
    %c0_i32 = arith.constant 0 : i32
    %c0_i32_0 = arith.constant 0 : i32
    %c0_i32_1 = arith.constant 0 : i32
    return %c0_i32, %c0_i32_0 : i32, i32
  }
  func.func @transform_8(%arg0: i32) -> (i32, i32) {
    %c0_i32 = arith.constant 0 : i32
    %c0_i32_0 = arith.constant 0 : i32
    %c0_i32_1 = arith.constant 0 : i32
    return %c0_i32, %c0_i32_0 : i32, i32
  }
  func.func @transform_9(%arg0: i32) -> (i32, i32) {
    %c0_i32 = arith.constant 0 : i32
    %c0_i32_0 = arith.constant 0 : i32
    %c0_i32_1 = arith.constant 0 : i32
    return %c0_i32, %c0_i32_0 : i32, i32
  }
  func.func @transform_10(%arg0: i32) -> (i32, i32) {
    %c0_i32 = arith.constant 0 : i32
    %c0_i32_0 = arith.constant 0 : i32
    %c0_i32_1 = arith.constant 0 : i32
    return %c0_i32, %c0_i32_0 : i32, i32
  }
  func.func @transform_11(%arg0: i32) -> (i32, i32) {
    %c0_i32 = arith.constant 0 : i32
    %c0_i32_0 = arith.constant 0 : i32
    %c0_i32_1 = arith.constant 0 : i32
    return %c0_i32, %c0_i32_0 : i32, i32
  }
  func.func @transform_12(%arg0: i32) -> (i32, i32) {
    %c0_i32 = arith.constant 0 : i32
    %c0_i32_0 = arith.constant 0 : i32
    %c0_i32_1 = arith.constant 0 : i32
    return %c0_i32, %c0_i32_0 : i32, i32
  }
  func.func @transform_13(%arg0: i32) -> (i32, i32) {
    %c0_i32 = arith.constant 0 : i32
    %c0_i32_0 = arith.constant 0 : i32
    %c0_i32_1 = arith.constant 0 : i32
    return %c0_i32, %c0_i32_0 : i32, i32
  }
  func.func @transform_14(%arg0: i32) -> (i32, i32) {
    %c0_i32 = arith.constant 0 : i32
    %c0_i32_0 = arith.constant 0 : i32
    %c0_i32_1 = arith.constant 0 : i32
    return %c0_i32, %c0_i32_0 : i32, i32
  }
  func.func @transform_15(%arg0: i32) -> (i32, i32) {
    %c0_i32 = arith.constant 0 : i32
    %c0_i32_0 = arith.constant 0 : i32
    %c0_i32_1 = arith.constant 0 : i32
    return %c0_i32, %c0_i32_0 : i32, i32
  }
  func.func @transform_16(%arg0: i32) -> (i32, i32) {
    %c0_i32 = arith.constant 0 : i32
    %c0_i32_0 = arith.constant 0 : i32
    %c0_i32_1 = arith.constant 0 : i32
    return %c0_i32, %c0_i32_0 : i32, i32
  }
  func.func @transform_17(%arg0: i32) -> (i32, i32) {
    %c0_i32 = arith.constant 0 : i32
    %c0_i32_0 = arith.constant 0 : i32
    %c0_i32_1 = arith.constant 0 : i32
    return %c0_i32, %c0_i32_0 : i32, i32
  }
}

</mosaic_0001>

<bundles_post_ra>
// kernel: trdecoder_forward.1
= control target key start
LH: loop header
LB: loop body
LE: loop exit
PB: predicated region body
PF: predicated region fallthrough
CT: control target
= control target key end

     0   :  { %s6086_s0 = inlined_call_operand.vmem [shape: f32[128,128], index: 0, kind: input, shape index: {}]   ;;  %s6087_s1 = inlined_call_operand.vmem [shape: f32[128,128], index: 1, kind: input, shape index: {}]   ;;  %s6088_s2 = inlined_call_operand.vmem [shape: bf16[2,128,128], index: 2, kind: input, shape index: {}]   ;;  %s6089_s3 = inlined_call_operand.vmem [shape: f32[1,128], index: 3, kind: input, shape index: {}]   ;;  %s6090_s4 = inlined_call_operand.vmem [shape: f32[1,128], index: 4, kind: input, shape index: {}]   ;;  %s6091_s5 = inlined_call_operand.vmem [shape: f32[128,128], index: 5, kind: input, shape index: {}]   ;;  %s6092_s6 = inlined_call_operand.vmem [shape: f32[1,128], index: 6, kind: input, shape index: {}]   ;;  %s6093_s7 = inlined_call_operand.vmem [shape: f32[1,256], index: 7, kind: input, shape index: {}]   ;;  %s6094_s8 = inlined_call_operand.vmem [shape: f32[1,256], index: 8, kind: input, shape index: {}]   ;;  %s6095_s9 = inlined_call_operand.vmem [shape: bf16[256,256], index: 9, kind: input, shape index: {}]   ;;  %s6096_s10 = inlined_call_operand.vmem [shape: f32[1,256], index: 10, kind: input, shape index: {}]   ;;  %s6097_s11 = inlined_call_operand.vmem [shape: bf16[256,256], index: 11, kind: input, shape index: {}]   ;;  %s6098_s12 = inlined_call_operand.vmem [shape: f32[1,256], index: 12, kind: input, shape index: {}]   ;;  %s6099_s13 = inlined_call_operand.vmem [shape: f32[1,256], index: 13, kind: input, shape index: {}]   ;;  %s6100_s14 = inlined_call_operand.vmem [shape: f32[1,256], index: 14, kind: input, shape index: {}]   ;;  %s6101_s15 = inlined_call_operand.vmem [shape: bf16[256,128], index: 15, kind: input, shape index: {}]   ;;  %s6102_s16 = inlined_call_operand.vmem [shape: f32[1,128], index: 16, kind: input, shape index: {}]   ;;  %s6103_s17 = inlined_call_operand.hbm [shape: f32[128,128], index: 17, kind: output, shape index: {}]  }
   0x1   :  { %6131 = sst [smem:[#allocation30_spill]] %s6086_s0 }
   0x2   :  { %6132 = sst [smem:[#allocation31_spill]] %s6087_s1 }
   0x3   :  { %s6133_s26 = sld [smem:[#allocation30_spill]]  ;;  %v329_v5 = vld [vmem:[%s6091_s5] sm:$0xff]  ;;  %v330_v6 = vld [vmem:[%s6091_s5 + $0x8] sm:$0xff]  ;;  %v331_v12 = vld [vmem:[%s6091_s5 + $0x10] sm:$0xff] }
   0x4   :  { %v3500_v8 = vpack.c.bf16 %v330_v6, %v329_v5  ;;  %v332_v13 = vld [vmem:[%s6091_s5 + $0x18] sm:$0xff]  ;;  %v333_v17 = vld [vmem:[%s6091_s5 + $0x20] sm:$0xff]  ;;  %v334_v18 = vld [vmem:[%s6091_s5 + $0x28] sm:$0xff] }
   0x5   :  { %v3504_v15 = vpack.c.bf16 %v332_v13, %v331_v12  ;;  %v3508_v19 = vpack.c.bf16 %v334_v18, %v333_v17  ;;  %v335_v22 = vld [vmem:[%s6091_s5 + $0x30] sm:$0xff]  ;;  %v336_v23 = vld [vmem:[%s6091_s5 + $0x38] sm:$0xff]  ;;  %v337_v27 = vld [vmem:[%s6091_s5 + $0x40] sm:$0xff] }
   0x6   :  { %3501 = vmatprep.subr.bf16.mxu1 %v3500_v8  ;;  %v3512_v25 = vpack.c.bf16 %v336_v23, %v335_v22  ;;  %v338_v28 = vld [vmem:[%s6091_s5 + $0x48] sm:$0xff]  ;;  %v339_v32 = vld [vmem:[%s6091_s5 + $0x50] sm:$0xff]  ;;  %v340_v33 = vld [vmem:[%s6091_s5 + $0x58] sm:$0xff] }
   0x7   :  { %3503 = vmatpush3.bf16.msra.mxu1 %v3500_v8  ;;  %v3516_v29 = vpack.c.bf16 %v338_v28, %v337_v27  ;;  %v3520_v35 = vpack.c.bf16 %v340_v33, %v339_v32  ;;  %v341_v37 = vld [vmem:[%s6091_s5 + $0x60] sm:$0xff]  ;;  %v342_v38 = vld [vmem:[%s6091_s5 + $0x68] sm:$0xff]  ;;  %v343_v43 = vld [vmem:[%s6091_s5 + $0x70] sm:$0xff] }
   0x8   :  { %3505 = vmatprep.subr.bf16.mxu1 %v3504_v15  ;;  %v3524_v40 = vpack.c.bf16 %v342_v38, %v341_v37  ;;  %v344_v44 = vld [vmem:[%s6091_s5 + $0x78] sm:$0xff] }
   0x9   :  { %v4055_v0 = vld [vmem:[%s6133_s26] sm:$0xff]  ;;  %v4060_v1 = vld [vmem:[%s6133_s26 + $0x8] sm:$0xff]  ;;  %v4076_v4 = vld [vmem:[%s6133_s26 + $0x10] sm:$0xff]  ;;  %v3528_v45 = vpack.c.bf16 %v344_v44, %v343_v43 }
   0xa   :  { %76 = vadd.xlane.f32.xlu0 %v4055_v0  ;;  %v4065_v2 = vmul.f32 %v4055_v0, %v4055_v0  ;;  %v4070_v3 = vmul.f32 %v4060_v1, %v4060_v1  ;;  %v4087_v7 = vld [vmem:[%s6133_s26 + $0x18] sm:$0xff]  ;;  %v4093_v9 = vmul.f32 %v4076_v4, %v4076_v4  ;;  %v4103_v11 = vld [vmem:[%s6133_s26 + $0x20] sm:$0xff]  ;;  %v4115_v14 = vld [vmem:[%s6133_s26 + $0x28] sm:$0xff] }
   0xb   :  { %v4098_v10 = vmul.f32 %v4087_v7, %v4087_v7  ;;  %v4121_v16 = vmul.f32 %v4103_v11, %v4103_v11  ;;  %3507 = vmatpush3.bf16.msra.mxu1 %v3504_v15  ;;  %v4132_v20 = vmul.f32 %v4115_v14, %v4115_v14  ;;  %v4137_v21 = vld [vmem:[%s6133_s26 + $0x30] sm:$0xff]  ;;  %v4149_v24 = vld [vmem:[%s6133_s26 + $0x38] sm:$0xff]  ;;  %v4171_v31 = vld [vmem:[%s6133_s26 + $0x40] sm:$0xff] }
   0xc   :  { %141 = vadd.xlane.f32.xlu1 %v4065_v2  ;;  %3509 = vmatprep.subr.bf16.mxu1 %v3508_v19  ;;  %v4155_v26 = vmul.f32 %v4137_v21, %v4137_v21  ;;  %v4166_v30 = vmul.f32 %v4149_v24, %v4149_v24  ;;  %v4183_v34 = vld [vmem:[%s6133_s26 + $0x48] sm:$0xff]  ;;  %v4189_v36 = vmul.f32 %v4171_v31, %v4171_v31  ;;  %v4205_v41 = vld [vmem:[%s6133_s26 + $0x50] sm:$0xff]  ;;  %v4211_v42 = vld [vmem:[%s6133_s26 + $0x58] sm:$0xff] }
   0xd   :  { %v4200_v39 = vmul.f32 %v4183_v34, %v4183_v34  ;;  %v4223_v46 = vmul.f32 %v4205_v41, %v4205_v41  ;;  %v4228_v47 = vmul.f32 %v4211_v42, %v4211_v42  ;;  %v4233_v48 = vld [vmem:[%s6133_s26 + $0x60] sm:$0xff]  ;;  %v4239_v49 = vld [vmem:[%s6133_s26 + $0x68] sm:$0xff]  ;;  %v4256_v52 = vld [vmem:[%s6133_s26 + $0x70] sm:$0xff] }
   0xe   :  { %78 = vadd.xlane.f32.xlu0 %v4060_v1  ;;  %v4245_v50 = vmul.f32 %v4233_v48, %v4233_v48  ;;  %v4250_v51 = vmul.f32 %v4239_v49, %v4239_v49 }
   0xf   :  { %3511 = vmatpush3.bf16.msra.mxu1 %v3508_v19 }
  0x10   :  { %143 = vadd.xlane.f32.xlu1 %v4070_v3  ;;  %3513 = vmatprep.subr.bf16.mxu1 %v3512_v25 }
  0x12   :  { %80 = vadd.xlane.f32.xlu0 %v4076_v4 }
  0x13   :  { %3515 = vmatpush3.bf16.msra.mxu1 %v3512_v25 }
  0x14   :  { %82 = vadd.xlane.f32.xlu1 %v4087_v7  ;;  %3517 = vmatprep.subr.bf16.mxu1 %v3516_v29 }
  0x16   :  { %145 = vadd.xlane.f32.xlu0 %v4093_v9 }
  0x17   :  { %3519 = vmatpush3.bf16.msra.mxu1 %v3516_v29 }
  0x18   :  { %147 = vadd.xlane.f32.xlu1 %v4098_v10  ;;  %3521 = vmatprep.subr.bf16.mxu1 %v3520_v35 }
  0x1a   :  { %84 = vadd.xlane.f32.xlu0 %v4103_v11 }
  0x1b   :  { %3523 = vmatpush3.bf16.msra.mxu1 %v3520_v35 }
  0x1c   :  { %86 = vadd.xlane.f32.xlu1 %v4115_v14  ;;  %3525 = vmatprep.subr.bf16.mxu1 %v3524_v40 }
  0x1e   :  { %149 = vadd.xlane.f32.xlu0 %v4121_v16 }
  0x1f   :  { %3527 = vmatpush3.bf16.msra.mxu1 %v3524_v40 }
  0x20   :  { %151 = vadd.xlane.f32.xlu1 %v4132_v20  ;;  %3529 = vmatprep.subr.bf16.mxu1 %v3528_v45 }
  0x22   :  { %88 = vadd.xlane.f32.xlu0 %v4137_v21 }
  0x23   :  { %3531 = vmatpush3.bf16.msra.mxu1 %v3528_v45 }
  0x24   :  { %90 = vadd.xlane.f32.xlu1 %v4149_v24 }
  0x26   :  { %153 = vadd.xlane.f32.xlu0 %v4155_v26 }
  0x28   :  { %155 = vadd.xlane.f32.xlu1 %v4166_v30 }
  0x2a   :  { %92 = vadd.xlane.f32.xlu0 %v4171_v31 }
  0x2c   :  { %94 = vadd.xlane.f32.xlu1 %v4183_v34 }
  0x2e   :  { %157 = vadd.xlane.f32.xlu0 %v4189_v36 }
  0x30   :  { %159 = vadd.xlane.f32.xlu1 %v4200_v39 }
  0x32   :  { %96 = vadd.xlane.f32.xlu0 %v4205_v41 }
  0x34   :  { %98 = vadd.xlane.f32.xlu1 %v4211_v42 }
  0x36   :  { %161 = vadd.xlane.f32.xlu0 %v4223_v46 }
  0x38   :  { %163 = vadd.xlane.f32.xlu1 %v4228_v47 }
  0x3a   :  { %100 = vadd.xlane.f32.xlu0 %v4233_v48 }
  0x3c   :  { %102 = vadd.xlane.f32.xlu1 %v4239_v49 }
  0x3e   :  { %165 = vadd.xlane.f32.xlu0 %v4245_v50 }
  0x3f   :  { %22 = vsyncpa [#allocation3], 0  ;;  %v4262_v53 = vld [vmem:[%s6133_s26 + $0x78] sm:$0xff]  ;;  %v4267_v54 = vmul.f32 %v4256_v52, %v4256_v52  ;;  %s6134_s1 = sld [smem:[#allocation31_spill]] }
  0x40   :  { %167 = vadd.xlane.f32.xlu1 %v4250_v51  ;;  %v4272_v55 = vmul.f32 %v4262_v53, %v4262_v53 }
  0x42   :  { %104 = vadd.xlane.f32.xlu0 %v4256_v52 }
  0x44   :  { %106 = vadd.xlane.f32.xlu1 %v4262_v53 }
  0x45   :  { %v497_v56 = vld [vmem:[%s6134_s1] sm:$0xff]  ;;  %v498_v57 = vld [vmem:[%s6134_s1 + $0x8] sm:$0xff] }
  0x46   :  { %169 = vadd.xlane.f32.xlu0 %v4267_v54  ;;  %v4282_v58 = vpack.c.bf16 %v498_v57, %v497_v56 }
  0x48   :  { %171 = vadd.xlane.f32.xlu1 %v4272_v55  ;;  %3533 = vmatprep.subr.bf16.mxu1 %v4282_v58 }
  0x97   :  { %v77_v59 = vpop.xlane.xlu0 %76 }
  0x98   :  { %v109_v60 = vmul.f32 0.0078125, %v77_v59 }
  0x99   :  { %v142_v61 = vpop.xlane.xlu1 %141 }
  0x9a   :  { %v189_v62 = vmul.f32 %v109_v60, %v109_v60  ;;  %v173_v63 = vmul.f32 0.0078125, %v142_v61  ;;  %v221_v56 = vsub.f32 %v4055_v0, %v109_v60  ;;  %v4308_v0 = vld [vmem:[%s6090_s4] ss:$0 sm:$0xff] }
  0x9b   :  { %v79_v5 = vpop.xlane.xlu0 %78 }
  0x9c   :  { %v205_v6 = vsub.f32 %v173_v63, %v189_v62  ;;  %v110_v8 = vmul.f32 0.0078125, %v79_v5  ;;  %v4301_v63 = vld [vmem:[%s6089_s3] ss:$0 sm:$0xff] }
  0x9d   :  { %v144_v12 = vpop.xlane.xlu1 %143 }
  0x9e   :  { %v237_v13 = vadd.f32 1e-05, %v205_v6  ;;  %v190_v15 = vmul.f32 %v110_v8, %v110_v8  ;;  %v174_v17 = vmul.f32 0.0078125, %v144_v12  ;;  %v222_v60 = vsub.f32 %v4060_v1, %v110_v8  ;;  %v499_v1 = vld [vmem:[%s6134_s1 + $0x10] sm:$0xff]  ;;  %v500_v8 = vld [vmem:[%s6134_s1 + $0x18] sm:$0xff] }
  0x9f   :  { %v81_v18 = vpop.xlane.xlu0 %80 }
  0xa0   :  { %3695 = vrsqrt.f32 %v237_v13  ;;  %v206_v19 = vsub.f32 %v174_v17, %v190_v15  ;;  %v4285_v22 = vmul.f32 0.0078125, %v81_v18 }
  0xa1   :  { %v83_v23 = vpop.xlane.xlu1 %82 }
  0xa2   :  { %v238_v25 = vadd.f32 1e-05, %v206_v19  ;;  %v191_v27 = vmul.f32 %v4285_v22, %v4285_v22  ;;  %v4289_v28 = vmul.f32 0.0078125, %v83_v23 }
  0xa3   :  { %v146_v29 = vpop.xlane.xlu0 %145 }
  0xa4   :  { %3697 = vrsqrt.f32 %v238_v25  ;;  %v175_v32 = vmul.f32 0.0078125, %v146_v29  ;;  %v192_v35 = vmul.f32 %v4289_v28, %v4289_v28 }
  0xa5   :  { %v148_v33 = vpop.xlane.xlu1 %147 }
  0xa6   :  { %v207_v37 = vsub.f32 %v175_v32, %v191_v27  ;;  %v176_v38 = vmul.f32 0.0078125, %v148_v33 }
  0xa7   :  { %v85_v40 = vpop.xlane.xlu0 %84 }
  0xa8   :  { %v239_v43 = vadd.f32 1e-05, %v207_v37  ;;  %v208_v44 = vsub.f32 %v176_v38, %v192_v35  ;;  %v4293_v45 = vmul.f32 0.0078125, %v85_v40 }
  0xa9   :  { %v87_v57 = vpop.xlane.xlu1 %86 }
  0xaa   :  { %v3696_v59 = vpop.eup %3695  ;;  %3699 = vrsqrt.f32 %v239_v43  ;;  %v240_v61 = vadd.f32 1e-05, %v208_v44  ;;  %v193_v62 = vmul.f32 %v4293_v45, %v4293_v45  ;;  %v4303_v5 = vmul.f32 0.0078125, %v87_v57 }
  0xab   :  { %v150_v6 = vpop.xlane.xlu0 %149  ;;  %v269_v12 = vmul.f32 %v3696_v59, %v221_v56  ;;  %v223_v56 = vsub.f32 %v4076_v4, %v4285_v22  ;;  %v224_v4 = vsub.f32 %v4087_v7, %v4289_v28  ;;  %v503_v28 = vld [vmem:[%s6134_s1 + $0x30] sm:$0xff] }
  0xac   :  { %3701 = vrsqrt.f32 %v240_v61  ;;  %v177_v13 = vmul.f32 0.0078125, %v150_v6  ;;  %v194_v19 = vmul.f32 %v4303_v5, %v4303_v5 }
  0xad   :  { %v152_v15 = vpop.xlane.xlu1 %151  ;;  %v291_v17 = vmul.f32 %v4301_v63, %v269_v12 }
  0xae   :  { %v3698_v18 = vpop.eup %3697  ;;  %v209_v23 = vsub.f32 %v177_v13, %v193_v62  ;;  %v178_v25 = vmul.f32 0.0078125, %v152_v15  ;;  %v3536_v62 = vpack.c.bf16 %v500_v8, %v499_v1  ;;  %v501_v13 = vld [vmem:[%s6134_s1 + $0x20] sm:$0xff]  ;;  %v504_v1 = vld [vmem:[%s6134_s1 + $0x38] sm:$0xff] }
  0xaf   :  { %v89_v27 = vpop.xlane.xlu0 %88  ;;  %v313_v29 = vadd.f32 %v4308_v0, %v291_v17  ;;  %v270_v32 = vmul.f32 %v3698_v18, %v222_v60  ;;  %v502_v60 = vld [vmem:[%s6134_s1 + $0x28] sm:$0xff] }
  0xb0   :  { %v241_v33 = vadd.f32 1e-05, %v209_v23  ;;  %v210_v35 = vsub.f32 %v178_v25, %v194_v19  ;;  %v4315_v37 = vmul.f32 0.0078125, %v89_v27 }
  0xb1   :  { %3372 = vmatprep.mubr.f32.mxu1 %v313_v29  ;;  %v91_v38 = vpop.xlane.xlu1 %90  ;;  %v292_v40 = vmul.f32 %v4301_v63, %v270_v32  ;;  %v3540_v32 = vpack.c.bf16 %v502_v60, %v501_v13  ;;  %v505_v60 = vld [vmem:[%s6134_s1 + $0x40] sm:$0xff] }
  0xb2   :  { %3703 = vrsqrt.f32 %v241_v33  ;;  %v242_v43 = vadd.f32 1e-05, %v210_v35  ;;  %v195_v44 = vmul.f32 %v4315_v37, %v4315_v37  ;;  %v4328_v57 = vmul.f32 0.0078125, %v91_v38 }
  0xb3   :  { %v154_v59 = vpop.xlane.xlu0 %153  ;;  %v314_v61 = vadd.f32 %v4308_v0, %v292_v40 }
  0xb4   :  { %v3700_v6 = vpop.eup %3699  ;;  %3705 = vrsqrt.f32 %v242_v43  ;;  %v179_v12 = vmul.f32 0.0078125, %v154_v59  ;;  %v196_v18 = vmul.f32 %v4328_v57, %v4328_v57 }
  0xb5   :  { %3373 = vmatmul.mubr.f32.vlgmr.msra.gmra.mrb[0].mxu1 %v314_v61  ;;  %v156_v22 = vpop.xlane.xlu1 %155  ;;  %v271_v15 = vmul.f32 %v3700_v6, %v223_v56  ;;  %v3544_v6 = vpack.c.bf16 %v504_v1, %v503_v28 }
  0xb6   :  { %v3702_v17 = vpop.eup %3701  ;;  %v211_v19 = vsub.f32 %v179_v12, %v195_v44  ;;  %v180_v23 = vmul.f32 0.0078125, %v156_v22  ;;  %3535 = vmatpush3.bf16.msra.mxu1 %v4282_v58  ;;  %v225_v44 = vsub.f32 %v4103_v11, %v4293_v45  ;;  %v226_v11 = vsub.f32 %v4115_v14, %v4303_v5  ;;  %v507_v14 = vld [vmem:[%s6134_s1 + $0x50] sm:$0xff]  ;;  %v508_v5 = vld [vmem:[%s6134_s1 + $0x58] sm:$0xff] }
  0xb7   :  { %v93_v25 = vpop.xlane.xlu0 %92  ;;  %v293_v27 = vmul.f32 %v4301_v63, %v271_v15  ;;  %v272_v29 = vmul.f32 %v3702_v17, %v224_v4  ;;  %3537 = vmatprep.subr.bf16.mxu1 %v3536_v62 }
  0xb8   :  { %v243_v33 = vadd.f32 1e-05, %v211_v19  ;;  %v212_v35 = vsub.f32 %v180_v23, %v196_v18  ;;  %v4343_v7 = vmul.f32 0.0078125, %v93_v25 }
  0xb9   :  { %v95_v8 = vpop.xlane.xlu1 %94  ;;  %v315_v58 = vadd.f32 %v4308_v0, %v293_v27  ;;  %v294_v38 = vmul.f32 %v4301_v63, %v272_v29 }
  0xba   :  { %3707 = vrsqrt.f32 %v243_v33  ;;  %v244_v40 = vadd.f32 1e-05, %v212_v35  ;;  %v197_v43 = vmul.f32 %v4343_v7, %v4343_v7  ;;  %3539 = vmatpush3.bf16.msra.mxu1 %v3536_v62  ;;  %v4357_v56 = vmul.f32 0.0078125, %v95_v8  ;;  %v506_v62 = vld [vmem:[%s6134_s1 + $0x48] sm:$0xff] }
  0xbb   :  { %v158_v59 = vpop.xlane.xlu0 %157  ;;  %3375 = vmatprep.mubr.f32.mxu1 %v315_v58  ;;  %v316_v61 = vadd.f32 %v4308_v0, %v294_v38  ;;  %3541 = vmatprep.subr.bf16.mxu1 %v3540_v32  ;;  %v3548_v27 = vpack.c.bf16 %v506_v62, %v505_v60  ;;  %v227_v38 = vsub.f32 %v4137_v21, %v4315_v37 }
  0xbc   :  { %v3704_v12 = vpop.eup %3703  ;;  %3709 = vrsqrt.f32 %v244_v40  ;;  %v181_v13 = vmul.f32 0.0078125, %v158_v59  ;;  %v198_v15 = vmul.f32 %v4357_v56, %v4357_v56  ;;  %v3552_v59 = vpack.c.bf16 %v508_v5, %v507_v14 }
  0xbd   :  { %3376 = vmatmul.mubr.f32.gmra.mrb[2].mxu1 %v316_v61  ;;  %v160_v45 = vpop.xlane.xlu1 %159  ;;  %v273_v4 = vmul.f32 %v3704_v12, %v225_v44  ;;  %v228_v21 = vsub.f32 %v4149_v24, %v4328_v57  ;;  %v229_v14 = vsub.f32 %v4171_v31, %v4343_v7 }
  0xbe   :  { %v3706_v22 = vpop.eup %3705  ;;  %v213_v17 = vsub.f32 %v181_v13, %v197_v43  ;;  %v182_v18 = vmul.f32 0.0078125, %v160_v45  ;;  %3543 = vmatpush3.bf16.msra.mxu1 %v3540_v32  ;;  %v509_v13 = vld [vmem:[%s6134_s1 + $0x60] sm:$0xff] }
  0xbf   :  { %v97_v19 = vpop.xlane.xlu0 %96  ;;  %v295_v23 = vmul.f32 %v4301_v63, %v273_v4  ;;  %v274_v25 = vmul.f32 %v3706_v22, %v226_v11  ;;  %3545 = vmatprep.subr.bf16.mxu1 %v3544_v6 }
  0xc0   :  { %v245_v29 = vadd.f32 1e-05, %v213_v17  ;;  %v214_v33 = vsub.f32 %v182_v18, %v198_v15  ;;  %v4371_v35 = vmul.f32 0.0078125, %v97_v19 }
  0xc1   :  { %v99_v28 = vpop.xlane.xlu1 %98  ;;  %v317_v32 = vadd.f32 %v4308_v0, %v295_v23  ;;  %v296_v1 = vmul.f32 %v4301_v63, %v274_v25 }
  0xc2   :  { %3711 = vrsqrt.f32 %v245_v29  ;;  %v246_v8 = vadd.f32 1e-05, %v214_v33  ;;  %v199_v58 = vmul.f32 %v4371_v35, %v4371_v35  ;;  %3547 = vmatpush3.bf16.msra.mxu1 %v3544_v6  ;;  %v4385_v40 = vmul.f32 0.0078125, %v99_v28  ;;  %v510_v6 = vld [vmem:[%s6134_s1 + $0x68] sm:$0xff] }
  0xc3   :  { %v162_v43 = vpop.xlane.xlu0 %161  ;;  %3378 = vmatprep.mubr.f32.mxu1 %v317_v32  ;;  %v318_v44 = vadd.f32 %v4308_v0, %v296_v1  ;;  %3549 = vmatprep.subr.bf16.mxu1 %v3548_v27  ;;  %v3556_v18 = vpack.c.bf16 %v510_v6, %v509_v13 }
  0xc4   :  { %v3708_v61 = vpop.eup %3707  ;;  %3713 = vrsqrt.f32 %v246_v8  ;;  %v183_v12 = vmul.f32 0.0078125, %v162_v43  ;;  %v200_v11 = vmul.f32 %v4385_v40, %v4385_v40 }
  0xc5   :  { %3379 = vmatmul.mubr.f32.gmra.mrb[4].mxu1 %v318_v44  ;;  %v164_v37 = vpop.xlane.xlu1 %163  ;;  %v275_v60 = vmul.f32 %v3708_v61, %v227_v38 }
  0xc6   :  { %v3710_v62 = vpop.eup %3709  ;;  %v215_v45 = vsub.f32 %v183_v12, %v199_v58  ;;  %v184_v4 = vmul.f32 0.0078125, %v164_v37  ;;  %3551 = vmatpush3.bf16.msra.mxu1 %v3548_v27  ;;  %v230_v58 = vsub.f32 %v4183_v34, %v4357_v56 }
  0xc7   :  { %v101_v22 = vpop.xlane.xlu0 %100  ;;  %v297_v15 = vmul.f32 %v4301_v63, %v275_v60  ;;  %v276_v17 = vmul.f32 %v3710_v62, %v228_v21  ;;  %3553 = vmatprep.subr.bf16.mxu1 %v3552_v59 }
  0xc8   :  { %v247_v19 = vadd.f32 1e-05, %v215_v45  ;;  %v216_v23 = vsub.f32 %v184_v4, %v200_v11  ;;  %v4399_v25 = vmul.f32 0.0078125, %v101_v22  ;;  %v231_v45 = vsub.f32 %v4205_v41, %v4371_v35 }
  0xc9   :  { %v103_v24 = vpop.xlane.xlu1 %102  ;;  %v319_v57 = vadd.f32 %v4308_v0, %v297_v15  ;;  %v298_v29 = vmul.f32 %v4301_v63, %v276_v17 }
  0xca   :  { %3715 = vrsqrt.f32 %v247_v19  ;;  %v248_v33 = vadd.f32 1e-05, %v216_v23  ;;  %v201_v27 = vmul.f32 %v4399_v25, %v4399_v25  ;;  %3555 = vmatpush3.bf16.msra.mxu1 %v3552_v59  ;;  %v4407_v5 = vmul.f32 0.0078125, %v103_v24 }
  0xcb   :  { %v166_v28 = vpop.xlane.xlu0 %165  ;;  %3381 = vmatprep.mubr.f32.mxu1 %v319_v57  ;;  %v320_v32 = vadd.f32 %v4308_v0, %v298_v29  ;;  %3557 = vmatprep.subr.bf16.mxu1 %v3556_v18  ;;  %v232_v19 = vsub.f32 %v4211_v42, %v4385_v40  ;;  %v233_v42 = vsub.f32 %v4233_v48, %v4399_v25 }
  0xcc   :  { %v3712_v1 = vpop.eup %3711  ;;  %3717 = vrsqrt.f32 %v248_v33  ;;  %v185_v8 = vmul.f32 0.0078125, %v166_v28  ;;  %v202_v31 = vmul.f32 %v4407_v5, %v4407_v5 }
  0xcd   :  { %3382 = vmatmul.mubr.f32.gmra.mrb[6].mxu1 %v320_v32  ;;  %v168_v38 = vpop.xlane.xlu1 %167  ;;  %v277_v43 = vmul.f32 %v3712_v1, %v229_v14 }
  0xce   :  { %v3714_v44 = vpop.eup %3713  ;;  %v217_v7 = vsub.f32 %v185_v8, %v201_v27  ;;  %v186_v59 = vmul.f32 0.0078125, %v168_v38  ;;  %3559 = vmatpush3.bf16.msra.mxu1 %v3556_v18  ;;  %v234_v38 = vsub.f32 %v4239_v49, %v4407_v5 }
  0xcf   :  { %v105_v61 = vpop.xlane.xlu0 %104  ;;  %v299_v12 = vmul.f32 %v4301_v63, %v277_v43  ;;  %v278_v13 = vmul.f32 %v3714_v44, %v230_v58 }
  0xd0   :  { %v249_v6 = vadd.f32 1e-05, %v217_v7  ;;  %v218_v21 = vsub.f32 %v186_v59, %v202_v31  ;;  %v123_v37 = vmul.f32 0.0078125, %v105_v61 }
  0xd1   :  { %v107_v60 = vpop.xlane.xlu1 %106  ;;  %v321_v34 = vadd.f32 %v4308_v0, %v299_v12  ;;  %v300_v56 = vmul.f32 %v4301_v63, %v278_v13 }
  0xd2   :  { %3719 = vrsqrt.f32 %v249_v6  ;;  %v250_v62 = vadd.f32 1e-05, %v218_v21  ;;  %v203_v11 = vmul.f32 %v123_v37, %v123_v37  ;;  %v124_v4 = vmul.f32 0.0078125, %v107_v60 }
  0xd3   :  { %v170_v22 = vpop.xlane.xlu0 %169  ;;  %3384 = vmatprep.mubr.f32.mxu1 %v321_v34  ;;  %v322_v15 = vadd.f32 %v4308_v0, %v300_v56  ;;  %v235_v48 = vsub.f32 %v4256_v52, %v123_v37  ;;  %v511_v52 = vld [vmem:[%s6134_s1 + $0x70] sm:$0xff] }
  0xd4   :  { %v3716_v17 = vpop.eup %3715  ;;  %3721 = vrsqrt.f32 %v250_v62  ;;  %v187_v18 = vmul.f32 0.0078125, %v170_v22  ;;  %v204_v29 = vmul.f32 %v124_v4, %v124_v4  ;;  %v236_v13 = vsub.f32 %v4262_v53, %v124_v4  ;;  %v512_v53 = vld [vmem:[%s6134_s1 + $0x78] sm:$0xff]  ;;  %v3074_v62 = vld [vmem:[%s6092_s6] ss:$0 sm:$0xff] }
  0xd5   :  { %3385 = vmatmul.mubr.f32.gmra.mrb[8].mxu1 %v322_v15  ;;  %v172_v23 = vpop.xlane.xlu1 %171  ;;  %v279_v24 = vmul.f32 %v3716_v17, %v231_v45  ;;  %v3560_v37 = vpack.c.bf16 %v512_v53, %v511_v52  ;;  %v3572_v53 = vld [vmem:[%s6088_s2 + $0x28] sm:$0xff]  }
  0xd6   :  { %v3718_v57 = vpop.eup %3717  ;;  %v219_v33 = vsub.f32 %v187_v18, %v203_v11  ;;  %v188_v27 = vmul.f32 0.0078125, %v172_v23 }
  0xd7   :  { %v301_v41 = vmul.f32 %v4301_v63, %v279_v24  ;;  %v280_v35 = vmul.f32 %v3718_v57, %v232_v19  ;;  %3561 = vmatprep.subr.bf16.mxu1 %v3560_v37 }
  0xd8   :  { %v251_v14 = vadd.f32 1e-05, %v219_v33  ;;  %v220_v28 = vsub.f32 %v188_v27, %v204_v29  ;;  %3563 = vmatpush3.bf16.msra.mxu1 %v3560_v37 }
  0xd9   :  { %v323_v32 = vadd.f32 %v4308_v0, %v301_v41  ;;  %v302_v1 = vmul.f32 %v4301_v63, %v280_v35 }
  0xda   :  { %3723 = vrsqrt.f32 %v251_v14  ;;  %v252_v8 = vadd.f32 1e-05, %v220_v28 }
  0xdb   :  { %3387 = vmatprep.mubr.f32.mxu1 %v323_v32  ;;  %v324_v40 = vadd.f32 %v4308_v0, %v302_v1 }
  0xdc   :  { %v3720_v58 = vpop.eup %3719  ;;  %3725 = vrsqrt.f32 %v252_v8 }
  0xdd   :  { %3388 = vmatmul.mubr.f32.gmra.mrb[10].mxu1 %v324_v40  ;;  %v281_v43 = vmul.f32 %v3720_v58, %v233_v42 }
  0xde   :  { %v3722_v44 = vpop.eup %3721 }
  0xdf   :  { %v303_v31 = vmul.f32 %v4301_v63, %v281_v43  ;;  %v282_v7 = vmul.f32 %v3722_v44, %v234_v38 }
  0xe1   :  { %v325_v59 = vadd.f32 %v4308_v0, %v303_v31  ;;  %v304_v61 = vmul.f32 %v4301_v63, %v282_v7 }
  0xe3   :  { %3390 = vmatprep.mubr.f32.mxu1 %v325_v59  ;;  %v326_v25 = vadd.f32 %v4308_v0, %v304_v61  ;;  %v3567_v61 = vld [vmem:[%s6088_s2] sm:$0xff]  }
  0xe4   :  { %v3724_v12 = vpop.eup %3723  ;;  %3452 = vmatprep.subr.bf16.mxu0 %v3567_v61 }
  0xe5   :  { %3391 = vmatmul.mubr.f32.gmra.mrb[12].mxu1 %v326_v25  ;;  %v283_v49 = vmul.f32 %v3724_v12, %v235_v48  ;;  %v3568_v48 = vld [vmem:[%s6088_s2 + $0x8] sm:$0xff]   ;;  %3453 = vmatpush3.bf16.msra.mxu0 %v3567_v61 }
  0xe6   :  { %v3726_v5 = vpop.eup %3725  ;;  %3454 = vmatprep.subr.bf16.mxu0 %v3568_v48 }
  0xe7   :  { %v305_v6 = vmul.f32 %v4301_v63, %v283_v49  ;;  %v284_v21 = vmul.f32 %v3726_v5, %v236_v13 }
  0xe9   :  { %v327_v60 = vadd.f32 %v4308_v0, %v305_v6  ;;  %v306_v34 = vmul.f32 %v4301_v63, %v284_v21  ;;  %3455 = vmatpush3.bf16.msra.mxu0 %v3568_v48  ;;  %v3569_v6 = vld [vmem:[%s6088_s2 + $0x10] sm:$0xff]  }
  0xea   :  { %3456 = vmatprep.subr.bf16.mxu0 %v3569_v6 }
  0xeb   :  { %3393 = vmatprep.mubr.f32.mxu1 %v327_v60  ;;  %v328_v56 = vadd.f32 %v4308_v0, %v306_v34  ;;  %v3570_v60 = vld [vmem:[%s6088_s2 + $0x18] sm:$0xff]  }
  0xed   :  { %3394 = vmatmul.mubr.f32.gmra.mrb[14].mxu1 %v328_v56  ;;  %3457 = vmatpush3.bf16.msra.mxu0 %v3569_v6  ;;  %v3571_v56 = vld [vmem:[%s6088_s2 + $0x20] sm:$0xff]  }
  0xee   :  { %3458 = vmatprep.subr.bf16.mxu0 %v3570_v60 }
  0xf1   :  { %3459 = vmatpush3.bf16.msra.mxu0 %v3570_v60 }
  0xf2   :  { %3460 = vmatprep.subr.bf16.mxu0 %v3571_v56 }
  0xf5   :  { %3461 = vmatpush3.bf16.msra.mxu0 %v3571_v56 }
  0xf6   :  { %3462 = vmatprep.subr.bf16.mxu0 %v3572_v53 }
  0xf9   :  { %3463 = vmatpush3.bf16.msra.mxu0 %v3572_v53 }
 0x188   :  { %v3374_v63 = vpop.f32.mrb[0].mxu1 }
 0x189   :  { %v418_v11 = vpop.f32.mrb[1].mxu1  ;;  %v424_v0 = vadd.f32 %v3374_v63, %v3074_v62 }
 0x18a   :  { %v419_v45 = vadd.f32 %v3074_v62, %v418_v11  ;;  %v3574_v11 = vld [vmem:[%s6088_s2 + $0x38] sm:$0xff]  }
 0x18c   :  { %3428 = vmatprep.mubr.f32.mxu1 %v419_v45 }
 0x18d   :  { %3429 = vmatmul.mubr.f32.vlgmr.msra.gmra.mrb[16].mxu1 %v424_v0  ;;  %v3575_v0 = vld [vmem:[%s6088_s2 + $0x40] sm:$0xff]  }
 0x18e   :  { %3476 = vmatprep.subr.bf16.mxu1 %v3575_v0 }
 0x18f   :  { %3477 = vmatpush3.bf16.msra.mxu1 %v3575_v0 }
 0x190   :  { %v3377_v4 = vpop.f32.mrb[2].mxu1 }
 0x191   :  { %v428_v22 = vpop.f32.mrb[3].mxu1  ;;  %v434_v17 = vadd.f32 %v3377_v4, %v3074_v62 }
 0x192   :  { %v429_v15 = vadd.f32 %v3074_v62, %v428_v22  ;;  %v3576_v22 = vld [vmem:[%s6088_s2 + $0x48] sm:$0xff]  }
 0x193   :  { %3478 = vmatprep.subr.bf16.mxu1 %v3576_v22 }
 0x194   :  { %3431 = vmatprep.mubr.f32.mxu1 %v429_v15  ;;  %3479 = vmatpush3.bf16.msra.mxu1 %v3576_v22 }
 0x195   :  { %3432 = vmatmul.mubr.f32.gmra.mrb[18].mxu1 %v434_v17  ;;  %v3577_v17 = vld [vmem:[%s6088_s2 + $0x50] sm:$0xff]  }
 0x196   :  { %3480 = vmatprep.subr.bf16.mxu1 %v3577_v17 }
 0x198   :  { %v3380_v18 = vpop.f32.mrb[4].mxu1  ;;  %3481 = vmatpush3.bf16.msra.mxu1 %v3577_v17 }
 0x199   :  { %v438_v19 = vpop.f32.mrb[5].mxu1  ;;  %v444_v24 = vadd.f32 %v3380_v18, %v3074_v62 }
 0x19a   :  { %v439_v23 = vadd.f32 %v3074_v62, %v438_v19  ;;  %v3578_v19 = vld [vmem:[%s6088_s2 + $0x58] sm:$0xff]  }
 0x19b   :  { %3482 = vmatprep.subr.bf16.mxu1 %v3578_v19 }
 0x19c   :  { %3434 = vmatprep.mubr.f32.mxu1 %v439_v23  ;;  %3483 = vmatpush3.bf16.msra.mxu1 %v3578_v19 }
 0x19d   :  { %3435 = vmatmul.mubr.f32.gmra.mrb[20].mxu1 %v444_v24  ;;  %v3579_v24 = vld [vmem:[%s6088_s2 + $0x60] sm:$0xff]  }
 0x19e   :  { %3484 = vmatprep.subr.bf16.mxu1 %v3579_v24 }
 0x1a0   :  { %v3383_v57 = vpop.f32.mrb[6].mxu1  ;;  %3485 = vmatpush3.bf16.msra.mxu1 %v3579_v24 }
 0x1a1   :  { %v448_v29 = vpop.f32.mrb[7].mxu1  ;;  %v454_v27 = vadd.f32 %v3383_v57, %v3074_v62 }
 0x1a2   :  { %v449_v33 = vadd.f32 %v3074_v62, %v448_v29  ;;  %v3580_v29 = vld [vmem:[%s6088_s2 + $0x68] sm:$0xff]  }
 0x1a3   :  { %3486 = vmatprep.subr.bf16.mxu1 %v3580_v29 }
 0x1a4   :  { %3437 = vmatprep.mubr.f32.mxu1 %v449_v33  ;;  %3487 = vmatpush3.bf16.msra.mxu1 %v3580_v29  ;;  %v3581_v33 = vld [vmem:[%s6088_s2 + $0x70] sm:$0xff]  }
 0x1a5   :  { %3438 = vmatmul.mubr.f32.gmra.mrb[22].mxu1 %v454_v27  ;;  %3488 = vmatprep.subr.bf16.mxu1 %v3581_v33  ;;  %v3582_v27 = vld [vmem:[%s6088_s2 + $0x78] sm:$0xff]  }
 0x1a8   :  { %v3386_v41 = vpop.f32.mrb[8].mxu1  ;;  %3489 = vmatpush3.bf16.msra.mxu1 %v3581_v33 }
 0x1a9   :  { %v458_v35 = vpop.f32.mrb[9].mxu1  ;;  %v464_v28 = vadd.f32 %v3386_v41, %v3074_v62  ;;  %3490 = vmatprep.subr.bf16.mxu1 %v3582_v27 }
 0x1aa   :  { %v459_v14 = vadd.f32 %v3074_v62, %v458_v35 }
 0x1ac   :  { %3440 = vmatprep.mubr.f32.mxu1 %v459_v14  ;;  %3491 = vmatpush3.bf16.msra.mxu1 %v3582_v27 }
 0x1ad   :  { %3441 = vmatmul.mubr.f32.gmra.mrb[24].mxu1 %v464_v28 }
 0x1b0   :  { %v3389_v32 = vpop.f32.mrb[10].mxu1 }
 0x1b1   :  { %v468_v1 = vpop.f32.mrb[11].mxu1  ;;  %v474_v42 = vadd.f32 %v3389_v32, %v3074_v62 }
 0x1b2   :  { %v469_v8 = vadd.f32 %v3074_v62, %v468_v1 }
 0x1b4   :  { %3443 = vmatprep.mubr.f32.mxu1 %v469_v8 }
 0x1b5   :  { %3444 = vmatmul.mubr.f32.gmra.mrb[26].mxu1 %v474_v42 }
 0x1b8   :  { %v3392_v40 = vpop.f32.mrb[12].mxu1 }
 0x1b9   :  { %v478_v58 = vpop.f32.mrb[13].mxu1  ;;  %v484_v43 = vadd.f32 %v3392_v40, %v3074_v62 }
 0x1ba   :  { %v479_v38 = vadd.f32 %v3074_v62, %v478_v58 }
 0x1bc   :  { %3446 = vmatprep.mubr.f32.mxu1 %v479_v38 }
 0x1bd   :  { %3447 = vmatmul.mubr.f32.gmra.mrb[28].mxu1 %v484_v43 }
 0x1c0   :  { %v3395_v44 = vpop.f32.mrb[14].mxu1 }
 0x1c1   :  { %v488_v31 = vpop.f32.mrb[15].mxu1  ;;  %v494_v59 = vadd.f32 %v3395_v44, %v3074_v62 }
 0x1c2   :  { %v489_v7 = vadd.f32 %v3074_v62, %v488_v31  ;;  %v3573_v62 = vld [vmem:[%s6088_s2 + $0x30] sm:$0xff]  }
 0x1c3   :  { %3464 = vmatprep.subr.bf16.mxu0 %v3573_v62 }
 0x1c4   :  { %3449 = vmatprep.mubr.f32.mxu1 %v489_v7  ;;  %3465 = vmatpush3.bf16.msra.mxu0 %v3573_v62 }
 0x1c5   :  { %3450 = vmatmul.mubr.f32.gmra.mrb[30].mxu1 %v494_v59  ;;  %3466 = vmatprep.subr.bf16.mxu0 %v3574_v11 }
 0x1c8   :  { %3467 = vmatpush3.bf16.msra.mxu0 %v3574_v11 }
 0x260   :  { %v4455_v25 = vpop.f32.mrb[16].mxu1 }
 0x261   :  { %660 = vmax.xlane.f32.xlu1 %v4455_v25  ;;  %v4458_v12 = vpop.f32.mrb[17].mxu1 }
 0x262   :  { %658 = vmax.xlane.f32.xlu0 %v4458_v12 }
 0x268   :  { %v4461_v13 = vpop.f32.mrb[18].mxu1 }
 0x269   :  { %664 = vmax.xlane.f32.xlu1 %v4461_v13  ;;  %v4464_v49 = vpop.f32.mrb[19].mxu1 }
 0x26a   :  { %662 = vmax.xlane.f32.xlu0 %v4464_v49 }
 0x270   :  { %v4467_v5 = vpop.f32.mrb[20].mxu1 }
 0x271   :  { %668 = vmax.xlane.f32.xlu1 %v4467_v5  ;;  %v4473_v21 = vpop.f32.mrb[21].mxu1 }
 0x272   :  { %666 = vmax.xlane.f32.xlu0 %v4473_v21 }
 0x278   :  { %v4479_v34 = vpop.f32.mrb[22].mxu1 }
 0x279   :  { %672 = vmax.xlane.f32.xlu1 %v4479_v34  ;;  %v4485_v52 = vpop.f32.mrb[23].mxu1 }
 0x27a   :  { %670 = vmax.xlane.f32.xlu0 %v4485_v52 }
 0x280   :  { %v4491_v37 = vpop.f32.mrb[24].mxu1 }
 0x281   :  { %676 = vmax.xlane.f32.xlu1 %v4491_v37  ;;  %v4497_v63 = vpop.f32.mrb[25].mxu1 }
 0x282   :  { %674 = vmax.xlane.f32.xlu0 %v4497_v63 }
 0x288   :  { %v4503_v45 = vpop.f32.mrb[26].mxu1 }
 0x289   :  { %680 = vmax.xlane.f32.xlu1 %v4503_v45  ;;  %v4509_v4 = vpop.f32.mrb[27].mxu1 }
 0x28a   :  { %678 = vmax.xlane.f32.xlu0 %v4509_v4 }
 0x290   :  { %v4515_v15 = vpop.f32.mrb[28].mxu1 }
 0x291   :  { %684 = vmax.xlane.f32.xlu1 %v4515_v15  ;;  %v4521_v18 = vpop.f32.mrb[29].mxu1 }
 0x292   :  { %682 = vmax.xlane.f32.xlu0 %v4521_v18 }
 0x298   :  { %v4527_v23 = vpop.f32.mrb[30].mxu1 }
 0x299   :  { %688 = vmax.xlane.f32.xlu1 %v4527_v23  ;;  %v4533_v57 = vpop.f32.mrb[31].mxu1 }
 0x29a   :  { %686 = vmax.xlane.f32.xlu0 %v4533_v57 }
 0x2ee   :  { %v661_v41 = vpop.xlane.xlu1 %660 }
 0x2ef   :  { %v691_v35 = vsub.f32 %v4455_v25, %v661_v41  ;;  %v659_v14 = vpop.xlane.xlu0 %658 }
 0x2f0   :  { %v690_v28 = vsub.f32 %v4458_v12, %v659_v14 }
 0x2f1   :  { %v708_v32 = vmul.f32 1.442695, %v691_v35 }
 0x2f2   :  { %v706_v1 = vmul.f32 1.442695, %v690_v28 }
 0x2f3   :  { %3727 = vpow2.f32 %v708_v32 }
 0x2f4   :  { %3729 = vpow2.f32 %v706_v1 }
 0x2f6   :  { %v665_v8 = vpop.xlane.xlu1 %664 }
 0x2f7   :  { %v693_v42 = vsub.f32 %v4461_v13, %v665_v8  ;;  %v663_v40 = vpop.xlane.xlu0 %662 }
 0x2f8   :  { %v692_v58 = vsub.f32 %v4464_v49, %v663_v40 }
 0x2f9   :  { %v712_v38 = vmul.f32 1.442695, %v693_v42 }
 0x2fa   :  { %v710_v43 = vmul.f32 1.442695, %v692_v58 }
 0x2fb   :  { %3731 = vpow2.f32 %v712_v38 }
 0x2fc   :  { %3733 = vpow2.f32 %v710_v43 }
 0x2fd   :  { %v3728_v44 = vpop.eup %3727 }
 0x2fe   :  { %v3730_v31 = vpop.eup %3729  ;;  %v669_v7 = vpop.xlane.xlu1 %668  ;;  %740 = vadd.xlane.f32.xlu1 %v3728_v44 }
 0x2ff   :  { %v695_v59 = vsub.f32 %v4467_v5, %v669_v7  ;;  %v667_v61 = vpop.xlane.xlu0 %666  ;;  %738 = vadd.xlane.f32.xlu0 %v3730_v31  ;;  %v786_v48 = vpack.c.bf16 %v3728_v44, %v3730_v31 }
 0x300   :  { %v694_v25 = vsub.f32 %v4473_v21, %v667_v61 }
 0x301   :  { %v716_v12 = vmul.f32 1.442695, %v695_v59  ;;  %3468 = vmatprep.mubr.bf16.mxu0 %v786_v48 }
 0x302   :  { %v714_v13 = vmul.f32 1.442695, %v694_v25 }
 0x303   :  { %3735 = vpow2.f32 %v716_v12 }
 0x304   :  { %3737 = vpow2.f32 %v714_v13 }
 0x305   :  { %v3732_v49 = vpop.eup %3731 }
 0x306   :  { %v3734_v6 = vpop.eup %3733  ;;  %v673_v60 = vpop.xlane.xlu1 %672  ;;  %744 = vadd.xlane.f32.xlu1 %v3732_v49 }
 0x307   :  { %v697_v56 = vsub.f32 %v4479_v34, %v673_v60  ;;  %v671_v53 = vpop.xlane.xlu0 %670  ;;  %742 = vadd.xlane.f32.xlu0 %v3734_v6  ;;  %v787_v62 = vpack.c.bf16 %v3732_v49, %v3734_v6 }
 0x308   :  { %v696_v5 = vsub.f32 %v4485_v52, %v671_v53  ;;  %v3585_v53 = vld [vmem:[%s6095_s9 + $0x4] ss:$8 sps:$4 sm:$0xff]  }
 0x309   :  { %v720_v11 = vmul.f32 1.442695, %v697_v56  ;;  %3469 = vmatmul.mubr.bf16.vlgmr.msra.gmra.mrb[0].mxu0 %v787_v62  ;;  %v3588_v62 = vld [vmem:[%s6095_s9 + $0x14] ss:$8 sps:$4 sm:$0xff]   ;;  %1650 = vmatprep.subr.bf16.mxu0 %v3585_v53 }
 0x30a   :  { %v718_v0 = vmul.f32 1.442695, %v696_v5  ;;  %v3586_v5 = vld [vmem:[%s6095_s9 + $0x10] ss:$8 sps:$4 sm:$0xff]  }
 0x30b   :  { %3739 = vpow2.f32 %v720_v11  ;;  %v3591_v11 = vld [vmem:[%s6095_s9 + $0x24] ss:$8 sps:$4 sm:$0xff]  }
 0x30c   :  { %3741 = vpow2.f32 %v718_v0  ;;  %v3589_v0 = vld [vmem:[%s6095_s9 + $0x20] ss:$8 sps:$4 sm:$0xff]  }
 0x30d   :  { %v3736_v21 = vpop.eup %3735 }
 0x30e   :  { %v3738_v22 = vpop.eup %3737  ;;  %v677_v17 = vpop.xlane.xlu1 %676  ;;  %748 = vadd.xlane.f32.xlu1 %v3736_v21 }
 0x30f   :  { %v699_v19 = vsub.f32 %v4491_v37, %v677_v17  ;;  %v675_v24 = vpop.xlane.xlu0 %674  ;;  %746 = vadd.xlane.f32.xlu0 %v3738_v22  ;;  %v788_v29 = vpack.c.bf16 %v3736_v21, %v3738_v22  ;;  %v3594_v21 = vld [vmem:[%s6095_s9 + $0x34] ss:$8 sps:$4 sm:$0xff]   ;;  %v3592_v22 = vld [vmem:[%s6095_s9 + $0x30] ss:$8 sps:$4 sm:$0xff]   ;;  %v3597_v17 = vld [vmem:[%s6095_s9 + $0x44] ss:$8 sps:$4 sm:$0xff]  }
 0x310   :  { %v698_v34 = vsub.f32 %v4497_v63, %v675_v24  ;;  %v3600_v24 = vld [vmem:[%s6095_s9 + $0x54] ss:$8 sps:$4 sm:$0xff]  }
 0x311   :  { %v724_v33 = vmul.f32 1.442695, %v699_v19  ;;  %3472 = vmatprep.mubr.bf16.mxu0 %v788_v29  ;;  %v3595_v19 = vld [vmem:[%s6095_s9 + $0x40] ss:$8 sps:$4 sm:$0xff]   ;;  %v3598_v29 = vld [vmem:[%s6095_s9 + $0x50] ss:$8 sps:$4 sm:$0xff]  }
 0x312   :  { %v722_v27 = vmul.f32 1.442695, %v698_v34  ;;  %v3603_v34 = vld [vmem:[%s6095_s9 + $0x64] ss:$8 sps:$4 sm:$0xff]  }
 0x313   :  { %3743 = vpow2.f32 %v724_v33  ;;  %v3601_v33 = vld [vmem:[%s6095_s9 + $0x60] ss:$8 sps:$4 sm:$0xff]  }
 0x314   :  { %3745 = vpow2.f32 %v722_v27  ;;  %v3606_v27 = vld [vmem:[%s6095_s9 + $0x74] ss:$8 sps:$4 sm:$0xff]  }
 0x315   :  { %v3740_v52 = vpop.eup %3739 }
 0x316   :  { %v3742_v41 = vpop.eup %3741  ;;  %v681_v35 = vpop.xlane.xlu1 %680  ;;  %752 = vadd.xlane.f32.xlu1 %v3740_v52 }
 0x317   :  { %v701_v14 = vsub.f32 %v4503_v45, %v681_v35  ;;  %v679_v28 = vpop.xlane.xlu0 %678  ;;  %750 = vadd.xlane.f32.xlu0 %v3742_v41  ;;  %v789_v32 = vpack.c.bf16 %v3740_v52, %v3742_v41  ;;  %v3604_v52 = vld [vmem:[%s6095_s9 + $0x70] ss:$8 sps:$4 sm:$0xff]  }
 0x318   :  { %v700_v37 = vsub.f32 %v4509_v4, %v679_v28 }
 0x319   :  { %v728_v1 = vmul.f32 1.442695, %v701_v14  ;;  %3473 = vmatmul.mubr.bf16.gmra.mrb[4].mxu0 %v789_v32 }
 0x31a   :  { %v726_v8 = vmul.f32 1.442695, %v700_v37 }
 0x31b   :  { %3747 = vpow2.f32 %v728_v1 }
 0x31c   :  { %3749 = vpow2.f32 %v726_v8 }
 0x31d   :  { %v3744_v63 = vpop.eup %3743 }
 0x31e   :  { %v3746_v42 = vpop.eup %3745  ;;  %v685_v40 = vpop.xlane.xlu1 %684  ;;  %756 = vadd.xlane.f32.xlu1 %v3744_v63 }
 0x31f   :  { %v703_v58 = vsub.f32 %v4515_v15, %v685_v40  ;;  %v683_v38 = vpop.xlane.xlu0 %682  ;;  %754 = vadd.xlane.f32.xlu0 %v3746_v42  ;;  %v790_v43 = vpack.c.bf16 %v3744_v63, %v3746_v42 }
 0x320   :  { %v702_v45 = vsub.f32 %v4521_v18, %v683_v38 }
 0x321   :  { %v732_v44 = vmul.f32 1.442695, %v703_v58  ;;  %3492 = vmatprep.mubr.bf16.mxu1 %v790_v43  ;;  %v4616_v43 = vld [vmem:[%s6133_s26] sm:$0xff] }
 0x322   :  { %v730_v31 = vmul.f32 1.442695, %v702_v45 }
 0x323   :  { %3751 = vpow2.f32 %v732_v44 }
 0x324   :  { %3753 = vpow2.f32 %v730_v31 }
 0x325   :  { %v3748_v4 = vpop.eup %3747 }
 0x326   :  { %v3750_v7 = vpop.eup %3749  ;;  %760 = vadd.xlane.f32.xlu1 %v3748_v4  ;;  %v689_v59 = vpop.xlane.xlu1 %688 }
 0x327   :  { %v705_v61 = vsub.f32 %v4527_v23, %v689_v59  ;;  %758 = vadd.xlane.f32.xlu0 %v3750_v7  ;;  %v687_v48 = vpop.xlane.xlu0 %686  ;;  %v791_v25 = vpack.c.bf16 %v3748_v4, %v3750_v7  ;;  %v4625_v4 = vld [vmem:[%s6133_s26 + $0x8] sm:$0xff] }
 0x328   :  { %v704_v15 = vsub.f32 %v4533_v57, %v687_v48  ;;  %v3583_v57 = vld [vmem:[%s6095_s9] ss:$8 sps:$4 sm:$0xff]  }
 0x329   :  { %v736_v12 = vmul.f32 1.442695, %v705_v61  ;;  %3493 = vmatmul.mubr.bf16.vlgmr.msra.gmra.mrb[32].mxu1 %v791_v25  ;;  %1651 = vmatpush1.bf16.msra.mxu0 %v3583_v57 }
 0x32a   :  { %v734_v13 = vmul.f32 1.442695, %v704_v15  ;;  %1652 = vmatprep.subr.bf16.mxu0 %v3588_v62 }
 0x32b   :  { %3755 = vpow2.f32 %v736_v12 }
 0x32c   :  { %3757 = vpow2.f32 %v734_v13 }
 0x32d   :  { %v3752_v18 = vpop.eup %3751  ;;  %1653 = vmatpush1.bf16.msra.mxu0 %v3586_v5 }
 0x32e   :  { %v3754_v49 = vpop.eup %3753  ;;  %764 = vadd.xlane.f32.xlu1 %v3752_v18  ;;  %1654 = vmatprep.subr.bf16.mxu0 %v3591_v11 }
 0x32f   :  { %762 = vadd.xlane.f32.xlu0 %v3754_v49  ;;  %v792_v6 = vpack.c.bf16 %v3752_v18, %v3754_v49 }
 0x331   :  { %3496 = vmatprep.mubr.bf16.mxu1 %v792_v6  ;;  %1655 = vmatpush1.bf16.msra.mxu0 %v3589_v0  ;;  %v4640_v6 = vld [vmem:[%s6133_s26 + $0x10] sm:$0xff] }
 0x332   :  { %1656 = vmatprep.subr.bf16.mxu0 %v3594_v21 }
 0x335   :  { %v3756_v60 = vpop.eup %3755  ;;  %1657 = vmatpush1.bf16.msra.mxu0 %v3592_v22 }
 0x336   :  { %v3758_v56 = vpop.eup %3757  ;;  %768 = vadd.xlane.f32.xlu1 %v3756_v60  ;;  %1658 = vmatprep.subr.bf16.mxu0 %v3597_v17 }
 0x337   :  { %766 = vadd.xlane.f32.xlu0 %v3758_v56  ;;  %v793_v23 = vpack.c.bf16 %v3756_v60, %v3758_v56  ;;  %v4649_v56 = vld [vmem:[%s6133_s26 + $0x18] sm:$0xff] }
 0x339   :  { %3497 = vmatmul.mubr.bf16.gmra.mrb[36].mxu1 %v793_v23  ;;  %1659 = vmatpush1.bf16.msra.mxu0 %v3595_v19  ;;  %v3609_v19 = vld [vmem:[%s6095_s9 + $0x84] ss:$8 sps:$4 sm:$0xff]  }
 0x33a   :  { %1660 = vmatprep.subr.bf16.mxu0 %v3600_v24 }
 0x33d   :  { %1661 = vmatpush1.bf16.msra.mxu0 %v3598_v29 }
 0x33e   :  { %1662 = vmatprep.subr.bf16.mxu0 %v3603_v34 }
 0x341   :  { %1663 = vmatpush1.bf16.msra.mxu0 %v3601_v33  ;;  %v3607_v33 = vld [vmem:[%s6095_s9 + $0x80] ss:$8 sps:$4 sm:$0xff]  }
 0x342   :  { %1664 = vmatprep.subr.bf16.mxu0 %v3606_v27 }
 0x345   :  { %1665 = vmatpush1.bf16.msra.mxu0 %v3604_v52  ;;  %v4679_v52 = vld [vmem:[%s6133_s26 + $0x28] sm:$0xff] }
 0x346   :  { %1666 = vmatprep.subr.bf16.mxu0 %v3609_v19 }
 0x349   :  { %1667 = vmatpush1.bf16.msra.mxu0 %v3607_v33 }
 0x38b   :  { %v741_v35 = vpop.xlane.xlu1 %740 }
 0x38c   :  { %v739_v41 = vpop.xlane.xlu0 %738 }
 0x38d   :  { %3759 = vrcp.f32 %v739_v41 }
 0x38e   :  { %3761 = vrcp.f32 %v741_v35 }
 0x393   :  { %v745_v28 = vpop.xlane.xlu1 %744 }
 0x394   :  { %v743_v14 = vpop.xlane.xlu0 %742 }
 0x395   :  { %3763 = vrcp.f32 %v743_v14 }
 0x396   :  { %3765 = vrcp.f32 %v745_v28  ;;  %v3612_v28 = vld [vmem:[%s6095_s9 + $0x94] ss:$8 sps:$4 sm:$0xff]  }
 0x397   :  { %v3760_v37 = vpop.eup %3759  ;;  %1668 = vmatprep.subr.bf16.mxu0 %v3612_v28 }
 0x398   :  { %v3762_v42 = vpop.eup %3761 }
 0x39b   :  { %v749_v31 = vpop.xlane.xlu1 %748 }
 0x39c   :  { %v747_v58 = vpop.xlane.xlu0 %746 }
 0x39d   :  { %3767 = vrcp.f32 %v747_v58 }
 0x39e   :  { %3769 = vrcp.f32 %v749_v31 }
 0x39f   :  { %v3764_v61 = vpop.eup %3763 }
 0x3a0   :  { %v3766_v15 = vpop.eup %3765 }
 0x3a3   :  { %v753_v49 = vpop.xlane.xlu1 %752 }
 0x3a4   :  { %v751_v12 = vpop.xlane.xlu0 %750 }
 0x3a5   :  { %3771 = vrcp.f32 %v751_v12 }
 0x3a6   :  { %3773 = vrcp.f32 %v753_v49  ;;  %v3616_v49 = vld [vmem:[%s6095_s9 + $0xb0] ss:$8 sps:$4 sm:$0xff]  }
 0x3a7   :  { %v3768_v62 = vpop.eup %3767 }
 0x3a8   :  { %v3770_v22 = vpop.eup %3769 }
 0x3ab   :  { %v757_v27 = vpop.xlane.xlu1 %756 }
 0x3ac   :  { %v755_v24 = vpop.xlane.xlu0 %754 }
 0x3ad   :  { %3775 = vrcp.f32 %v755_v24  ;;  %v4751_v24 = vld [vmem:[%s6133_s26 + $0x48] sm:$0xff] }
 0x3ae   :  { %3777 = vrcp.f32 %v757_v27  ;;  %v3624_v27 = vld [vmem:[%s6095_s9 + $0xd4] ss:$8 sps:$4 sm:$0xff]  }
 0x3af   :  { %v3772_v14 = vpop.eup %3771 }
 0x3dc   :  { %v3470_v32 = vpop.f32.mrb[0].mxu0 }
 0x3dd   :  { %v892_v1 = vpop.f32.mrb[1].mxu0  ;;  %v4631_v48 = vmul.f32 %v3764_v61, %v3470_v32 }
 0x3de   :  { %v4609_v8 = vmul.f32 %v3760_v37, %v892_v1  ;;  %v3471_v63 = vpop.f32.mrb[2].mxu0  ;;  %v3610_v1 = vld [vmem:[%s6095_s9 + $0x90] ss:$8 sps:$4 sm:$0xff]  }
 0x3df   :  { %v895_v40 = vpop.f32.mrb[3].mxu0  ;;  %v4634_v13 = vmul.f32 %v3766_v15, %v3471_v63  ;;  %v1077_v60 = vadd.f32 %v4640_v6, %v4631_v48  ;;  %v3774_v63 = vpop.eup %3773  ;;  %1669 = vmatpush1.bf16.msra.mxu0 %v3610_v1  ;;  %v3618_v15 = vld [vmem:[%s6095_s9 + $0xb4] ss:$8 sps:$4 sm:$0xff]  }
 0x3e0   :  { %v4611_v38 = vmul.f32 %v3762_v42, %v895_v40  ;;  %v1071_v45 = vadd.f32 %v4616_v43, %v4609_v8  ;;  %v1136_v44 = vmul.f32 %v4609_v8, %v4609_v8  ;;  %v759_v42 = vpop.xlane.xlu0 %758 }
 0x3e1   :  { %v1139_v23 = vmul.f32 %v4634_v13, %v4634_v13  ;;  %3779 = vrcp.f32 %v759_v42  ;;  %v3627_v42 = vld [vmem:[%s6095_s9 + $0xe4] ss:$8 sps:$4 sm:$0xff]  }
 0x3e2   :  { %1072 = vadd.xlane.f32.xlu0 %v1071_v45  ;;  %v1074_v7 = vadd.f32 %v4625_v4, %v4611_v38  ;;  %v1137_v59 = vmul.f32 %v4611_v38, %v4611_v38  ;;  %v1152_v25 = vadd.f32 %v1136_v44, %v4065_v2  ;;  %v1138_v2 = vmul.f32 %v4631_v48, %v4631_v48  ;;  %v3615_v45 = vld [vmem:[%s6095_s9 + $0xa4] ss:$8 sps:$4 sm:$0xff]   ;;  %v761_v44 = vpop.xlane.xlu1 %760 }
 0x3e3   :  { %v1161_v21 = vadd.f32 %v1139_v23, %v4098_v10  ;;  %1670 = vmatprep.subr.bf16.mxu0 %v3615_v45  ;;  %3781 = vrcp.f32 %v761_v44 }
 0x3e4   :  { %1075 = vadd.xlane.f32.xlu1 %v1074_v7  ;;  %v1155_v18 = vadd.f32 %v1137_v59, %v4070_v3  ;;  %v1080_v3 = vadd.f32 %v4649_v56, %v4634_v13  ;;  %v1158_v53 = vadd.f32 %v1138_v2, %v4093_v9  ;;  %v4667_v9 = vld [vmem:[%s6133_s26 + $0x20] sm:$0xff]  ;;  %v4715_v59 = vld [vmem:[%s6133_s26 + $0x38] sm:$0xff] }
 0x3e6   :  { %1153 = vadd.xlane.f32.xlu0 %v1152_v25  ;;  %v765_v19 = vpop.xlane.xlu1 %764 }
 0x3e8   :  { %1156 = vadd.xlane.f32.xlu1 %v1155_v18 }
 0x3ea   :  { %1078 = vadd.xlane.f32.xlu0 %v1077_v60  ;;  %v3776_v60 = vpop.eup %3775 }
 0x3ec   :  { %v3474_v57 = vpop.f32.mrb[4].mxu0  ;;  %1081 = vadd.xlane.f32.xlu1 %v1080_v3 }
 0x3ed   :  { %v908_v5 = vpop.f32.mrb[5].mxu0  ;;  %v4688_v32 = vmul.f32 %v3772_v14, %v3474_v57  ;;  %v3622_v14 = vld [vmem:[%s6095_s9 + $0xd0] ss:$8 sps:$4 sm:$0xff]  }
 0x3ee   :  { %v4656_v11 = vmul.f32 %v3768_v62, %v908_v5  ;;  %v3475_v0 = vpop.f32.mrb[6].mxu0  ;;  %1159 = vadd.xlane.f32.xlu0 %v1158_v53  ;;  %v3778_v53 = vpop.eup %3777 }
 0x3ef   :  { %v911_v17 = vpop.f32.mrb[7].mxu0  ;;  %v4694_v40 = vmul.f32 %v3774_v63, %v3475_v0  ;;  %v1142_v7 = vmul.f32 %v4688_v32, %v4688_v32  ;;  %v763_v5 = vpop.xlane.xlu0 %762 }
 0x3f0   :  { %v4662_v29 = vmul.f32 %v3770_v22, %v911_v17  ;;  %1162 = vadd.xlane.f32.xlu1 %v1161_v21  ;;  %v1083_v34 = vadd.f32 %v4667_v9, %v4656_v11  ;;  %v1140_v10 = vmul.f32 %v4656_v11, %v4656_v11  ;;  %v4739_v21 = vld [vmem:[%s6133_s26 + $0x40] sm:$0xff]  ;;  %v3780_v33 = vpop.eup %3779  ;;  %3783 = vrcp.f32 %v763_v5 }
 0x3f1   :  { %v1092_v61 = vadd.f32 %v4715_v59, %v4694_v40  ;;  %v1143_v25 = vmul.f32 %v4694_v40, %v4694_v40  ;;  %v1170_v18 = vadd.f32 %v1142_v7, %v4155_v26  ;;  %v3621_v26 = vld [vmem:[%s6095_s9 + $0xc4] ss:$8 sps:$4 sm:$0xff]   ;;  %v3619_v17 = vld [vmem:[%s6095_s9 + $0xc0] ss:$8 sps:$4 sm:$0xff]   ;;  %v3782_v28 = vpop.eup %3781  ;;  %3785 = vrcp.f32 %v765_v19 }
 0x3f2   :  { %1084 = vadd.xlane.f32.xlu0 %v1083_v34  ;;  %v1086_v41 = vadd.f32 %v4679_v52, %v4662_v29  ;;  %v1141_v35 = vmul.f32 %v4662_v29, %v4662_v29  ;;  %v1164_v37 = vadd.f32 %v1140_v10, %v4121_v16  ;;  %v4703_v16 = vld [vmem:[%s6133_s26 + $0x30] sm:$0xff] }
 0x3f3   :  { %v1089_v31 = vadd.f32 %v4703_v16, %v4688_v32  ;;  %v1173_v57 = vadd.f32 %v1143_v25, %v4166_v30 }
 0x3f4   :  { %1087 = vadd.xlane.f32.xlu1 %v1086_v41  ;;  %v1167_v58 = vadd.f32 %v1141_v35, %v4132_v20  ;;  %v3613_v20 = vld [vmem:[%s6095_s9 + $0xa0] ss:$8 sps:$4 sm:$0xff]  }
 0x3f5   :  { %1671 = vmatpush1.bf16.msra.mxu0 %v3613_v20 }
 0x3f6   :  { %1165 = vadd.xlane.f32.xlu0 %v1164_v37  ;;  %1672 = vmatprep.subr.bf16.mxu0 %v3618_v15  ;;  %v767_v37 = vpop.xlane.xlu0 %766 }
 0x3f7   :  { %3787 = vrcp.f32 %v767_v37 }
 0x3f8   :  { %1168 = vadd.xlane.f32.xlu1 %v1167_v58  ;;  %v769_v58 = vpop.xlane.xlu1 %768 }
 0x3f9   :  { %1673 = vmatpush1.bf16.msra.mxu0 %v3616_v49  ;;  %3789 = vrcp.f32 %v769_v58  ;;  %v3631_v58 = vld [vmem:[%s6097_s11] ss:$8 sps:$4 sm:$0xff]  }
 0x3fa   :  { %1090 = vadd.xlane.f32.xlu0 %v1089_v31  ;;  %1674 = vmatprep.subr.bf16.mxu0 %v3621_v26  ;;  %v4787_v31 = vld [vmem:[%s6133_s26 + $0x58] sm:$0xff] }
 0x3fc   :  { %1093 = vadd.xlane.f32.xlu1 %v1092_v61  ;;  %v3494_v12 = vpop.f32.mrb[32].mxu1  ;;  %v3630_v61 = vld [vmem:[%s6095_s9 + $0xf4] ss:$8 sps:$4 sm:$0xff]  }
 0x3fd   :  { %v1022_v2 = vpop.f32.mrb[33].mxu1  ;;  %1675 = vmatpush1.bf16.msra.mxu0 %v3619_v17  ;;  %v4760_v41 = vmul.f32 %v3780_v33, %v3494_v12  ;;  %v3628_v12 = vld [vmem:[%s6095_s9 + $0xf0] ss:$8 sps:$4 sm:$0xff]  }
 0x3fe   :  { %v4728_v3 = vmul.f32 %v3776_v60, %v1022_v2  ;;  %1171 = vadd.xlane.f32.xlu0 %v1170_v18  ;;  %v3495_v23 = vpop.f32.mrb[34].mxu1  ;;  %1676 = vmatprep.subr.bf16.mxu0 %v3624_v27  ;;  %v3784_v18 = vpop.eup %3783 }
 0x3ff   :  { %v1025_v62 = vpop.f32.mrb[35].mxu1  ;;  %v4766_v1 = vmul.f32 %v3782_v28, %v3495_v23  ;;  %v1146_v44 = vmul.f32 %v4760_v41, %v4760_v41 }
 0x400   :  { %v4734_v0 = vmul.f32 %v3778_v53, %v1025_v62  ;;  %1174 = vadd.xlane.f32.xlu1 %v1173_v57  ;;  %v1095_v22 = vadd.f32 %v4739_v21, %v4728_v3  ;;  %v1144_v30 = vmul.f32 %v4728_v3, %v4728_v3  ;;  %v3786_v57 = vpop.eup %3785 }
 0x401   :  { %1677 = vmatpush1.bf16.msra.mxu0 %v3622_v14  ;;  %v1104_v7 = vadd.f32 %v4787_v31, %v4766_v1  ;;  %v1147_v20 = vmul.f32 %v4766_v1, %v4766_v1  ;;  %v1182_v15 = vadd.f32 %v1146_v44, %v4223_v46  ;;  %v4808_v46 = vld [vmem:[%s6133_s26 + $0x60] sm:$0xff]  ;;  %v3788_v17 = vpop.eup %3787  ;;  %v3636_v44 = vld [vmem:[%s6097_s11 + $0x14] ss:$8 sps:$4 sm:$0xff]  }
 0x402   :  { %1096 = vadd.xlane.f32.xlu0 %v1095_v22  ;;  %v1098_v34 = vadd.f32 %v4751_v24, %v4734_v0  ;;  %v1145_v10 = vmul.f32 %v4734_v0, %v4734_v0  ;;  %v1176_v35 = vadd.f32 %v1144_v30, %v4189_v36  ;;  %v4775_v36 = vld [vmem:[%s6133_s26 + $0x50] sm:$0xff]  ;;  %1678 = vmatprep.subr.bf16.mxu0 %v3627_v42 }
 0x403   :  { %v1101_v45 = vadd.f32 %v4775_v36, %v4760_v41  ;;  %v1185_v23 = vadd.f32 %v1147_v20, %v4228_v47  ;;  %v4817_v47 = vld [vmem:[%s6133_s26 + $0x68] sm:$0xff]  ;;  %v3640_v20 = vld [vmem:[%s6097_s11 + $0x30] ss:$8 sps:$4 sm:$0xff]  }
 0x404   :  { %1099 = vadd.xlane.f32.xlu1 %v1098_v34  ;;  %v1179_v63 = vadd.f32 %v1145_v10, %v4200_v39  ;;  %v3625_v39 = vld [vmem:[%s6095_s9 + $0xe0] ss:$8 sps:$4 sm:$0xff]   ;;  %v3790_v10 = vpop.eup %3789 }
 0x405   :  { %1679 = vmatpush1.bf16.msra.mxu0 %v3625_v39  ;;  %v3637_v39 = vld [vmem:[%s6097_s11 + $0x20] ss:$8 sps:$4 sm:$0xff]  }
 0x406   :  { %1177 = vadd.xlane.f32.xlu0 %v1176_v35  ;;  %1680 = vmatprep.subr.bf16.mxu0 %v3630_v61  ;;  %v4832_v35 = vld [vmem:[%s6133_s26 + $0x70] sm:$0xff]  ;;  %v3645_v61 = vld [vmem:[%s6097_s11 + $0x44] ss:$8 sps:$4 sm:$0xff]  }
 0x408   :  { %1180 = vadd.xlane.f32.xlu1 %v1179_v63 }
 0x409   :  { %1681 = vmatpush1.bf16.msra.mxu0 %v3628_v12  ;;  %v3646_v12 = vld [vmem:[%s6097_s11 + $0x50] ss:$8 sps:$4 sm:$0xff]  }
 0x40a   :  { %1102 = vadd.xlane.f32.xlu0 %v1101_v45  ;;  %v3633_v45 = vld [vmem:[%s6097_s11 + $0x4] ss:$8 sps:$4 sm:$0xff]  }
 0x40b   :  { %2271 = vmatprep.subr.bf16.mxu1 %v3633_v45 }
 0x40c   :  { %1105 = vadd.xlane.f32.xlu1 %v1104_v7  ;;  %v3498_v25 = vpop.f32.mrb[36].mxu1  ;;  %2272 = vmatpush1.bf16.msra.mxu1 %v3631_v58  ;;  %v3642_v7 = vld [vmem:[%s6097_s11 + $0x34] ss:$8 sps:$4 sm:$0xff]  }
 0x40d   :  { %v1038_v49 = vpop.f32.mrb[37].mxu1  ;;  %v4823_v19 = vmul.f32 %v3788_v17, %v3498_v25  ;;  %2273 = vmatprep.subr.bf16.mxu1 %v3636_v44  ;;  %v3643_v25 = vld [vmem:[%s6097_s11 + $0x40] ss:$8 sps:$4 sm:$0xff]  }
 0x40e   :  { %v4800_v60 = vmul.f32 %v3784_v18, %v1038_v49  ;;  %1183 = vadd.xlane.f32.xlu0 %v1182_v15  ;;  %v3499_v2 = vpop.f32.mrb[38].mxu1  ;;  %v3648_v15 = vld [vmem:[%s6097_s11 + $0x54] ss:$8 sps:$4 sm:$0xff]   ;;  %v3651_v18 = vld [vmem:[%s6097_s11 + $0x64] ss:$8 sps:$4 sm:$0xff]  }
 0x40f   :  { %v1041_v53 = vpop.f32.mrb[39].mxu1  ;;  %v4826_v33 = vmul.f32 %v3790_v10, %v3499_v2  ;;  %v1113_v14 = vadd.f32 %v4832_v35, %v4823_v19  ;;  %v1150_v28 = vmul.f32 %v4823_v19, %v4823_v19  ;;  %v3649_v49 = vld [vmem:[%s6097_s11 + $0x60] ss:$8 sps:$4 sm:$0xff]  }
 0x410   :  { %v4803_v62 = vmul.f32 %v3786_v57, %v1041_v53  ;;  %1186 = vadd.xlane.f32.xlu1 %v1185_v23  ;;  %v1107_v26 = vadd.f32 %v4808_v46, %v4800_v60  ;;  %v1148_v5 = vmul.f32 %v4800_v60, %v4800_v60 }
 0x411   :  { %v1151_v37 = vmul.f32 %v4826_v33, %v4826_v33  ;;  %v1194_v63 = vadd.f32 %v1150_v28, %v4267_v54  ;;  %v3634_v54 = vld [vmem:[%s6097_s11 + $0x10] ss:$8 sps:$4 sm:$0xff]  }
 0x412   :  { %1108 = vadd.xlane.f32.xlu0 %v1107_v26  ;;  %v1110_v22 = vadd.f32 %v4817_v47, %v4803_v62  ;;  %v1149_v30 = vmul.f32 %v4803_v62, %v4803_v62  ;;  %v1188_v34 = vadd.f32 %v1148_v5, %v4245_v50  ;;  %v4841_v50 = vld [vmem:[%s6133_s26 + $0x78] sm:$0xff]  ;;  %2274 = vmatpush1.bf16.msra.mxu1 %v3634_v54 }
 0x413   :  { %v1197_v42 = vadd.f32 %v1151_v37, %v4272_v55  ;;  %v3639_v55 = vld [vmem:[%s6097_s11 + $0x24] ss:$8 sps:$4 sm:$0xff]  }
 0x414   :  { %1111 = vadd.xlane.f32.xlu1 %v1110_v22  ;;  %v1191_v27 = vadd.f32 %v1149_v30, %v4250_v51  ;;  %v1116_v51 = vadd.f32 %v4841_v50, %v4826_v33  ;;  %2275 = vmatprep.subr.bf16.mxu1 %v3639_v55 }
 0x416   :  { %1189 = vadd.xlane.f32.xlu0 %v1188_v34  ;;  %2276 = vmatpush1.bf16.msra.mxu1 %v3637_v39 }
 0x417   :  { %2277 = vmatprep.subr.bf16.mxu1 %v3642_v7 }
 0x418   :  { %1192 = vadd.xlane.f32.xlu1 %v1191_v27 }
 0x41a   :  { %1114 = vadd.xlane.f32.xlu0 %v1113_v14  ;;  %2278 = vmatpush1.bf16.msra.mxu1 %v3640_v20  ;;  %v1345_v14 = vlaneseq }
 0x41b   :  { %2279 = vmatprep.subr.bf16.mxu1 %v3645_v61 }
 0x41c   :  { %1117 = vadd.xlane.f32.xlu1 %v1116_v51  ;;  %v1346_v44 = vshrl.u32 %v1345_v14, 7 }
 0x41e   :  { %1195 = vadd.xlane.f32.xlu0 %v1194_v63  ;;  %2280 = vmatpush1.bf16.msra.mxu1 %v3643_v25 }
 0x41f   :  { %2281 = vmatprep.subr.bf16.mxu1 %v3648_v15  ;;  %v4899_v15 = vsub.s32 0, %v1346_v44 }
 0x420   :  { %1198 = vadd.xlane.f32.xlu1 %v1197_v42 }
 0x422   :  { %2282 = vmatpush1.bf16.msra.mxu1 %v3646_v12  ;;  %v4901_v12 = vsub.s32 1, %v1346_v44 }
 0x423   :  { %2283 = vmatprep.subr.bf16.mxu1 %v3651_v18 }
 0x426   :  { %2284 = vmatpush1.bf16.msra.mxu1 %v3649_v49 }
 0x46f   :  { %v1073_v2 = vpop.xlane.xlu0 %1072 }
 0x470   :  { %v1120_v23 = vmul.f32 0.00390625, %v1073_v2 }
 0x471   :  { %v1076_v57 = vpop.xlane.xlu1 %1075 }
 0x472   :  { %v1121_v53 = vmul.f32 0.00390625, %v1076_v57  ;;  %v1216_v5 = vmul.f32 %v1120_v23, %v1120_v23  ;;  %v1069_v57 = vld [vmem:[%s6093_s7] sm:$0x3] }
 0x473   :  { %v1154_v26 = vpop.xlane.xlu0 %1153 }
 0x474   :  { %v1200_v22 = vmul.f32 0.00390625, %v1154_v26  ;;  %v1217_v34 = vmul.f32 %v1121_v53, %v1121_v53 }
 0x475   :  { %v1157_v30 = vpop.xlane.xlu1 %1156 }
 0x476   :  { %v1232_v17 = vsub.f32 %v1200_v22, %v1216_v5  ;;  %v1201_v10 = vmul.f32 0.00390625, %v1157_v30  ;;  %v1070_v22 = vld [vmem:[%s6094_s8] sm:$0x3]  ;;  %v1248_v30 = vsub.f32 %v4616_v43, %v1120_v23  ;;  %v1251_v43 = vsub.f32 %v4611_v38, %v1121_v53 }
 0x477   :  { %v1079_v27 = vpop.xlane.xlu0 %1078 }
 0x478   :  { %v1280_v28 = vadd.f32 1e-05, %v1232_v17  ;;  %v1233_v51 = vsub.f32 %v1201_v10, %v1217_v34  ;;  %v4891_v37 = vmul.f32 0.00390625, %v1079_v27  ;;  %v4915_v10 = vrot.slane %v1069_v57, %v4899_v15 }
 0x479   :  { %v1082_v63 = vpop.xlane.xlu1 %1081  ;;  %v4918_v27 = vrot.slane %v1069_v57, %v4901_v12 }
 0x47a   :  { %3791 = vrsqrt.f32 %v1280_v28  ;;  %v1281_v42 = vadd.f32 1e-05, %v1233_v51  ;;  %v4893_v58 = vmul.f32 0.00390625, %v1082_v63  ;;  %v1218_v54 = vmul.f32 %v4891_v37, %v4891_v37 }
 0x47b   :  { %v1160_v45 = vpop.xlane.xlu0 %1159  ;;  %v1249_v28 = vsub.f32 %v4609_v8, %v1120_v23 }
 0x47c   :  { %3793 = vrsqrt.f32 %v1281_v42  ;;  %v1202_v55 = vmul.f32 0.00390625, %v1160_v45  ;;  %v1219_v20 = vmul.f32 %v4893_v58, %v4893_v58  ;;  %v1250_v42 = vsub.f32 %v4625_v4, %v1121_v53 }
 0x47d   :  { %v1163_v39 = vpop.xlane.xlu1 %1162 }
 0x47e   :  { %v1234_v7 = vsub.f32 %v1202_v55, %v1218_v54  ;;  %v1203_v61 = vmul.f32 0.00390625, %v1163_v39  ;;  %v4926_v54 = vrot.slane %v1070_v22, %v4899_v15 }
 0x47f   :  { %v1085_v25 = vpop.xlane.xlu0 %1084 }
 0x480   :  { %v1282_v18 = vadd.f32 1e-05, %v1234_v7  ;;  %v1235_v49 = vsub.f32 %v1203_v61, %v1219_v20  ;;  %v4903_v2 = vmul.f32 0.00390625, %v1085_v25 }
 0x481   :  { %v1088_v26 = vpop.xlane.xlu1 %1087 }
 0x482   :  { %3795 = vrsqrt.f32 %v1282_v18  ;;  %v1283_v5 = vadd.f32 1e-05, %v1235_v49  ;;  %v4912_v17 = vmul.f32 0.00390625, %v1088_v26  ;;  %v1220_v51 = vmul.f32 %v4903_v2, %v4903_v2 }
 0x483   :  { %v1166_v34 = vpop.xlane.xlu0 %1165  ;;  %v4931_v18 = vrot.slane %v1070_v22, %v4901_v12  ;;  %v1253_v22 = vsub.f32 %v4631_v48, %v4891_v37 }
 0x484   :  { %v3792_v14 = vpop.eup %3791  ;;  %3797 = vrsqrt.f32 %v1283_v5  ;;  %v1204_v63 = vmul.f32 0.00390625, %v1166_v34  ;;  %v1221_v7 = vmul.f32 %v4912_v17, %v4912_v17  ;;  %v1252_v34 = vsub.f32 %v4640_v6, %v4891_v37 }
 0x485   :  { %v1312_v45 = vmul.f32 %v3792_v14, %v1248_v30  ;;  %v1169_v44 = vpop.xlane.xlu1 %1168  ;;  %v1313_v23 = vmul.f32 %v3792_v14, %v1249_v28 }
 0x486   :  { %v3794_v55 = vpop.eup %3793  ;;  %v1236_v39 = vsub.f32 %v1204_v63, %v1220_v51  ;;  %v1205_v8 = vmul.f32 0.00390625, %v1169_v44  ;;  %v1254_v44 = vsub.f32 %v4649_v56, %v4893_v58 }
 0x487   :  { %v1314_v20 = vmul.f32 %v3794_v55, %v1250_v42  ;;  %v1091_v61 = vpop.xlane.xlu0 %1090  ;;  %v1315_v25 = vmul.f32 %v3794_v55, %v1251_v43  ;;  %v1355_v38 = vmul.f32 %v4915_v10, %v1312_v45  ;;  %v1356_v57 = vmul.f32 %v4918_v27, %v1313_v23 }
 0x488   :  { %v1284_v4 = vadd.f32 1e-05, %v1236_v39  ;;  %v1237_v53 = vsub.f32 %v1205_v8, %v1221_v7  ;;  %v4934_v49 = vmul.f32 0.00390625, %v1091_v61  ;;  %v1255_v55 = vsub.f32 %v4634_v13, %v4893_v58 }
 0x489   :  { %v1094_v26 = vpop.xlane.xlu1 %1093  ;;  %v1358_v5 = vmul.f32 %v4918_v27, %v1315_v25  ;;  %v1357_v30 = vmul.f32 %v4915_v10, %v1314_v20  ;;  %v4946_v63 = vadd.f32 %v4931_v18, %v1356_v57  ;;  %v4952_v43 = vadd.f32 %v4926_v54, %v1355_v38 }
 0x48a   :  { %3799 = vrsqrt.f32 %v1284_v4  ;;  %v1285_v14 = vadd.f32 1e-05, %v1237_v53  ;;  %v4943_v28 = vmul.f32 0.00390625, %v1094_v26  ;;  %v1222_v6 = vmul.f32 %v4934_v49, %v4934_v49 }
 0x48b   :  { %v1172_v51 = vpop.xlane.xlu0 %1171  ;;  %v4949_v42 = vadd.f32 %v4931_v18, %v1358_v5  ;;  %v4957_v37 = vadd.f32 %v4926_v54, %v1357_v30 }
 0x48c   :  { %v3796_v45 = vpop.eup %3795  ;;  %3801 = vrsqrt.f32 %v1285_v14  ;;  %v1206_v48 = vmul.f32 0.00390625, %v1172_v51  ;;  %v1223_v39 = vmul.f32 %v4943_v28, %v4943_v28 }
 0x48d   :  { %v1175_v7 = vpop.xlane.xlu1 %1174  ;;  %v1431_v8 = vpack.c.bf16 %v4949_v42, %v4946_v63  ;;  %v1430_v25 = vpack.c.bf16 %v4957_v37, %v4952_v43  ;;  %v1317_v38 = vmul.f32 %v3796_v45, %v1253_v22  ;;  %v1316_v53 = vmul.f32 %v3796_v45, %v1252_v34 }
 0x48e   :  { %v3798_v23 = vpop.eup %3797  ;;  %v1238_v20 = vsub.f32 %v1206_v48, %v1222_v6  ;;  %v1207_v61 = vmul.f32 0.00390625, %v1175_v7  ;;  %v1256_v22 = vsub.f32 %v4667_v9, %v4903_v2  ;;  %v1257_v34 = vsub.f32 %v4656_v11, %v4903_v2 }
 0x48f   :  { %1682 = vmatprep.mubr.bf16.mxu0 %v1431_v8  ;;  %v1097_v4 = vpop.xlane.xlu0 %1096  ;;  %v1319_v56 = vmul.f32 %v3798_v23, %v1255_v55  ;;  %v1318_v57 = vmul.f32 %v3798_v23, %v1254_v44  ;;  %v1360_v5 = vmul.f32 %v4918_v27, %v1317_v38  ;;  %v1359_v51 = vmul.f32 %v4915_v10, %v1316_v53 }
 0x490   :  { %v1286_v13 = vadd.f32 1e-05, %v1238_v20  ;;  %v1239_v58 = vsub.f32 %v1207_v61, %v1223_v39  ;;  %v4969_v26 = vmul.f32 0.00390625, %v1097_v4  ;;  %1683 = vmatmul.mubr.bf16.vlgmr.msra.gmra.mrb[8].mxu0 %v1430_v25  ;;  %v1258_v2 = vsub.f32 %v4679_v52, %v4912_v17 }
 0x491   :  { %v1100_v30 = vpop.xlane.xlu1 %1099  ;;  %v1362_v14 = vmul.f32 %v4918_v27, %v1319_v56  ;;  %v1361_v6 = vmul.f32 %v4915_v10, %v1318_v57  ;;  %v4984_v39 = vadd.f32 %v4931_v18, %v1360_v5  ;;  %v4990_v23 = vadd.f32 %v4926_v54, %v1359_v51 }
 0x492   :  { %3803 = vrsqrt.f32 %v1286_v13  ;;  %v1287_v45 = vadd.f32 1e-05, %v1239_v58  ;;  %v4979_v48 = vmul.f32 0.00390625, %v1100_v30  ;;  %v1224_v44 = vmul.f32 %v4969_v26, %v4969_v26 }
 0x493   :  { %v1178_v55 = vpop.xlane.xlu0 %1177  ;;  %v4987_v7 = vadd.f32 %v4931_v18, %v1362_v14  ;;  %v4993_v11 = vadd.f32 %v4926_v54, %v1361_v6  ;;  %v1259_v20 = vsub.f32 %v4662_v29, %v4912_v17 }
 0x494   :  { %v3800_v8 = vpop.eup %3799  ;;  %3805 = vrsqrt.f32 %v1287_v45  ;;  %v1208_v9 = vmul.f32 0.00390625, %v1178_v55  ;;  %v1225_v61 = vmul.f32 %v4979_v48, %v4979_v48 }
 0x495   :  { %6135 = vst [vmem:[#allocation5_spill] sm:$0xff] %v4987_v7  ;;  %v1181_v25 = vpop.xlane.xlu1 %1180  ;;  %v1433_v38 = vpack.c.bf16 %v4987_v7, %v4984_v39  ;;  %v1432_v57 = vpack.c.bf16 %v4993_v11, %v4990_v23  ;;  %v1321_v13 = vmul.f32 %v3800_v8, %v1257_v34  ;;  %v1320_v5 = vmul.f32 %v3800_v8, %v1256_v22 }
 0x496   :  { %v3802_v4 = vpop.eup %3801  ;;  %v1240_v56 = vsub.f32 %v1208_v9, %v1224_v44  ;;  %v1209_v53 = vmul.f32 0.00390625, %v1181_v25  ;;  %v1260_v34 = vsub.f32 %v4703_v16, %v4934_v49  ;;  %v1261_v22 = vsub.f32 %v4688_v32, %v4934_v49 }
 0x497   :  { %1692 = vmatprep.mubr.bf16.mxu0 %v1433_v38  ;;  %v1103_v58 = vpop.xlane.xlu0 %1102  ;;  %v1323_v52 = vmul.f32 %v3802_v4, %v1259_v20  ;;  %v1322_v30 = vmul.f32 %v3802_v4, %v1258_v2  ;;  %v1364_v51 = vmul.f32 %v4918_v27, %v1321_v13  ;;  %v1363_v44 = vmul.f32 %v4915_v10, %v1320_v5 }
 0x498   :  { %v1288_v29 = vadd.f32 1e-05, %v1240_v56  ;;  %v1241_v17 = vsub.f32 %v1209_v53, %v1225_v61  ;;  %v5005_v14 = vmul.f32 0.00390625, %v1103_v58  ;;  %1693 = vmatmul.mubr.bf16.gmra.mrb[12].mxu0 %v1432_v57  ;;  %v1262_v49 = vsub.f32 %v4715_v59, %v4943_v28 }
 0x499   :  { %v1106_v6 = vpop.xlane.xlu1 %1105  ;;  %v1366_v45 = vmul.f32 %v4918_v27, %v1323_v52  ;;  %v1365_v55 = vmul.f32 %v4915_v10, %v1322_v30  ;;  %v5020_v61 = vadd.f32 %v4931_v18, %v1364_v51  ;;  %v5026_v4 = vadd.f32 %v4926_v54, %v1363_v44 }
 0x49a   :  { %3807 = vrsqrt.f32 %v1288_v29  ;;  %v1289_v8 = vadd.f32 1e-05, %v1241_v17  ;;  %v5015_v9 = vmul.f32 0.00390625, %v1106_v6  ;;  %v1226_v2 = vmul.f32 %v5005_v14, %v5005_v14 }
 0x49b   :  { %v1184_v20 = vpop.xlane.xlu0 %1183  ;;  %6136 = vst [vmem:[#allocation6_spill] sm:$0xff] %v5020_v61  ;;  %v5023_v25 = vadd.f32 %v4931_v18, %v1366_v45  ;;  %6138 = vst [vmem:[#allocation8_spill] sm:$0xff] %v5026_v4  ;;  %v5029_v32 = vadd.f32 %v4926_v54, %v1365_v55  ;;  %v1263_v56 = vsub.f32 %v4694_v40, %v4943_v28 }
 0x49c   :  { %v3804_v38 = vpop.eup %3803  ;;  %3809 = vrsqrt.f32 %v1289_v8  ;;  %v1210_v16 = vmul.f32 0.00390625, %v1184_v20  ;;  %v1227_v53 = vmul.f32 %v5015_v9, %v5015_v9 }
 0x49d   :  { %6137 = vst [vmem:[#allocation7_spill] sm:$0xff] %v5023_v25  ;;  %6139 = vst [vmem:[#allocation9_spill] sm:$0xff] %v5029_v32  ;;  %v1187_v57 = vpop.xlane.xlu1 %1186  ;;  %v1435_v13 = vpack.c.bf16 %v5023_v25, %v5020_v61  ;;  %v1434_v30 = vpack.c.bf16 %v5029_v32, %v5026_v4  ;;  %v1325_v29 = vmul.f32 %v3804_v38, %v1261_v22 }
 0x49e   :  { %v3806_v58 = vpop.eup %3805  ;;  %v1242_v52 = vsub.f32 %v1210_v16, %v1226_v2  ;;  %v1211_v5 = vmul.f32 0.00390625, %v1187_v57  ;;  %v1324_v51 = vmul.f32 %v3804_v38, %v1260_v34  ;;  %v1264_v22 = vsub.f32 %v4739_v21, %v4969_v26 }
 0x49f   :  { %1702 = vmatprep.mubr.bf16.mxu0 %v1435_v13  ;;  %v1109_v17 = vpop.xlane.xlu0 %1108  ;;  %v1327_v59 = vmul.f32 %v3806_v58, %v1263_v56  ;;  %v1326_v6 = vmul.f32 %v3806_v58, %v1262_v49  ;;  %v1368_v44 = vmul.f32 %v4918_v27, %v1325_v29  ;;  %v1265_v34 = vsub.f32 %v4728_v3, %v4969_v26 }
 0x4a0   :  { %v1290_v40 = vadd.f32 1e-05, %v1242_v52  ;;  %v1243_v28 = vsub.f32 %v1211_v5, %v1227_v53  ;;  %v5041_v45 = vmul.f32 0.00390625, %v1109_v17  ;;  %1703 = vmatmul.mubr.bf16.gmra.mrb[16].mxu0 %v1434_v30  ;;  %v1367_v2 = vmul.f32 %v4915_v10, %v1324_v51 }
 0x4a1   :  { %v1112_v55 = vpop.xlane.xlu1 %1111  ;;  %v1370_v8 = vmul.f32 %v4918_v27, %v1327_v59  ;;  %v1369_v20 = vmul.f32 %v4915_v10, %v1326_v6  ;;  %v5056_v53 = vadd.f32 %v4931_v18, %v1368_v44  ;;  %v1266_v26 = vsub.f32 %v4751_v24, %v4979_v48 }
 0x4a2   :  { %3811 = vrsqrt.f32 %v1290_v40  ;;  %v1291_v38 = vadd.f32 1e-05, %v1243_v28  ;;  %v5051_v16 = vmul.f32 0.00390625, %v1112_v55  ;;  %v1228_v49 = vmul.f32 %v5041_v45, %v5041_v45 }
 0x4a3   :  { %v1190_v56 = vpop.xlane.xlu0 %1189  ;;  %6140 = vst [vmem:[#allocation10_spill] sm:$0xff] %v5056_v53  ;;  %v5059_v57 = vadd.f32 %v4931_v18, %v1370_v8  ;;  %v5062_v58 = vadd.f32 %v4926_v54, %v1367_v2  ;;  %v5065_v3 = vadd.f32 %v4926_v54, %v1369_v20  ;;  %v1267_v52 = vsub.f32 %v4734_v0, %v4979_v48 }
 0x4a4   :  { %v3808_v13 = vpop.eup %3807  ;;  %3813 = vrsqrt.f32 %v1291_v38  ;;  %v1212_v21 = vmul.f32 0.00390625, %v1190_v56  ;;  %v1229_v5 = vmul.f32 %v5051_v16, %v5051_v16 }
 0x4a5   :  { %6141 = vst [vmem:[#allocation11_spill] sm:$0xff] %v5059_v57  ;;  %6142 = vst [vmem:[#allocation12_spill] sm:$0xff] %v5062_v58  ;;  %v1193_v30 = vpop.xlane.xlu1 %1192  ;;  %v1437_v29 = vpack.c.bf16 %v5059_v57, %v5056_v53  ;;  %v1436_v6 = vpack.c.bf16 %v5065_v3, %v5062_v58  ;;  %v1329_v40 = vmul.f32 %v3808_v13, %v1265_v34 }
 0x4a6   :  { %6143 = vst [vmem:[#allocation13_spill] sm:$0xff] %v5065_v3  ;;  %v3810_v17 = vpop.eup %3809  ;;  %v1244_v59 = vsub.f32 %v1212_v21, %v1228_v49  ;;  %v1213_v51 = vmul.f32 0.00390625, %v1193_v30  ;;  %v1328_v44 = vmul.f32 %v3808_v13, %v1264_v22  ;;  %v1268_v34 = vsub.f32 %v4775_v36, %v5005_v14 }
 0x4a7   :  { %1712 = vmatprep.mubr.bf16.mxu0 %v1437_v29  ;;  %v1115_v28 = vpop.xlane.xlu0 %1114  ;;  %v1331_v24 = vmul.f32 %v3810_v17, %v1267_v52  ;;  %v1330_v55 = vmul.f32 %v3810_v17, %v1266_v26  ;;  %v1372_v2 = vmul.f32 %v4918_v27, %v1329_v40  ;;  %v1269_v22 = vsub.f32 %v4760_v41, %v5005_v14 }
 0x4a8   :  { %v1292_v0 = vadd.f32 1e-05, %v1244_v59  ;;  %v1245_v48 = vsub.f32 %v1213_v51, %v1229_v5  ;;  %v5077_v8 = vmul.f32 0.00390625, %v1115_v28  ;;  %1713 = vmatmul.mubr.bf16.gmra.mrb[20].mxu0 %v1436_v6  ;;  %v1371_v49 = vmul.f32 %v4915_v10, %v1328_v44 }
 0x4a9   :  { %v1118_v20 = vpop.xlane.xlu1 %1117  ;;  %v1374_v38 = vmul.f32 %v4918_v27, %v1331_v24  ;;  %v1373_v56 = vmul.f32 %v4915_v10, %v1330_v55  ;;  %v5092_v5 = vadd.f32 %v4931_v18, %v1372_v2  ;;  %v1270_v14 = vsub.f32 %v4787_v31, %v5015_v9 }
 0x4aa   :  { %3815 = vrsqrt.f32 %v1292_v0  ;;  %v1293_v13 = vadd.f32 1e-05, %v1245_v48  ;;  %v5087_v21 = vmul.f32 0.00390625, %v1118_v20  ;;  %v1230_v26 = vmul.f32 %v5077_v8, %v5077_v8 }
 0x4ab   :  { %v1196_v52 = vpop.xlane.xlu0 %1195  ;;  %6144 = vst [vmem:[#allocation14_spill] sm:$0xff] %v5092_v5  ;;  %v5095_v30 = vadd.f32 %v4931_v18, %v1374_v38  ;;  %v5098_v17 = vadd.f32 %v4926_v54, %v1371_v49  ;;  %v5101_v41 = vadd.f32 %v4926_v54, %v1373_v56  ;;  %v1271_v59 = vsub.f32 %v4766_v1, %v5015_v9 }
 0x4ac   :  { %v3812_v29 = vpop.eup %3811  ;;  %3817 = vrsqrt.f32 %v1293_v13  ;;  %v1214_v36 = vmul.f32 0.00390625, %v1196_v52  ;;  %v1231_v51 = vmul.f32 %v5087_v21, %v5087_v21  ;;  %v1272_v13 = vsub.f32 %v4808_v46, %v5041_v45 }
 0x4ad   :  { %6145 = vst [vmem:[#allocation15_spill] sm:$0xff] %v5095_v30  ;;  %6146 = vst [vmem:[#allocation16_spill] sm:$0xff] %v5098_v17  ;;  %v1199_v6 = vpop.xlane.xlu1 %1198  ;;  %v1439_v40 = vpack.c.bf16 %v5095_v30, %v5092_v5  ;;  %v1438_v55 = vpack.c.bf16 %v5101_v41, %v5098_v17  ;;  %v1333_v0 = vmul.f32 %v3812_v29, %v1269_v22 }
 0x4ae   :  { %6147 = vst [vmem:[#allocation17_spill] sm:$0xff] %v5101_v41  ;;  %v3814_v28 = vpop.eup %3813  ;;  %v1246_v24 = vsub.f32 %v1214_v36, %v1230_v26  ;;  %v1215_v44 = vmul.f32 0.00390625, %v1199_v6  ;;  %v1332_v31 = vmul.f32 %v3812_v29, %v1268_v34  ;;  %v1273_v22 = vsub.f32 %v4800_v60, %v5041_v45 }
 0x4af   :  { %1722 = vmatprep.mubr.bf16.mxu0 %v1439_v40  ;;  %v1335_v48 = vmul.f32 %v3814_v28, %v1271_v59  ;;  %v1334_v2 = vmul.f32 %v3814_v28, %v1270_v14  ;;  %v1376_v9 = vmul.f32 %v4918_v27, %v1333_v0  ;;  %v1274_v46 = vsub.f32 %v4817_v47, %v5051_v16 }
 0x4b0   :  { %v1294_v20 = vadd.f32 1e-05, %v1246_v24  ;;  %v1247_v1 = vsub.f32 %v1215_v44, %v1231_v51  ;;  %1723 = vmatmul.mubr.bf16.gmra.mrb[24].mxu0 %v1438_v55  ;;  %v1375_v49 = vmul.f32 %v4915_v10, %v1332_v31  ;;  %v1275_v60 = vsub.f32 %v4803_v62, %v5051_v16 }
 0x4b1   :  { %v1378_v38 = vmul.f32 %v4918_v27, %v1335_v48  ;;  %v1377_v56 = vmul.f32 %v4915_v10, %v1334_v2  ;;  %v5122_v26 = vadd.f32 %v4931_v18, %v1376_v9  ;;  %v1276_v55 = vsub.f32 %v4832_v35, %v5077_v8 }
 0x4b2   :  { %3819 = vrsqrt.f32 %v1294_v20  ;;  %v1295_v34 = vadd.f32 1e-05, %v1247_v1  ;;  %v5128_v29 = vadd.f32 %v4926_v54, %v1375_v49  ;;  %v1277_v0 = vsub.f32 %v4823_v19, %v5077_v8 }
 0x4b3   :  { %6148 = vst [vmem:[#allocation18_spill] sm:$0xff] %v5122_v26  ;;  %v5125_v52 = vadd.f32 %v4931_v18, %v1378_v38  ;;  %v5131_v36 = vadd.f32 %v4926_v54, %v1377_v56  ;;  %v1278_v9 = vsub.f32 %v4841_v50, %v5087_v21  ;;  %v1279_v35 = vsub.f32 %v4826_v33, %v5087_v21 }
 0x4b4   :  { %6150 = vst [vmem:[#allocation20_spill] sm:$0xff] %v5128_v29  ;;  %v3816_v14 = vpop.eup %3815  ;;  %3821 = vrsqrt.f32 %v1295_v34 }
 0x4b5   :  { %6149 = vst [vmem:[#allocation19_spill] sm:$0xff] %v5125_v52  ;;  %6151 = vst [vmem:[#allocation21_spill] sm:$0xff] %v5131_v36  ;;  %v1441_v45 = vpack.c.bf16 %v5125_v52, %v5122_v26  ;;  %v1440_v59 = vpack.c.bf16 %v5131_v36, %v5128_v29  ;;  %v1337_v51 = vmul.f32 %v3816_v14, %v1273_v22 }
 0x4b6   :  { %v1336_v6 = vmul.f32 %v3816_v14, %v1272_v13  ;;  %v3818_v40 = vpop.eup %3817 }
 0x4b7   :  { %1732 = vmatprep.mubr.bf16.mxu0 %v1441_v45  ;;  %v1339_v28 = vmul.f32 %v3818_v40, %v1275_v60  ;;  %v1380_v24 = vmul.f32 %v4918_v27, %v1337_v51  ;;  %v1338_v44 = vmul.f32 %v3818_v40, %v1274_v46  ;;  %v3655_v51 = vld [vmem:[%s6097_s11 + $0x80] ss:$8 sps:$4 sm:$0xff]   ;;  %v3658_v40 = vld [vmem:[%s6097_s11 + $0x90] ss:$8 sps:$4 sm:$0xff]  }
 0x4b8   :  { %v1379_v47 = vmul.f32 %v4915_v10, %v1336_v6  ;;  %1733 = vmatmul.mubr.bf16.gmra.mrb[28].mxu0 %v1440_v59  ;;  %v3660_v6 = vld [vmem:[%s6097_s11 + $0x94] ss:$8 sps:$4 sm:$0xff]  }
 0x4b9   :  { %v1382_v62 = vmul.f32 %v4918_v27, %v1339_v28  ;;  %v1381_v16 = vmul.f32 %v4915_v10, %v1338_v44  ;;  %v5150_v48 = vadd.f32 %v4931_v18, %v1380_v24  ;;  %v3663_v28 = vld [vmem:[%s6097_s11 + $0xa4] ss:$8 sps:$4 sm:$0xff]   ;;  %v3661_v24 = vld [vmem:[%s6097_s11 + $0xa0] ss:$8 sps:$4 sm:$0xff]   ;;  %v3666_v44 = vld [vmem:[%s6097_s11 + $0xb4] ss:$8 sps:$4 sm:$0xff]  }
 0x4ba   :  { %v5156_v2 = vadd.f32 %v4926_v54, %v1379_v47  ;;  %v3664_v47 = vld [vmem:[%s6097_s11 + $0xb0] ss:$8 sps:$4 sm:$0xff]  }
 0x4bb   :  { %6152 = vst [vmem:[#allocation22_spill] sm:$0xff] %v5150_v48  ;;  %v5153_v31 = vadd.f32 %v4931_v18, %v1382_v62  ;;  %v5159_v20 = vadd.f32 %v4926_v54, %v1381_v16  ;;  %v3669_v62 = vld [vmem:[%s6097_s11 + $0xc4] ss:$8 sps:$4 sm:$0xff]   ;;  %v3667_v16 = vld [vmem:[%s6097_s11 + $0xc0] ss:$8 sps:$4 sm:$0xff]  }
 0x4bc   :  { %6154 = vst [vmem:[#allocation24_spill] sm:$0xff] %v5156_v2  ;;  %v3820_v1 = vpop.eup %3819 }
 0x4bd   :  { %6153 = vst [vmem:[#allocation23_spill] sm:$0xff] %v5153_v31  ;;  %6155 = vst [vmem:[#allocation25_spill] sm:$0xff] %v5159_v20  ;;  %v1443_v19 = vpack.c.bf16 %v5153_v31, %v5150_v48  ;;  %v1442_v8 = vpack.c.bf16 %v5159_v20, %v5156_v2  ;;  %v1341_v38 = vmul.f32 %v3820_v1, %v1277_v0  ;;  %v3670_v0 = vld [vmem:[%s6097_s11 + $0xd0] ss:$8 sps:$4 sm:$0xff]  }
 0x4be   :  { %v1340_v49 = vmul.f32 %v3820_v1, %v1276_v55  ;;  %v3822_v56 = vpop.eup %3821  ;;  %v3672_v55 = vld [vmem:[%s6097_s11 + $0xd4] ss:$8 sps:$4 sm:$0xff]   ;;  %v3675_v1 = vld [vmem:[%s6097_s11 + $0xe4] ss:$8 sps:$4 sm:$0xff]  }
 0x4bf   :  { %1742 = vmatprep.mubr.bf16.mxu0 %v1443_v19  ;;  %v1343_v13 = vmul.f32 %v3822_v56, %v1279_v35  ;;  %v1384_v22 = vmul.f32 %v4918_v27, %v1341_v38  ;;  %v1342_v34 = vmul.f32 %v3822_v56, %v1278_v9  ;;  %v3673_v9 = vld [vmem:[%s6097_s11 + $0xe0] ss:$8 sps:$4 sm:$0xff]   ;;  %v3678_v35 = vld [vmem:[%s6097_s11 + $0xf4] ss:$8 sps:$4 sm:$0xff]   ;;  %v3676_v19 = vld [vmem:[%s6097_s11 + $0xf0] ss:$8 sps:$4 sm:$0xff]  }
 0x4c0   :  { %v1383_v14 = vmul.f32 %v4915_v10, %v1340_v49  ;;  %1743 = vmatmul.mubr.bf16.gmra.mrb[32].mxu0 %v1442_v8  ;;  %v1478_v8 = vld [vmem:[%s6096_s10] sm:$0x3] }
 0x4c1   :  { %v1386_v50 = vmul.f32 %v4918_v27, %v1343_v13  ;;  %v1385_v33 = vmul.f32 %v4915_v10, %v1342_v34  ;;  %v5174_v21 = vadd.f32 %v4931_v18, %v1384_v22  ;;  %v3654_v10 = vld [vmem:[%s6097_s11 + $0x74] ss:$8 sps:$4 sm:$0xff]   ;;  %v5247_v38 = vrot.slane %v1478_v8, %v4899_v15 }
 0x4c2   :  { %v5180_v60 = vadd.f32 %v4926_v54, %v1383_v14  ;;  %2285 = vmatprep.subr.bf16.mxu1 %v3654_v10  ;;  %v5250_v49 = vrot.slane %v1478_v8, %v4901_v12 }
 0x4c3   :  { %6156 = vst [vmem:[#allocation26_spill] sm:$0xff] %v5174_v21  ;;  %v5177_v46 = vadd.f32 %v4931_v18, %v1386_v50  ;;  %v5183_v45 = vadd.f32 %v4926_v54, %v1385_v33  ;;  %v3652_v18 = vld [vmem:[%s6097_s11 + $0x70] ss:$8 sps:$4 sm:$0xff]   ;;  %v3657_v54 = vld [vmem:[%s6097_s11 + $0x84] ss:$8 sps:$4 sm:$0xff]  }
 0x4c4   :  { %6158 = vst [vmem:[#allocation28_spill] sm:$0xff] %v5180_v60  ;;  %2286 = vmatpush1.bf16.msra.mxu1 %v3652_v18 }
 0x4c5   :  { %6157 = vst [vmem:[#allocation27_spill] sm:$0xff] %v5177_v46  ;;  %6159 = vst [vmem:[#allocation29_spill] sm:$0xff] %v5183_v45  ;;  %v1445_v59 = vpack.c.bf16 %v5177_v46, %v5174_v21  ;;  %v1444_v27 = vpack.c.bf16 %v5183_v45, %v5180_v60  ;;  %2287 = vmatprep.subr.bf16.mxu1 %v3657_v54 }
 0x4c7   :  { %1752 = vmatprep.mubr.bf16.mxu0 %v1445_v59 }
 0x4c8   :  { %1753 = vmatmul.mubr.bf16.gmra.mrb[36].mxu0 %v1444_v27  ;;  %2288 = vmatpush1.bf16.msra.mxu1 %v3655_v51 }
 0x4c9   :  { %2289 = vmatprep.subr.bf16.mxu1 %v3660_v6 }
 0x4cc   :  { %2290 = vmatpush1.bf16.msra.mxu1 %v3658_v40 }
 0x4cd   :  { %2291 = vmatprep.subr.bf16.mxu1 %v3663_v28 }
 0x4d0   :  { %2292 = vmatpush1.bf16.msra.mxu1 %v3661_v24 }
 0x4d1   :  { %2293 = vmatprep.subr.bf16.mxu1 %v3666_v44 }
 0x4d4   :  { %2294 = vmatpush1.bf16.msra.mxu1 %v3664_v47 }
 0x4d5   :  { %2295 = vmatprep.subr.bf16.mxu1 %v3669_v62 }
 0x4d8   :  { %2296 = vmatpush1.bf16.msra.mxu1 %v3667_v16 }
 0x4d9   :  { %2297 = vmatprep.subr.bf16.mxu1 %v3672_v55 }
 0x4dc   :  { %2298 = vmatpush1.bf16.msra.mxu1 %v3670_v0 }
 0x4dd   :  { %2299 = vmatprep.subr.bf16.mxu1 %v3675_v1 }
 0x4e0   :  { %2300 = vmatpush1.bf16.msra.mxu1 %v3673_v9 }
 0x4e1   :  { %2301 = vmatprep.subr.bf16.mxu1 %v3678_v35 }
 0x4e4   :  { %2302 = vmatpush1.bf16.msra.mxu1 %v3676_v19 }
 0x563   :  { %v1684_v56 = vpop.f32.mrb[8].mxu0 }
 0x564   :  { %v5253_v13 = vadd.f32 %v1684_v56, %v5247_v38  ;;  %v1686_v22 = vpop.f32.mrb[9].mxu0 }
 0x565   :  { %v5256_v34 = vadd.f32 %v1686_v22, %v5250_v49  ;;  %v1688_v14 = vpop.f32.mrb[10].mxu0 }
 0x566   :  { %v1763_v50 = vmul.f32 %v5253_v13, %v5253_v13  ;;  %v5261_v33 = vadd.f32 %v1688_v14, %v5247_v38  ;;  %v1690_v59 = vpop.f32.mrb[11].mxu0 }
 0x567   :  { %v1764_v27 = vmul.f32 %v5256_v34, %v5256_v34  ;;  %v5266_v10 = vadd.f32 %v1690_v59, %v5250_v49 }
 0x568   :  { %v1795_v18 = vmul.f32 %v1763_v50, %v5253_v13  ;;  %v1765_v54 = vmul.f32 %v5261_v33, %v5261_v33 }
 0x569   :  { %v1796_v51 = vmul.f32 %v1764_v27, %v5256_v34  ;;  %v1766_v6 = vmul.f32 %v5266_v10, %v5266_v10 }
 0x56a   :  { %v1827_v40 = vmul.f32 0.044715, %v1795_v18  ;;  %v1797_v28 = vmul.f32 %v1765_v54, %v5261_v33 }
 0x56b   :  { %v1828_v24 = vmul.f32 0.044715, %v1796_v51  ;;  %v1798_v44 = vmul.f32 %v1766_v6, %v5266_v10  ;;  %v1694_v47 = vpop.f32.mrb[12].mxu0 }
 0x56c   :  { %v1859_v62 = vadd.f32 %v1827_v40, %v5253_v13  ;;  %v1829_v16 = vmul.f32 0.044715, %v1797_v28  ;;  %v5278_v55 = vadd.f32 %v1694_v47, %v5247_v38  ;;  %v1696_v0 = vpop.f32.mrb[13].mxu0 }
 0x56d   :  { %v1860_v1 = vadd.f32 %v1828_v24, %v5256_v34  ;;  %v1830_v9 = vmul.f32 0.044715, %v1798_v44  ;;  %v5282_v35 = vadd.f32 %v1696_v0, %v5250_v49  ;;  %v1698_v19 = vpop.f32.mrb[14].mxu0 }
 0x56e   :  { %v1891_v8 = vmul.f32 0.7978846, %v1859_v62  ;;  %v1861_v56 = vadd.f32 %v1829_v16, %v5261_v33  ;;  %v1767_v22 = vmul.f32 %v5278_v55, %v5278_v55  ;;  %v5288_v14 = vadd.f32 %v1698_v19, %v5247_v38  ;;  %v1700_v50 = vpop.f32.mrb[15].mxu0 }
 0x56f   :  { %v1892_v59 = vmul.f32 0.7978846, %v1860_v1  ;;  %v1862_v27 = vadd.f32 %v1830_v9, %v5266_v10  ;;  %v1768_v18 = vmul.f32 %v5282_v35, %v5282_v35  ;;  %v5294_v54 = vadd.f32 %v1700_v50, %v5250_v49 }
 0x570   :  { %3823 = vtanh.f32 %v1891_v8  ;;  %v1893_v51 = vmul.f32 0.7978846, %v1861_v56  ;;  %v1799_v6 = vmul.f32 %v1767_v22, %v5278_v55  ;;  %v1769_v40 = vmul.f32 %v5288_v14, %v5288_v14 }
 0x571   :  { %3825 = vtanh.f32 %v1892_v59  ;;  %v1894_v28 = vmul.f32 0.7978846, %v1862_v27  ;;  %v1800_v24 = vmul.f32 %v1768_v18, %v5282_v35  ;;  %v1770_v44 = vmul.f32 %v5294_v54, %v5294_v54 }
 0x572   :  { %3827 = vtanh.f32 %v1893_v51  ;;  %v1831_v47 = vmul.f32 0.044715, %v1799_v6  ;;  %v1801_v62 = vmul.f32 %v1769_v40, %v5288_v14 }
 0x573   :  { %v1832_v16 = vmul.f32 0.044715, %v1800_v24  ;;  %v1802_v0 = vmul.f32 %v1770_v44, %v5294_v54  ;;  %v1704_v1 = vpop.f32.mrb[16].mxu0  ;;  %3829 = vtanh.f32 %v1894_v28 }
 0x574   :  { %v1863_v9 = vadd.f32 %v1831_v47, %v5278_v55  ;;  %v1833_v19 = vmul.f32 0.044715, %v1801_v62  ;;  %v5306_v8 = vadd.f32 %v1704_v1, %v5247_v38  ;;  %v1706_v56 = vpop.f32.mrb[17].mxu0 }
 0x575   :  { %v1864_v22 = vadd.f32 %v1832_v16, %v5282_v35  ;;  %v1834_v50 = vmul.f32 0.044715, %v1802_v0  ;;  %v5310_v59 = vadd.f32 %v1706_v56, %v5250_v49  ;;  %v1708_v27 = vpop.f32.mrb[18].mxu0 }
 0x576   :  { %v1895_v18 = vmul.f32 0.7978846, %v1863_v9  ;;  %v1865_v51 = vadd.f32 %v1833_v19, %v5288_v14  ;;  %v1771_v6 = vmul.f32 %v5306_v8, %v5306_v8  ;;  %v5316_v40 = vadd.f32 %v1708_v27, %v5247_v38  ;;  %v1710_v24 = vpop.f32.mrb[19].mxu0 }
 0x577   :  { %v1896_v44 = vmul.f32 0.7978846, %v1864_v22  ;;  %v1866_v28 = vadd.f32 %v1834_v50, %v5294_v54  ;;  %v1772_v47 = vmul.f32 %v5310_v59, %v5310_v59  ;;  %v5322_v62 = vadd.f32 %v1710_v24, %v5250_v49 }
 0x578   :  { %3831 = vtanh.f32 %v1895_v18  ;;  %v1897_v16 = vmul.f32 0.7978846, %v1865_v51  ;;  %v1803_v0 = vmul.f32 %v1771_v6, %v5306_v8  ;;  %v1773_v1 = vmul.f32 %v5316_v40, %v5316_v40 }
 0x579   :  { %3833 = vtanh.f32 %v1896_v44  ;;  %v1898_v9 = vmul.f32 0.7978846, %v1866_v28  ;;  %v1804_v19 = vmul.f32 %v1772_v47, %v5310_v59  ;;  %v1774_v56 = vmul.f32 %v5322_v62, %v5322_v62 }
 0x57a   :  { %v3824_v22 = vpop.eup %3823  ;;  %3835 = vtanh.f32 %v1897_v16  ;;  %v1835_v50 = vmul.f32 0.044715, %v1803_v0  ;;  %v1805_v27 = vmul.f32 %v1773_v1, %v5316_v40 }
 0x57b   :  { %v3826_v24 = vpop.eup %3825  ;;  %v1955_v18 = vadd.f32 1.0, %v3824_v22  ;;  %3837 = vtanh.f32 %v1898_v9  ;;  %v1836_v51 = vmul.f32 0.044715, %v1804_v19  ;;  %v1806_v6 = vmul.f32 %v1774_v56, %v5322_v62  ;;  %v1714_v46 = vpop.f32.mrb[20].mxu0 }
 0x57c   :  { %v3828_v45 = vpop.eup %3827  ;;  %v1867_v44 = vadd.f32 %v1835_v50, %v5306_v8  ;;  %v1837_v28 = vmul.f32 0.044715, %v1805_v27  ;;  %v5334_v47 = vadd.f32 %v1714_v46, %v5247_v38  ;;  %v1716_v21 = vpop.f32.mrb[21].mxu0  ;;  %v1956_v60 = vadd.f32 1.0, %v3826_v24 }
 0x57d   :  { %v1987_v16 = vmul.f32 0.5, %v1955_v18  ;;  %v1957_v0 = vadd.f32 1.0, %v3828_v45  ;;  %v1868_v1 = vadd.f32 %v1836_v51, %v5310_v59  ;;  %v1838_v31 = vmul.f32 0.044715, %v1806_v6  ;;  %v1718_v22 = vpop.f32.mrb[22].mxu0  ;;  %v3830_v46 = vpop.eup %3829 }
 0x57e   :  { %v1899_v9 = vmul.f32 0.7978846, %v1867_v44  ;;  %v1869_v19 = vadd.f32 %v1837_v28, %v5316_v40  ;;  %v1775_v56 = vmul.f32 %v5334_v47, %v5334_v47  ;;  %v5341_v50 = vadd.f32 %v1716_v21, %v5250_v49  ;;  %v1720_v27 = vpop.f32.mrb[23].mxu0 }
 0x57f   :  { %v5344_v20 = vmul.f32 %v1987_v16, %v5253_v13  ;;  %v1989_v24 = vmul.f32 0.5, %v1957_v0  ;;  %v1900_v45 = vmul.f32 0.7978846, %v1868_v1  ;;  %v1870_v18 = vadd.f32 %v1838_v31, %v5322_v62 }
 0x580   :  { %3839 = vtanh.f32 %v1899_v9  ;;  %v1901_v51 = vmul.f32 0.7978846, %v1869_v19  ;;  %v1807_v6 = vmul.f32 %v1775_v56, %v5334_v47  ;;  %v1776_v44 = vmul.f32 %v5341_v50, %v5341_v50 }
 0x581   :  { %v5351_v28 = vmul.f32 %v1989_v24, %v5261_v33  ;;  %3841 = vtanh.f32 %v1900_v45  ;;  %v1902_v21 = vmul.f32 0.7978846, %v1870_v18  ;;  %v5354_v48 = vadd.f32 %v1718_v22, %v5247_v38 }
 0x582   :  { %v5356_v13 = vpop.eup %3831  ;;  %3843 = vtanh.f32 %v1901_v51  ;;  %v1839_v16 = vmul.f32 0.044715, %v1807_v6  ;;  %v1808_v31 = vmul.f32 %v1776_v44, %v5341_v50  ;;  %v5360_v0 = vadd.f32 %v1720_v27, %v5250_v49 }
 0x583   :  { %v5362_v1 = vpop.eup %3833  ;;  %3845 = vtanh.f32 %v1902_v21  ;;  %v1777_v9 = vmul.f32 %v5354_v48, %v5354_v48  ;;  %v1724_v22 = vpop.f32.mrb[24].mxu0  ;;  %v1958_v19 = vadd.f32 1.0, %v3830_v46  ;;  %v1988_v33 = vmul.f32 0.5, %v1956_v60 }
 0x584   :  { %v5368_v56 = vpop.eup %3835  ;;  %v1871_v24 = vadd.f32 %v1839_v16, %v5334_v47  ;;  %v1840_v45 = vmul.f32 0.044715, %v1808_v31  ;;  %v1778_v27 = vmul.f32 %v5360_v0, %v5360_v0  ;;  %v5374_v18 = vadd.f32 %v1724_v22, %v5247_v38  ;;  %v1726_v51 = vpop.f32.mrb[25].mxu0 }
 0x585   :  { %v5376_v6 = vpop.eup %3837  ;;  %v1809_v44 = vmul.f32 %v1777_v9, %v5354_v48  ;;  %v5380_v21 = vadd.f32 %v1726_v51, %v5250_v49  ;;  %v1728_v46 = vpop.f32.mrb[26].mxu0  ;;  %v1990_v2 = vmul.f32 0.5, %v1958_v19 }
 0x586   :  { %v1903_v52 = vmul.f32 0.7978846, %v1871_v24  ;;  %v1872_v16 = vadd.f32 %v1840_v45, %v5341_v50  ;;  %v1810_v31 = vmul.f32 %v1778_v27, %v5360_v0  ;;  %v1779_v22 = vmul.f32 %v5374_v18, %v5374_v18  ;;  %v1730_v36 = vpop.f32.mrb[27].mxu0 }
 0x587   :  { %v1841_v26 = vmul.f32 0.044715, %v1809_v44  ;;  %v1780_v29 = vmul.f32 %v5380_v21, %v5380_v21  ;;  %v5389_v9 = vadd.f32 %v1728_v46, %v5247_v38  ;;  %v5392_v51 = vadd.f32 %v1730_v36, %v5250_v49 }
 0x588   :  { %3847 = vtanh.f32 %v1903_v52  ;;  %v1904_v60 = vmul.f32 0.7978846, %v1872_v16  ;;  %v1842_v19 = vmul.f32 0.044715, %v1810_v31  ;;  %v1811_v24 = vmul.f32 %v1779_v22, %v5374_v18 }
 0x589   :  { %v1873_v45 = vadd.f32 %v1841_v26, %v5354_v48  ;;  %v1812_v27 = vmul.f32 %v1780_v29, %v5380_v21  ;;  %v1781_v44 = vmul.f32 %v5389_v9, %v5389_v9  ;;  %v1782_v30 = vmul.f32 %v5392_v51, %v5392_v51 }
 0x58a   :  { %v5401_v46 = vpop.eup %3839  ;;  %3849 = vtanh.f32 %v1904_v60  ;;  %v1874_v36 = vadd.f32 %v1842_v19, %v5360_v0  ;;  %v1843_v52 = vmul.f32 0.044715, %v1811_v24  ;;  %v2020_v16 = vmul.f32 %v1988_v33, %v5256_v34 }
 0x58b   :  { %v5405_v31 = vpop.eup %3841  ;;  %v1905_v22 = vmul.f32 0.7978846, %v1873_v45  ;;  %v1844_v26 = vmul.f32 0.044715, %v1812_v27  ;;  %v1813_v29 = vmul.f32 %v1781_v44, %v5389_v9  ;;  %v1814_v41 = vmul.f32 %v1782_v30, %v5392_v51  ;;  %v1734_v5 = vpop.f32.mrb[28].mxu0 }
 0x58c   :  { %v5409_v17 = vpop.eup %3843  ;;  %v1906_v57 = vmul.f32 0.7978846, %v1874_v36  ;;  %v1875_v3 = vadd.f32 %v1843_v52, %v5374_v18  ;;  %v2022_v60 = vmul.f32 %v1990_v2, %v5266_v10  ;;  %v5414_v19 = vadd.f32 %v1734_v5, %v5247_v38  ;;  %v1736_v34 = vpop.f32.mrb[29].mxu0 }
 0x58d   :  { %v5416_v33 = vpop.eup %3845  ;;  %3851 = vtanh.f32 %v1905_v22  ;;  %v1876_v24 = vadd.f32 %v1844_v26, %v5380_v21  ;;  %v1845_v45 = vmul.f32 0.044715, %v1813_v29  ;;  %v1846_v27 = vmul.f32 0.044715, %v1814_v41  ;;  %v1738_v30 = vpop.f32.mrb[30].mxu0 }
 0x58e   :  { %3853 = vtanh.f32 %v1906_v57  ;;  %v1907_v44 = vmul.f32 0.7978846, %v1875_v3  ;;  %v2052_v53 = vpack.c.bf16 %v2022_v60, %v2020_v16  ;;  %v1783_v36 = vmul.f32 %v5414_v19, %v5414_v19  ;;  %v1740_v52 = vpop.f32.mrb[31].mxu0 }
 0x58f   :  { %v1908_v2 = vmul.f32 0.7978846, %v1876_v24  ;;  %v1877_v5 = vadd.f32 %v1845_v45, %v5389_v9  ;;  %v1878_v10 = vadd.f32 %v1846_v27, %v5392_v51  ;;  %v5424_v58 = vadd.f32 %v1736_v34, %v5250_v49 }
 0x590   :  { %3855 = vtanh.f32 %v1907_v44  ;;  %2303 = vmatprep.mubr.bf16.mxu1 %v2052_v53  ;;  %v1815_v41 = vmul.f32 %v1783_v36, %v5414_v19  ;;  %v5428_v57 = vadd.f32 %v1738_v30, %v5247_v38  ;;  %v5431_v3 = vadd.f32 %v1740_v52, %v5250_v49 }
 0x591   :  { %3857 = vtanh.f32 %v1908_v2  ;;  %v1909_v16 = vmul.f32 0.7978846, %v1877_v5  ;;  %v1910_v22 = vmul.f32 0.7978846, %v1878_v10  ;;  %v6160_v26 = vpack.c.bf16 %v5351_v28, %v5344_v20 }
 0x592   :  { %v1784_v29 = vmul.f32 %v5424_v58, %v5424_v58  ;;  %v5438_v60 = vpop.eup %3847  ;;  %v1847_v53 = vmul.f32 0.044715, %v1815_v41  ;;  %v1785_v34 = vmul.f32 %v5428_v57, %v5428_v57  ;;  %v1786_v24 = vmul.f32 %v5431_v3, %v5431_v3 }
 0x593   :  { %2304 = vmatmul.mubr.bf16.vlgmr.msra.gmra.mrb[40].mxu1 %v6160_v26  ;;  %v1960_v45 = vadd.f32 1.0, %v5362_v1  ;;  %3859 = vtanh.f32 %v1909_v16  ;;  %v1962_v20 = vadd.f32 1.0, %v5376_v6  ;;  %v1959_v28 = vadd.f32 1.0, %v5356_v13  ;;  %v1744_v30 = vpop.f32.mrb[32].mxu0 }
 0x594   :  { %v1816_v27 = vmul.f32 %v1784_v29, %v5424_v58  ;;  %v5448_v44 = vpop.eup %3849  ;;  %3861 = vtanh.f32 %v1910_v22  ;;  %v1879_v36 = vadd.f32 %v1847_v53, %v5414_v19  ;;  %v1817_v52 = vmul.f32 %v1785_v34, %v5428_v57  ;;  %v1746_v5 = vpop.f32.mrb[33].mxu0 }
 0x595   :  { %v1818_v2 = vmul.f32 %v1786_v24, %v5431_v3  ;;  %v1992_v1 = vmul.f32 0.5, %v1960_v45  ;;  %v1994_v41 = vmul.f32 0.5, %v1962_v20  ;;  %v1961_v16 = vadd.f32 1.0, %v5368_v56  ;;  %v1748_v26 = vpop.f32.mrb[34].mxu0 }
 0x596   :  { %v1848_v10 = vmul.f32 0.044715, %v1816_v27  ;;  %v1911_v6 = vmul.f32 0.7978846, %v1879_v36  ;;  %v1849_v29 = vmul.f32 0.044715, %v1817_v52  ;;  %v5455_v25 = vadd.f32 %v1744_v30, %v5247_v38 }
 0x597   :  { %v1850_v13 = vmul.f32 0.044715, %v1818_v2  ;;  %v5457_v22 = vpop.eup %3851  ;;  %v2024_v34 = vmul.f32 %v1992_v1, %v5282_v35  ;;  %v2026_v24 = vmul.f32 %v1994_v41, %v5294_v54  ;;  %v1991_v27 = vmul.f32 0.5, %v1959_v28  ;;  %v1750_v45 = vpop.f32.mrb[35].mxu0 }
 0x598   :  { %v1880_v53 = vadd.f32 %v1848_v10, %v5424_v58  ;;  %v5462_v20 = vpop.eup %3853  ;;  %3863 = vtanh.f32 %v1911_v6  ;;  %v1881_v56 = vadd.f32 %v1849_v29, %v5428_v57  ;;  %v1993_v52 = vmul.f32 0.5, %v1961_v16 }
 0x599   :  { %v1882_v36 = vadd.f32 %v1850_v13, %v5431_v3  ;;  %v2054_v2 = vpack.c.bf16 %v2026_v24, %v2024_v34  ;;  %v2023_v32 = vmul.f32 %v1991_v27, %v5278_v55  ;;  %v1787_v10 = vmul.f32 %v5455_v25, %v5455_v25 }
 0x59a   :  { %v1912_v30 = vmul.f32 0.7978846, %v1880_v53  ;;  %v5469_v35 = vpop.eup %3855  ;;  %v1913_v54 = vmul.f32 0.7978846, %v1881_v56  ;;  %v2025_v1 = vmul.f32 %v1993_v52, %v5288_v14  ;;  %v5473_v41 = vadd.f32 %v1746_v5, %v5250_v49 }
 0x59b   :  { %v1914_v28 = vmul.f32 0.7978846, %v1882_v36  ;;  %v5475_v6 = vpop.eup %3857  ;;  %2313 = vmatprep.mubr.bf16.mxu1 %v2054_v2  ;;  %v1819_v16 = vmul.f32 %v1787_v10, %v5455_v25  ;;  %v5479_v55 = vadd.f32 %v1748_v26, %v5247_v38  ;;  %v5482_v29 = vadd.f32 %v1750_v45, %v5250_v49  ;;  %v1754_v13 = vpop.f32.mrb[36].mxu0 }
 0x59c   :  { %3865 = vtanh.f32 %v1912_v30  ;;  %v2053_v53 = vpack.c.bf16 %v2025_v1, %v2023_v32  ;;  %v1788_v14 = vmul.f32 %v5473_v41, %v5473_v41  ;;  %v1964_v5 = vadd.f32 1.0, %v5405_v31  ;;  %v1756_v34 = vpop.f32.mrb[37].mxu0 }
 0x59d   :  { %3867 = vtanh.f32 %v1913_v54  ;;  %v5487_v24 = vpop.eup %3859  ;;  %v1851_v27 = vmul.f32 0.044715, %v1819_v16  ;;  %v1789_v26 = vmul.f32 %v5479_v55, %v5479_v55  ;;  %v1790_v45 = vmul.f32 %v5482_v29, %v5482_v29  ;;  %v1758_v56 = vpop.f32.mrb[38].mxu0 }
 0x59e   :  { %3869 = vtanh.f32 %v1914_v28  ;;  %v5493_v36 = vpop.eup %3861  ;;  %2314 = vmatmul.mubr.bf16.gmra.mrb[44].mxu1 %v2053_v53  ;;  %v1820_v32 = vmul.f32 %v1788_v14, %v5473_v41  ;;  %v1966_v52 = vadd.f32 1.0, %v5416_v33  ;;  %v1996_v31 = vmul.f32 0.5, %v1964_v5  ;;  %v1760_v2 = vpop.f32.mrb[39].mxu0 }
 0x59f   :  { %v1963_v30 = vadd.f32 1.0, %v5401_v46  ;;  %v1883_v10 = vadd.f32 %v1851_v27, %v5455_v25  ;;  %v1821_v54 = vmul.f32 %v1789_v26, %v5479_v55  ;;  %v1822_v28 = vmul.f32 %v1790_v45, %v5482_v29 }
 0x5a0   :  { %v1965_v1 = vadd.f32 1.0, %v5409_v17  ;;  %v1852_v16 = vmul.f32 0.044715, %v1820_v32  ;;  %v1998_v61 = vmul.f32 0.5, %v1966_v52  ;;  %v2028_v53 = vmul.f32 %v1996_v31, %v5310_v59 }
 0x5a1   :  { %v1995_v4 = vmul.f32 0.5, %v1963_v30  ;;  %v1915_v14 = vmul.f32 0.7978846, %v1883_v10  ;;  %v1853_v7 = vmul.f32 0.044715, %v1821_v54  ;;  %v5504_v5 = vadd.f32 %v1754_v13, %v5247_v38 }
 0x5a2   :  { %v1854_v33 = vmul.f32 0.044715, %v1822_v28  ;;  %v5506_v46 = vpop.eup %3863  ;;  %v1884_v27 = vadd.f32 %v1852_v16, %v5473_v41  ;;  %v2030_v26 = vmul.f32 %v1998_v61, %v5322_v62  ;;  %v1997_v45 = vmul.f32 0.5, %v1965_v1 }
 0x5a3   :  { %v2027_v17 = vmul.f32 %v1995_v4, %v5306_v8  ;;  %3871 = vtanh.f32 %v1915_v14  ;;  %v1885_v32 = vadd.f32 %v1853_v7, %v5479_v55  ;;  %v1791_v52 = vmul.f32 %v5504_v5, %v5504_v5 }
 0x5a4   :  { %v1886_v59 = vadd.f32 %v1854_v33, %v5482_v29  ;;  %v1916_v31 = vmul.f32 0.7978846, %v1884_v27  ;;  %v2056_v13 = vpack.c.bf16 %v2030_v26, %v2028_v53  ;;  %v2029_v30 = vmul.f32 %v1997_v45, %v5316_v40 }
 0x5a5   :  { %v5517_v10 = vadd.f32 %v1756_v34, %v5250_v49  ;;  %v1917_v61 = vmul.f32 0.7978846, %v1885_v32  ;;  %v1823_v4 = vmul.f32 %v1791_v52, %v5504_v5  ;;  %v5523_v7 = vadd.f32 %v1758_v56, %v5247_v38 }
 0x5a6   :  { %v5519_v54 = vpop.eup %3865  ;;  %v1918_v62 = vmul.f32 0.7978846, %v1886_v59  ;;  %3873 = vtanh.f32 %v1916_v31  ;;  %2323 = vmatprep.mubr.bf16.mxu1 %v2056_v13  ;;  %v2055_v28 = vpack.c.bf16 %v2029_v30, %v2027_v17  ;;  %v5530_v34 = vadd.f32 %v1760_v2, %v5250_v49 }
 0x5a7   :  { %v5525_v8 = vpop.eup %3867  ;;  %v1792_v40 = vmul.f32 %v5517_v10, %v5517_v10  ;;  %3875 = vtanh.f32 %v1917_v61  ;;  %v1855_v16 = vmul.f32 0.044715, %v1823_v4  ;;  %v1793_v53 = vmul.f32 %v5523_v7, %v5523_v7 }
 0x5a8   :  { %v3870_v1 = vpop.eup %3869  ;;  %v1968_v38 = vadd.f32 1.0, %v5448_v44  ;;  %3877 = vtanh.f32 %v1918_v62  ;;  %2324 = vmatmul.mubr.bf16.gmra.mrb[48].mxu1 %v2055_v28  ;;  %v1794_v14 = vmul.f32 %v5530_v34, %v5530_v34  ;;  %v1970_v33 = vadd.f32 1.0, %v5462_v20 }
 0x5a9   :  { %v1824_v56 = vmul.f32 %v1792_v40, %v5517_v10  ;;  %v1887_v49 = vadd.f32 %v1855_v16, %v5504_v5  ;;  %v1825_v2 = vmul.f32 %v1793_v53, %v5523_v7  ;;  %v1967_v26 = vadd.f32 1.0, %v5438_v60 }
 0x5aa   :  { %v2000_v27 = vmul.f32 0.5, %v1968_v38  ;;  %v1826_v17 = vmul.f32 %v1794_v14, %v5530_v34  ;;  %v2002_v44 = vmul.f32 0.5, %v1970_v33  ;;  %v1969_v32 = vadd.f32 1.0, %v5457_v22 }
 0x5ab   :  { %v1856_v45 = vmul.f32 0.044715, %v1824_v56  ;;  %v1919_v59 = vmul.f32 0.7978846, %v1887_v49  ;;  %v1857_v52 = vmul.f32 0.044715, %v1825_v2 }
 0x5ac   :  { %v2032_v31 = vmul.f32 %v2000_v27, %v5341_v50  ;;  %v1999_v13 = vmul.f32 0.5, %v1967_v26  ;;  %v1858_v30 = vmul.f32 0.044715, %v1826_v17  ;;  %v2034_v61 = vmul.f32 %v2002_v44, %v5360_v0 }
 0x5ad   :  { %v1888_v20 = vadd.f32 %v1856_v45, %v5517_v10  ;;  %v2001_v62 = vmul.f32 0.5, %v1969_v32  ;;  %v3872_v4 = vpop.eup %3871  ;;  %3879 = vtanh.f32 %v1919_v59  ;;  %v1889_v60 = vadd.f32 %v1857_v52, %v5523_v7 }
 0x5ae   :  { %v2031_v28 = vmul.f32 %v1999_v13, %v5334_v47  ;;  %v1972_v40 = vadd.f32 1.0, %v5475_v6  ;;  %v1890_v16 = vadd.f32 %v1858_v30, %v5530_v34  ;;  %v2058_v53 = vpack.c.bf16 %v2034_v61, %v2032_v31 }
 0x5af   :  { %v1920_v22 = vmul.f32 0.7978846, %v1888_v20  ;;  %v2033_v50 = vmul.f32 %v2001_v62, %v5354_v48  ;;  %v1921_v38 = vmul.f32 0.7978846, %v1889_v60  ;;  %v1974_v56 = vadd.f32 1.0, %v5493_v36 }
 0x5b0   :  { %v2004_v14 = vmul.f32 0.5, %v1972_v40  ;;  %v1971_v0 = vadd.f32 1.0, %v5469_v35  ;;  %v3874_v33 = vpop.eup %3873  ;;  %v1922_v49 = vmul.f32 0.7978846, %v1890_v16  ;;  %2333 = vmatprep.mubr.bf16.mxu1 %v2058_v53  ;;  %v1973_v47 = vadd.f32 1.0, %v5487_v24 }
 0x5b1   :  { %3881 = vtanh.f32 %v1920_v22  ;;  %v2057_v2 = vpack.c.bf16 %v2033_v50, %v2031_v28  ;;  %v3876_v6 = vpop.eup %3875  ;;  %v2006_v27 = vmul.f32 0.5, %v1974_v56  ;;  %v1976_v17 = vadd.f32 1.0, %v5519_v54 }
 0x5b2   :  { %3883 = vtanh.f32 %v1921_v38  ;;  %v2036_v26 = vmul.f32 %v2004_v14, %v5380_v21  ;;  %v2003_v45 = vmul.f32 0.5, %v1971_v0  ;;  %v3878_v48 = vpop.eup %3877  ;;  %v2005_v36 = vmul.f32 0.5, %v1973_v47 }
 0x5b3   :  { %3885 = vtanh.f32 %v1922_v49  ;;  %2334 = vmatmul.mubr.bf16.gmra.mrb[52].mxu1 %v2057_v2  ;;  %v1978_v35 = vadd.f32 1.0, %v3870_v1  ;;  %v2038_v44 = vmul.f32 %v2006_v27, %v5392_v51  ;;  %v1975_v59 = vadd.f32 1.0, %v5506_v46 }
 0x5b4   :  { %v2035_v32 = vmul.f32 %v2003_v45, %v5374_v18  ;;  %v1977_v24 = vadd.f32 1.0, %v5525_v8  ;;  %v2037_v52 = vmul.f32 %v2005_v36, %v5389_v9  ;;  %v2008_v31 = vmul.f32 0.5, %v1976_v17 }
 0x5b5   :  { %v2010_v21 = vmul.f32 0.5, %v1978_v35  ;;  %v1980_v13 = vadd.f32 1.0, %v3874_v33  ;;  %v2060_v20 = vpack.c.bf16 %v2038_v44, %v2036_v26  ;;  %v2007_v30 = vmul.f32 0.5, %v1975_v59  ;;  %v3684_v35 = vld [vmem:[%s6101_s15 + $0x10] sm:$0xff]   ;;  %v3685_v44 = vld [vmem:[%s6101_s15 + $0x58] sm:$0xff]   ;;  %v3687_v59 = vld [vmem:[%s6101_s15 + $0x60] sm:$0xff]  }
 0x5b6   :  { %v2009_v61 = vmul.f32 0.5, %v1977_v24  ;;  %v1982_v62 = vadd.f32 1.0, %v3878_v48  ;;  %v2059_v60 = vpack.c.bf16 %v2037_v52, %v2035_v32  ;;  %v2040_v54 = vmul.f32 %v2008_v31, %v5424_v58  ;;  %v3686_v32 = vld [vmem:[%s6101_s15 + $0x18] sm:$0xff]   ;;  %v2099_v24 = vld [vmem:[%s6098_s12] sm:$0x3] }
 0x5b7   :  { %v2042_v51 = vmul.f32 %v2010_v21, %v5431_v3  ;;  %v2012_v1 = vmul.f32 0.5, %v1980_v13  ;;  %v3880_v18 = vpop.eup %3879  ;;  %2343 = vmatprep.mubr.bf16.mxu1 %v2060_v20  ;;  %v2039_v46 = vmul.f32 %v2007_v30, %v5414_v19  ;;  %v1979_v28 = vadd.f32 1.0, %v3872_v4 }
 0x5b8   :  { %v2041_v8 = vmul.f32 %v2009_v61, %v5428_v57  ;;  %v2014_v9 = vmul.f32 0.5, %v1982_v62  ;;  %v1981_v22 = vadd.f32 1.0, %v3876_v6  ;;  %v1983_v16 = vadd.f32 1.0, %v3880_v18 }
 0x5b9   :  { %v2062_v40 = vpack.c.bf16 %v2042_v51, %v2040_v54  ;;  %v2044_v50 = vmul.f32 %v2012_v1, %v5473_v41  ;;  %v2011_v58 = vmul.f32 0.5, %v1979_v28  ;;  %v5605_v52 = vrot.slane %v2099_v24, %v4899_v15 }
 0x5ba   :  { %v2061_v53 = vpack.c.bf16 %v2041_v8, %v2039_v46  ;;  %v2046_v38 = vmul.f32 %v2014_v9, %v5482_v29  ;;  %v2013_v3 = vmul.f32 0.5, %v1981_v22  ;;  %v2015_v2 = vmul.f32 0.5, %v1983_v16 }
 0x5bb   :  { %v3882_v56 = vpop.eup %3881  ;;  %2344 = vmatmul.mubr.bf16.gmra.mrb[56].mxu1 %v2059_v60  ;;  %v2043_v57 = vmul.f32 %v2011_v58, %v5455_v25  ;;  %v5608_v31 = vrot.slane %v2099_v24, %v4901_v12 }
 0x5bc   :  { %v3884_v14 = vpop.eup %3883  ;;  %2353 = vmatprep.mubr.bf16.mxu1 %v2062_v40  ;;  %v2064_v0 = vpack.c.bf16 %v2046_v38, %v2044_v50  ;;  %v1984_v19 = vadd.f32 1.0, %v3882_v56  ;;  %v2045_v4 = vmul.f32 %v2013_v3, %v5479_v55  ;;  %v2047_v26 = vmul.f32 %v2015_v2, %v5504_v5  ;;  %v3679_v55 = vld [vmem:[%s6101_s15 + $0x40] sm:$0xff]  }
 0x5bd   :  { %v3886_v33 = vpop.eup %3885  ;;  %v1985_v49 = vadd.f32 1.0, %v3884_v14  ;;  %v3680_v5 = vld [vmem:[%s6101_s15] sm:$0xff]   ;;  %3276 = vmatprep.subr.bf16.mxu0 %v3679_v55 }
 0x5be   :  { %v1986_v47 = vadd.f32 1.0, %v3886_v33  ;;  %v2016_v6 = vmul.f32 0.5, %v1984_v19  ;;  %v2063_v41 = vpack.c.bf16 %v2045_v4, %v2043_v57  ;;  %3277 = vmatpush3.bf16.msra.mxu0 %v3680_v5  ;;  %v6161_v33 = vld [vmem:[#allocation5_spill] sm:$0xff]  ;;  %v6163_v5 = vld [vmem:[#allocation6_spill] sm:$0xff] }
 0x5bf   :  { %v2017_v27 = vmul.f32 0.5, %v1985_v49 }
 0x5c0   :  { %v2018_v29 = vmul.f32 0.5, %v1986_v47  ;;  %v2048_v48 = vmul.f32 %v2016_v6, %v5517_v10  ;;  %v3681_v10 = vld [vmem:[%s6101_s15 + $0x48] sm:$0xff]  }
 0x5c1   :  { %v2049_v45 = vmul.f32 %v2017_v27, %v5523_v7  ;;  %v3682_v7 = vld [vmem:[%s6101_s15 + $0x8] sm:$0xff]   ;;  %3278 = vmatprep.subr.bf16.mxu0 %v3681_v10 }
 0x5c2   :  { %v2050_v36 = vmul.f32 %v2018_v29, %v5530_v34  ;;  %v3683_v34 = vld [vmem:[%s6101_s15 + $0x50] sm:$0xff]   ;;  %3279 = vmatpush3.bf16.msra.mxu0 %v3682_v7  ;;  %v3688_v29 = vld [vmem:[%s6101_s15 + $0x20] sm:$0xff]  }
 0x5c3   :  { %2354 = vmatmul.mubr.bf16.gmra.mrb[60].mxu1 %v2061_v53  ;;  %v2065_v17 = vpack.c.bf16 %v2049_v45, %v2047_v26  ;;  %3280 = vmatprep.subr.bf16.mxu0 %v3683_v34  ;;  %v6164_v34 = vld [vmem:[#allocation9_spill] sm:$0xff] }
 0x5c4   :  { %2363 = vmatprep.mubr.bf16.mxu1 %v2064_v0  ;;  %v2066_v25 = vpack.c.bf16 %v2050_v36, %v2048_v48  ;;  %v6162_v36 = vld [vmem:[#allocation8_spill] sm:$0xff] }
 0x5c6   :  { %3281 = vmatpush3.bf16.msra.mxu0 %v3684_v35 }
 0x5c7   :  { %3282 = vmatprep.subr.bf16.mxu0 %v3685_v44  ;;  %v6165_v44 = vld [vmem:[#allocation7_spill] sm:$0xff] }
 0x5ca   :  { %3283 = vmatpush3.bf16.msra.mxu0 %v3686_v32 }
 0x5cb   :  { %2364 = vmatmul.mubr.bf16.gmra.mrb[64].mxu1 %v2063_v41  ;;  %3284 = vmatprep.subr.bf16.mxu0 %v3687_v59 }
 0x5cc   :  { %2373 = vmatprep.mubr.bf16.mxu1 %v2066_v25 }
 0x5ce   :  { %3285 = vmatpush3.bf16.msra.mxu0 %v3688_v29 }
 0x5d3   :  { %2374 = vmatmul.mubr.bf16.gmra.mrb[68].mxu1 %v2065_v17 }
 0x666   :  { %v2305_v21 = vpop.f32.mrb[40].mxu1 }
 0x667   :  { %v2306_v13 = vadd.f32 %v2305_v21, %v5605_v52  ;;  %v2307_v20 = vpop.f32.mrb[41].mxu1 }
 0x668   :  { %v2308_v30 = vadd.f32 %v2307_v20, %v5608_v31  ;;  %v2309_v61 = vpop.f32.mrb[42].mxu1 }
 0x669   :  { %v5613_v62 = vadd.f32 %v2306_v13, %v4952_v43  ;;  %v2310_v60 = vadd.f32 %v2309_v61, %v5605_v52  ;;  %v2311_v54 = vpop.f32.mrb[43].mxu1 }
 0x66a   :  { %v5617_v51 = vadd.f32 %v2308_v30, %v4946_v63  ;;  %v2312_v1 = vadd.f32 %v2311_v54, %v5608_v31 }
 0x66b   :  { %v5621_v18 = vadd.f32 %v2310_v60, %v4957_v37  ;;  %v2482_v43 = vmul.f32 %v5613_v62, %v5613_v62 }
 0x66c   :  { %v5624_v46 = vadd.f32 %v2312_v1, %v4949_v42  ;;  %v2418_v8 = vadd.f32 %v5617_v51, %v5613_v62  ;;  %v2483_v9 = vmul.f32 %v5617_v51, %v5617_v51 }
 0x66d   :  { %v2484_v37 = vmul.f32 %v5621_v18, %v5621_v18 }
 0x66e   :  { %2419 = vadd.xlane.f32.xlu0 %v2418_v8  ;;  %v2421_v63 = vadd.f32 %v5624_v46, %v5621_v18  ;;  %v2485_v42 = vmul.f32 %v5624_v46, %v5624_v46  ;;  %v2514_v28 = vadd.f32 %v2483_v9, %v2482_v43 }
 0x670   :  { %2422 = vadd.xlane.f32.xlu1 %v2421_v63  ;;  %v2517_v40 = vadd.f32 %v2485_v42, %v2484_v37  ;;  %v6166_v63 = vld [vmem:[#allocation12_spill] sm:$0xff] }
 0x671   :  { %v2315_v22 = vpop.f32.mrb[44].mxu1 }
 0x672   :  { %2515 = vadd.xlane.f32.xlu0 %v2514_v28  ;;  %v2316_v16 = vadd.f32 %v2315_v22, %v5605_v52  ;;  %v2317_v53 = vpop.f32.mrb[45].mxu1 }
 0x673   :  { %v2318_v50 = vadd.f32 %v2317_v53, %v5608_v31  ;;  %v2319_v38 = vpop.f32.mrb[46].mxu1  ;;  %v6168_v53 = vld [vmem:[#allocation13_spill] sm:$0xff] }
 0x674   :  { %2518 = vadd.xlane.f32.xlu1 %v2517_v40  ;;  %v5641_v58 = vadd.f32 %v2316_v16, %v4990_v23  ;;  %v2320_v56 = vadd.f32 %v2319_v38, %v5605_v52  ;;  %v2321_v3 = vpop.f32.mrb[47].mxu1  ;;  %v6167_v40 = vld [vmem:[#allocation10_spill] sm:$0xff]  ;;  %v6169_v38 = vld [vmem:[#allocation11_spill] sm:$0xff] }
 0x675   :  { %v5645_v14 = vadd.f32 %v2318_v50, %v4984_v39  ;;  %v2322_v0 = vadd.f32 %v2321_v3, %v5608_v31 }
 0x676   :  { %v5649_v19 = vadd.f32 %v2320_v56, %v4993_v11  ;;  %v2486_v23 = vmul.f32 %v5641_v58, %v5641_v58 }
 0x677   :  { %v5652_v57 = vadd.f32 %v2322_v0, %v6161_v33  ;;  %v2424_v4 = vadd.f32 %v5645_v14, %v5641_v58  ;;  %v2487_v49 = vmul.f32 %v5645_v14, %v5645_v14 }
 0x678   :  { %v2488_v11 = vmul.f32 %v5649_v19, %v5649_v19 }
 0x679   :  { %2425 = vadd.xlane.f32.xlu0 %v2424_v4  ;;  %v2427_v39 = vadd.f32 %v5652_v57, %v5649_v19  ;;  %v2489_v2 = vmul.f32 %v5652_v57, %v5652_v57  ;;  %v2520_v6 = vadd.f32 %v2487_v49, %v2486_v23 }
 0x67b   :  { %v2325_v47 = vpop.f32.mrb[48].mxu1  ;;  %2428 = vadd.xlane.f32.xlu1 %v2427_v39  ;;  %v2523_v48 = vadd.f32 %v2489_v2, %v2488_v11 }
 0x67c   :  { %v2326_v41 = vadd.f32 %v2325_v47, %v5605_v52  ;;  %v2327_v27 = vpop.f32.mrb[49].mxu1 }
 0x67d   :  { %v2328_v26 = vadd.f32 %v2327_v27, %v5608_v31  ;;  %v2329_v45 = vpop.f32.mrb[50].mxu1  ;;  %2521 = vadd.xlane.f32.xlu0 %v2520_v6  ;;  %v6170_v27 = vld [vmem:[#allocation16_spill] sm:$0xff] }
 0x67e   :  { %v5672_v17 = vadd.f32 %v2326_v41, %v6162_v36  ;;  %v2330_v25 = vadd.f32 %v2329_v45, %v5605_v52  ;;  %v2331_v55 = vpop.f32.mrb[51].mxu1 }
 0x67f   :  { %v5676_v10 = vadd.f32 %v2328_v26, %v6163_v5  ;;  %v2332_v7 = vadd.f32 %v2331_v55, %v5608_v31  ;;  %2524 = vadd.xlane.f32.xlu1 %v2523_v48  ;;  %v6171_v48 = vld [vmem:[#allocation14_spill] sm:$0xff] }
 0x680   :  { %v5680_v35 = vadd.f32 %v2330_v25, %v6164_v34  ;;  %v2490_v24 = vmul.f32 %v5672_v17, %v5672_v17  ;;  %v3689_v5 = vld [vmem:[%s6101_s15 + $0x68] sm:$0xff]   ;;  %v6172_v34 = vld [vmem:[#allocation17_spill] sm:$0xff] }
 0x681   :  { %v5683_v32 = vadd.f32 %v2332_v7, %v6165_v44  ;;  %v2430_v59 = vadd.f32 %v5676_v10, %v5672_v17  ;;  %v2491_v21 = vmul.f32 %v5676_v10, %v5676_v10  ;;  %v3690_v7 = vld [vmem:[%s6101_s15 + $0x28] sm:$0xff]   ;;  %3286 = vmatprep.subr.bf16.mxu0 %v3689_v5 }
 0x682   :  { %v2492_v20 = vmul.f32 %v5680_v35, %v5680_v35  ;;  %3287 = vmatpush3.bf16.msra.mxu0 %v3690_v7 }
 0x683   :  { %2431 = vadd.xlane.f32.xlu0 %v2430_v59  ;;  %v2433_v13 = vadd.f32 %v5683_v32, %v5680_v35  ;;  %v2493_v30 = vmul.f32 %v5683_v32, %v5683_v32  ;;  %v2526_v60 = vadd.f32 %v2491_v21, %v2490_v24  ;;  %v6173_v24 = vld [vmem:[#allocation15_spill] sm:$0xff] }
 0x685   :  { %2434 = vadd.xlane.f32.xlu1 %v2433_v13  ;;  %v2529_v9 = vadd.f32 %v2493_v30, %v2492_v20  ;;  %v3691_v30 = vld [vmem:[%s6101_s15 + $0x70] sm:$0xff]  }
 0x686   :  { %v2335_v61 = vpop.f32.mrb[52].mxu1  ;;  %3288 = vmatprep.subr.bf16.mxu0 %v3691_v30 }
 0x687   :  { %v2336_v54 = vadd.f32 %v2335_v61, %v5605_v52  ;;  %v2337_v1 = vpop.f32.mrb[53].mxu1  ;;  %2527 = vadd.xlane.f32.xlu0 %v2526_v60  ;;  %v3692_v61 = vld [vmem:[%s6101_s15 + $0x30] sm:$0xff]  }
 0x688   :  { %v2338_v8 = vadd.f32 %v2337_v1, %v5608_v31  ;;  %v2339_v43 = vpop.f32.mrb[54].mxu1  ;;  %3289 = vmatpush3.bf16.msra.mxu0 %v3692_v61  ;;  %v6179_v61 = vld [vmem:[#allocation22_spill] sm:$0xff] }
 0x689   :  { %v5700_v37 = vadd.f32 %v2336_v54, %v6166_v63  ;;  %v2340_v42 = vadd.f32 %v2339_v43, %v5605_v52  ;;  %v2341_v28 = vpop.f32.mrb[55].mxu1  ;;  %2530 = vadd.xlane.f32.xlu1 %v2529_v9 }
 0x68a   :  { %v5704_v22 = vadd.f32 %v2338_v8, %v6167_v40  ;;  %v2342_v16 = vadd.f32 %v2341_v28, %v5608_v31  ;;  %v6174_v40 = vld [vmem:[#allocation20_spill] sm:$0xff] }
 0x68b   :  { %v5708_v50 = vadd.f32 %v2340_v42, %v6168_v53  ;;  %v2494_v0 = vmul.f32 %v5700_v37, %v5700_v37 }
 0x68c   :  { %v5711_v56 = vadd.f32 %v2342_v16, %v6169_v38  ;;  %v2436_v3 = vadd.f32 %v5704_v22, %v5700_v37  ;;  %v2495_v33 = vmul.f32 %v5704_v22, %v5704_v22 }
 0x68d   :  { %v2496_v49 = vmul.f32 %v5708_v50, %v5708_v50 }
 0x68e   :  { %v2345_v4 = vpop.f32.mrb[56].mxu1  ;;  %2437 = vadd.xlane.f32.xlu0 %v2436_v3  ;;  %v2439_v23 = vadd.f32 %v5711_v56, %v5708_v50  ;;  %v2497_v39 = vmul.f32 %v5711_v56, %v5711_v56  ;;  %v2532_v41 = vadd.f32 %v2495_v33, %v2494_v0  ;;  %v6175_v3 = vld [vmem:[#allocation18_spill] sm:$0xff] }
 0x68f   :  { %v2346_v11 = vadd.f32 %v2345_v4, %v5605_v52  ;;  %v2347_v2 = vpop.f32.mrb[57].mxu1 }
 0x690   :  { %v2348_v47 = vadd.f32 %v2347_v2, %v5608_v31  ;;  %v2349_v6 = vpop.f32.mrb[58].mxu1  ;;  %2440 = vadd.xlane.f32.xlu1 %v2439_v23  ;;  %v2535_v55 = vadd.f32 %v2497_v39, %v2496_v49  ;;  %v6176_v23 = vld [vmem:[#allocation21_spill] sm:$0xff]  ;;  %v6177_v39 = vld [vmem:[#allocation19_spill] sm:$0xff] }
 0x691   :  { %v5728_v29 = vadd.f32 %v2346_v11, %v6170_v27  ;;  %v2350_v26 = vadd.f32 %v2349_v6, %v5605_v52  ;;  %v2351_v45 = vpop.f32.mrb[59].mxu1 }
 0x692   :  { %v5732_v36 = vadd.f32 %v2348_v47, %v6171_v48  ;;  %v2352_v25 = vadd.f32 %v2351_v45, %v5608_v31  ;;  %2533 = vadd.xlane.f32.xlu0 %v2532_v41  ;;  %v3693_v48 = vld [vmem:[%s6101_s15 + $0x78] sm:$0xff]  }
 0x693   :  { %v5742_v44 = vadd.f32 %v2350_v26, %v6172_v34  ;;  %v2498_v59 = vmul.f32 %v5728_v29, %v5728_v29  ;;  %3290 = vmatprep.subr.bf16.mxu0 %v3693_v48 }
 0x694   :  { %v5747_v21 = vadd.f32 %v2352_v25, %v6173_v24  ;;  %2536 = vadd.xlane.f32.xlu1 %v2535_v55  ;;  %v2442_v13 = vadd.f32 %v5732_v36, %v5728_v29  ;;  %v2499_v20 = vmul.f32 %v5732_v36, %v5732_v36  ;;  %v3694_v25 = vld [vmem:[%s6101_s15 + $0x38] sm:$0xff]  }
 0x695   :  { %v2500_v1 = vmul.f32 %v5742_v44, %v5742_v44  ;;  %v6178_v24 = vld [vmem:[#allocation24_spill] sm:$0xff]  ;;  %3291 = vmatpush3.bf16.msra.mxu0 %v3694_v25 }
 0x696   :  { %v2355_v60 = vpop.f32.mrb[60].mxu1  ;;  %2443 = vadd.xlane.f32.xlu0 %v2442_v13  ;;  %v2445_v54 = vadd.f32 %v5747_v21, %v5742_v44  ;;  %v2501_v8 = vmul.f32 %v5747_v21, %v5747_v21  ;;  %v2538_v28 = vadd.f32 %v2499_v20, %v2498_v59 }
 0x697   :  { %v2356_v43 = vadd.f32 %v2355_v60, %v5605_v52  ;;  %v2357_v9 = vpop.f32.mrb[61].mxu1 }
 0x698   :  { %v2358_v63 = vadd.f32 %v2357_v9, %v5608_v31  ;;  %v2359_v42 = vpop.f32.mrb[62].mxu1  ;;  %2446 = vadd.xlane.f32.xlu1 %v2445_v54  ;;  %v2541_v4 = vadd.f32 %v2501_v8, %v2500_v1  ;;  %v6180_v8 = vld [vmem:[#allocation25_spill] sm:$0xff]  ;;  %v6181_v9 = vld [vmem:[#allocation23_spill] sm:$0xff] }
 0x699   :  { %v5768_v16 = vadd.f32 %v2356_v43, %v6174_v40  ;;  %v2360_v53 = vadd.f32 %v2359_v42, %v5605_v52  ;;  %v2361_v38 = vpop.f32.mrb[63].mxu1 }
 0x69a   :  { %v5772_v0 = vadd.f32 %v2358_v63, %v6175_v3  ;;  %v2362_v33 = vadd.f32 %v2361_v38, %v5608_v31  ;;  %2539 = vadd.xlane.f32.xlu0 %v2538_v28 }
 0x69b   :  { %v5776_v49 = vadd.f32 %v2360_v53, %v6176_v23  ;;  %v2502_v47 = vmul.f32 %v5768_v16, %v5768_v16 }
 0x69c   :  { %v5779_v11 = vadd.f32 %v2362_v33, %v6177_v39  ;;  %2542 = vadd.xlane.f32.xlu1 %v2541_v4  ;;  %v2448_v2 = vadd.f32 %v5772_v0, %v5768_v16  ;;  %v2503_v6 = vmul.f32 %v5772_v0, %v5772_v0 }
 0x69d   :  { %v2504_v26 = vmul.f32 %v5776_v49, %v5776_v49 }
 0x69e   :  { %2449 = vadd.xlane.f32.xlu0 %v2448_v2  ;;  %v2365_v41 = vpop.f32.mrb[64].mxu1  ;;  %v2451_v27 = vadd.f32 %v5779_v11, %v5776_v49  ;;  %v2505_v45 = vmul.f32 %v5779_v11, %v5779_v11  ;;  %v2544_v59 = vadd.f32 %v2503_v6, %v2502_v47  ;;  %v6182_v6 = vld [vmem:[#allocation28_spill] sm:$0xff] }
 0x69f   :  { %v2366_v55 = vadd.f32 %v2365_v41, %v5605_v52  ;;  %v2367_v5 = vpop.f32.mrb[65].mxu1 }
 0x6a0   :  { %v2368_v7 = vadd.f32 %v2367_v5, %v5608_v31  ;;  %2452 = vadd.xlane.f32.xlu1 %v2451_v27  ;;  %v2369_v34 = vpop.f32.mrb[66].mxu1  ;;  %v2547_v1 = vadd.f32 %v2505_v45, %v2504_v26  ;;  %v6183_v45 = vld [vmem:[#allocation26_spill] sm:$0xff]  ;;  %v6184_v5 = vld [vmem:[#allocation29_spill] sm:$0xff] }
 0x6a1   :  { %v5802_v13 = vadd.f32 %v2366_v55, %v6178_v24  ;;  %v2370_v20 = vadd.f32 %v2369_v34, %v5605_v52  ;;  %v2371_v30 = vpop.f32.mrb[67].mxu1  ;;  %v6185_v34 = vld [vmem:[#allocation27_spill] sm:$0xff] }
 0x6a2   :  { %v5806_v60 = vadd.f32 %v2368_v7, %v6179_v61  ;;  %v2372_v54 = vadd.f32 %v2371_v30, %v5608_v31  ;;  %2545 = vadd.xlane.f32.xlu0 %v2544_v59 }
 0x6a3   :  { %v5810_v43 = vadd.f32 %v2370_v20, %v6180_v8  ;;  %v2506_v28 = vmul.f32 %v5802_v13, %v5802_v13 }
 0x6a4   :  { %v5813_v63 = vadd.f32 %v2372_v54, %v6181_v9  ;;  %2548 = vadd.xlane.f32.xlu1 %v2547_v1  ;;  %v2454_v42 = vadd.f32 %v5806_v60, %v5802_v13  ;;  %v2507_v40 = vmul.f32 %v5806_v60, %v5806_v60 }
 0x6a5   :  { %v2508_v3 = vmul.f32 %v5810_v43, %v5810_v43 }
 0x6a6   :  { %2455 = vadd.xlane.f32.xlu0 %v2454_v42  ;;  %v2375_v53 = vpop.f32.mrb[68].mxu1  ;;  %v2457_v38 = vadd.f32 %v5813_v63, %v5810_v43  ;;  %v2509_v33 = vmul.f32 %v5813_v63, %v5813_v63  ;;  %v2550_v47 = vadd.f32 %v2507_v40, %v2506_v28 }
 0x6a7   :  { %v2376_v4 = vadd.f32 %v2375_v53, %v5605_v52  ;;  %v2377_v23 = vpop.f32.mrb[69].mxu1 }
 0x6a8   :  { %v2378_v39 = vadd.f32 %v2377_v23, %v5608_v31  ;;  %2458 = vadd.xlane.f32.xlu1 %v2457_v38  ;;  %v2379_v2 = vpop.f32.mrb[70].mxu1  ;;  %v2553_v55 = vadd.f32 %v2509_v33, %v2508_v3 }
 0x6a9   :  { %v5830_v41 = vadd.f32 %v2376_v4, %v6182_v6  ;;  %v2380_v27 = vadd.f32 %v2379_v2, %v5605_v52  ;;  %v2381_v26 = vpop.f32.mrb[71].mxu1 }
 0x6aa   :  { %v5834_v48 = vadd.f32 %v2378_v39, %v6183_v45  ;;  %v2382_v25 = vadd.f32 %v2381_v26, %v5608_v31  ;;  %2551 = vadd.xlane.f32.xlu0 %v2550_v47 }
 0x6ab   :  { %v5838_v7 = vadd.f32 %v2380_v27, %v6184_v5  ;;  %v2510_v52 = vmul.f32 %v5830_v41, %v5830_v41 }
 0x6ac   :  { %v5841_v59 = vadd.f32 %v2382_v25, %v6185_v34  ;;  %2554 = vadd.xlane.f32.xlu1 %v2553_v55  ;;  %v2460_v24 = vadd.f32 %v5834_v48, %v5830_v41  ;;  %v2511_v20 = vmul.f32 %v5834_v48, %v5834_v48  ;;  %v2416_v34 = vld [vmem:[%s6099_s13] sm:$0x3] }
 0x6ad   :  { %v2512_v30 = vmul.f32 %v5838_v7, %v5838_v7 }
 0x6ae   :  { %2461 = vadd.xlane.f32.xlu0 %v2460_v24  ;;  %v2463_v31 = vadd.f32 %v5841_v59, %v5838_v7  ;;  %v2513_v61 = vmul.f32 %v5841_v59, %v5841_v59  ;;  %v2556_v54 = vadd.f32 %v2511_v20, %v2510_v52 }
 0x6b0   :  { %2464 = vadd.xlane.f32.xlu1 %v2463_v31  ;;  %v2559_v1 = vadd.f32 %v2513_v61, %v2512_v30 }
 0x6b2   :  { %2557 = vadd.xlane.f32.xlu0 %v2556_v54  ;;  %v2417_v54 = vld [vmem:[%s6100_s14] sm:$0x3] }
 0x6b4   :  { %2560 = vadd.xlane.f32.xlu1 %v2559_v1 }
 0x6fb   :  { %v2420_v8 = vpop.xlane.xlu0 %2419 }
 0x6fc   :  { %v2466_v9 = vmul.f32 0.00390625, %v2420_v8 }
 0x6fd   :  { %v2423_v42 = vpop.xlane.xlu1 %2422 }
 0x6fe   :  { %v2467_v28 = vmul.f32 0.00390625, %v2423_v42  ;;  %v2578_v53 = vmul.f32 %v2466_v9, %v2466_v9  ;;  %v2610_v24 = vsub.f32 %v5613_v62, %v2466_v9  ;;  %v2611_v20 = vsub.f32 %v5617_v51, %v2466_v9 }
 0x6ff   :  { %v2516_v40 = vpop.xlane.xlu0 %2515  ;;  %v5873_v42 = vrot.slane %v2416_v34, %v4899_v15  ;;  %v5876_v62 = vrot.slane %v2416_v34, %v4901_v12 }
 0x700   :  { %v2562_v38 = vmul.f32 0.00390625, %v2516_v40  ;;  %v2579_v4 = vmul.f32 %v2467_v28, %v2467_v28  ;;  %v2612_v8 = vsub.f32 %v5621_v18, %v2467_v28 }
 0x701   :  { %v2519_v3 = vpop.xlane.xlu1 %2518 }
 0x702   :  { %v2594_v33 = vsub.f32 %v2562_v38, %v2578_v53  ;;  %v2563_v23 = vmul.f32 0.00390625, %v2519_v3  ;;  %v2613_v3 = vsub.f32 %v5624_v46, %v2467_v28 }
 0x704   :  { %v2642_v39 = vadd.f32 1e-05, %v2594_v33  ;;  %v2595_v2 = vsub.f32 %v2563_v23, %v2579_v4  ;;  %v5880_v4 = vrot.slane %v2417_v54, %v4899_v15 }
 0x706   :  { %3887 = vrsqrt.f32 %v2642_v39  ;;  %v2643_v47 = vadd.f32 1e-05, %v2595_v2  ;;  %v2426_v6 = vpop.xlane.xlu0 %2425 }
 0x707   :  { %v5855_v27 = vmul.f32 0.00390625, %v2426_v6 }
 0x708   :  { %3889 = vrsqrt.f32 %v2643_v47  ;;  %v2429_v26 = vpop.xlane.xlu1 %2428 }
 0x709   :  { %v5857_v45 = vmul.f32 0.00390625, %v2429_v26  ;;  %v2580_v55 = vmul.f32 %v5855_v27, %v5855_v27  ;;  %v5886_v26 = vrot.slane %v2417_v54, %v4901_v12 }
 0x70a   :  { %v2522_v25 = vpop.xlane.xlu0 %2521 }
 0x70b   :  { %v2564_v5 = vmul.f32 0.00390625, %v2522_v25  ;;  %v2581_v30 = vmul.f32 %v5857_v45, %v5857_v45 }
 0x70c   :  { %v2525_v52 = vpop.xlane.xlu1 %2524 }
 0x70d   :  { %v2596_v31 = vsub.f32 %v2564_v5, %v2580_v55  ;;  %v2565_v61 = vmul.f32 0.00390625, %v2525_v52 }
 0x70f   :  { %v2644_v51 = vadd.f32 1e-05, %v2596_v31  ;;  %v2597_v9 = vsub.f32 %v2565_v61, %v2581_v30 }
 0x710   :  { %v3888_v1 = vpop.eup %3887  ;;  %v2432_v33 = vpop.xlane.xlu0 %2431 }
 0x711   :  { %v2674_v40 = vmul.f32 %v3888_v1, %v2610_v24  ;;  %v2675_v53 = vmul.f32 %v3888_v1, %v2611_v20  ;;  %3891 = vrsqrt.f32 %v2644_v51  ;;  %v2645_v18 = vadd.f32 1e-05, %v2597_v9 }
 0x712   :  { %v3890_v38 = vpop.eup %3889  ;;  %v5882_v39 = vmul.f32 0.00390625, %v2432_v33  ;;  %v2435_v2 = vpop.xlane.xlu1 %2434  ;;  %v2614_v9 = vsub.f32 %v5641_v58, %v5855_v27 }
 0x713   :  { %v2676_v23 = vmul.f32 %v3890_v38, %v2612_v8  ;;  %v2677_v47 = vmul.f32 %v3890_v38, %v2613_v3  ;;  %v2718_v6 = vmul.f32 %v5876_v62, %v2675_v53  ;;  %v2717_v25 = vmul.f32 %v5873_v42, %v2674_v40 }
 0x714   :  { %3893 = vrsqrt.f32 %v2645_v18  ;;  %v5889_v46 = vmul.f32 0.00390625, %v2435_v2  ;;  %v2528_v28 = vpop.xlane.xlu0 %2527  ;;  %v2582_v5 = vmul.f32 %v5882_v39, %v5882_v39  ;;  %v2615_v53 = vsub.f32 %v5645_v14, %v5855_v27 }
 0x715   :  { %v2720_v15 = vmul.f32 %v5876_v62, %v2677_v47  ;;  %v2719_v55 = vmul.f32 %v5873_v42, %v2676_v23  ;;  %v2566_v34 = vmul.f32 0.00390625, %v2528_v28  ;;  %v2761_v52 = vadd.f32 %v5886_v26, %v2718_v6 }
 0x716   :  { %v2531_v24 = vpop.xlane.xlu1 %2530  ;;  %v2760_v20 = vadd.f32 %v5880_v4, %v2717_v25  ;;  %v2583_v61 = vmul.f32 %v5889_v46, %v5889_v46  ;;  %v2616_v18 = vsub.f32 %v5649_v19, %v5857_v45  ;;  %v2617_v2 = vsub.f32 %v5652_v57, %v5857_v45 }
 0x717   :  { %v2763_v12 = vadd.f32 %v5886_v26, %v2720_v15  ;;  %v2762_v31 = vadd.f32 %v5880_v4, %v2719_v55  ;;  %v2598_v30 = vsub.f32 %v2566_v34, %v2582_v5  ;;  %v2567_v54 = vmul.f32 0.00390625, %v2531_v24 }
 0x719   :  { %v2793_v1 = vpack.c.bf16 %v2763_v12, %v2761_v52  ;;  %v2792_v8 = vpack.c.bf16 %v2762_v31, %v2760_v20  ;;  %v2646_v40 = vadd.f32 1e-05, %v2598_v30  ;;  %v2599_v51 = vsub.f32 %v2567_v54, %v2583_v61 }
 0x71b   :  { %v2438_v38 = vpop.xlane.xlu0 %2437  ;;  %2975 = vmatprep.mubr.bf16.mxu0 %v2793_v1  ;;  %v3892_v3 = vpop.eup %3891  ;;  %3895 = vrsqrt.f32 %v2646_v40  ;;  %v2647_v33 = vadd.f32 1e-05, %v2599_v51 }
 0x71c   :  { %v5905_v23 = vmul.f32 0.00390625, %v2438_v38  ;;  %2976 = vmatmul.mubr.bf16.vlgmr.msra.gmra.mrb[40].mxu0 %v2792_v8  ;;  %v2679_v6 = vmul.f32 %v3892_v3, %v2615_v53  ;;  %v2678_v58 = vmul.f32 %v3892_v3, %v2614_v9  ;;  %v2618_v9 = vsub.f32 %v5672_v17, %v5882_v39 }
 0x71d   :  { %v2441_v47 = vpop.xlane.xlu1 %2440  ;;  %3897 = vrsqrt.f32 %v2647_v33  ;;  %v2619_v53 = vsub.f32 %v5676_v10, %v5882_v39  ;;  %v2620_v17 = vsub.f32 %v5680_v35, %v5889_v46 }
 0x71e   :  { %v3894_v25 = vpop.eup %3893  ;;  %v5911_v14 = vmul.f32 0.00390625, %v2441_v47  ;;  %v2722_v15 = vmul.f32 %v5876_v62, %v2679_v6  ;;  %v2584_v5 = vmul.f32 %v5905_v23, %v5905_v23  ;;  %v2721_v57 = vmul.f32 %v5873_v42, %v2678_v58 }
 0x71f   :  { %v2534_v27 = vpop.xlane.xlu0 %2533  ;;  %v2681_v28 = vmul.f32 %v3894_v25, %v2617_v2  ;;  %v2680_v55 = vmul.f32 %v3894_v25, %v2616_v18  ;;  %v2621_v47 = vsub.f32 %v5683_v32, %v5889_v46 }
 0x720   :  { %v2568_v34 = vmul.f32 0.00390625, %v2534_v27  ;;  %v2585_v12 = vmul.f32 %v5911_v14, %v5911_v14  ;;  %v2765_v30 = vadd.f32 %v5886_v26, %v2722_v15  ;;  %v2764_v54 = vadd.f32 %v5880_v4, %v2721_v57 }
 0x721   :  { %v2537_v19 = vpop.xlane.xlu1 %2536  ;;  %v2724_v24 = vmul.f32 %v5876_v62, %v2681_v28  ;;  %v2723_v45 = vmul.f32 %v5873_v42, %v2680_v55 }
 0x722   :  { %v2600_v52 = vsub.f32 %v2568_v34, %v2584_v5  ;;  %v2569_v20 = vmul.f32 0.00390625, %v2537_v19 }
 0x723   :  { %v2444_v31 = vpop.xlane.xlu0 %2443  ;;  %v2767_v61 = vadd.f32 %v5886_v26, %v2724_v24  ;;  %v2766_v1 = vadd.f32 %v5880_v4, %v2723_v45 }
 0x724   :  { %v2648_v8 = vadd.f32 1e-05, %v2600_v52  ;;  %v2601_v40 = vsub.f32 %v2569_v20, %v2585_v12  ;;  %v5925_v51 = vmul.f32 0.00390625, %v2444_v31 }
 0x725   :  { %v2447_v38 = vpop.xlane.xlu1 %2446  ;;  %v2795_v3 = vpack.c.bf16 %v2767_v61, %v2765_v30  ;;  %v2794_v33 = vpack.c.bf16 %v2766_v1, %v2764_v54  ;;  %v3896_v18 = vpop.eup %3895  ;;  %v2622_v54 = vsub.f32 %v5700_v37, %v5905_v23  ;;  %v2624_v37 = vsub.f32 %v5708_v50, %v5911_v14 }
 0x726   :  { %3899 = vrsqrt.f32 %v2648_v8  ;;  %v2649_v2 = vadd.f32 1e-05, %v2601_v40  ;;  %v5933_v6 = vmul.f32 0.00390625, %v2447_v38  ;;  %v2683_v25 = vmul.f32 %v3896_v18, %v2619_v53 }
 0x727   :  { %v2540_v58 = vpop.xlane.xlu0 %2539  ;;  %2983 = vmatprep.mubr.bf16.mxu0 %v2795_v3  ;;  %v2682_v27 = vmul.f32 %v3896_v18, %v2618_v9  ;;  %v3898_v28 = vpop.eup %3897  ;;  %v2586_v10 = vmul.f32 %v5925_v51, %v5925_v51 }
 0x728   :  { %3901 = vrsqrt.f32 %v2649_v2  ;;  %v2570_v39 = vmul.f32 0.00390625, %v2540_v58  ;;  %2984 = vmatmul.mubr.bf16.gmra.mrb[44].mxu0 %v2794_v33  ;;  %v2587_v15 = vmul.f32 %v5933_v6, %v5933_v6  ;;  %v2685_v55 = vmul.f32 %v3898_v28, %v2621_v47 }
 0x729   :  { %v2543_v32 = vpop.xlane.xlu1 %2542  ;;  %v2726_v19 = vmul.f32 %v5876_v62, %v2683_v25  ;;  %v2684_v24 = vmul.f32 %v3898_v28, %v2620_v17  ;;  %v2725_v35 = vmul.f32 %v5873_v42, %v2682_v27  ;;  %v2623_v33 = vsub.f32 %v5704_v22, %v5905_v23 }
 0x72a   :  { %v2602_v5 = vsub.f32 %v2570_v39, %v2586_v10  ;;  %v2571_v34 = vmul.f32 0.00390625, %v2543_v32  ;;  %v2728_v45 = vmul.f32 %v5876_v62, %v2685_v55  ;;  %v2625_v47 = vsub.f32 %v5711_v56, %v5911_v14 }
 0x72b   :  { %v2450_v57 = vpop.xlane.xlu0 %2449  ;;  %v2769_v31 = vadd.f32 %v5886_v26, %v2726_v19  ;;  %v2727_v61 = vmul.f32 %v5873_v42, %v2684_v24  ;;  %v2768_v53 = vadd.f32 %v5880_v4, %v2725_v35 }
 0x72c   :  { %v2650_v46 = vadd.f32 1e-05, %v2602_v5  ;;  %v2603_v52 = vsub.f32 %v2571_v34, %v2587_v15  ;;  %v5944_v12 = vmul.f32 0.00390625, %v2450_v57  ;;  %v2771_v30 = vadd.f32 %v5886_v26, %v2728_v45 }
 0x72d   :  { %v2453_v20 = vpop.xlane.xlu1 %2452  ;;  %v2770_v38 = vadd.f32 %v5880_v4, %v2727_v61  ;;  %v2626_v57 = vsub.f32 %v5728_v29, %v5925_v51  ;;  %v2627_v45 = vsub.f32 %v5732_v36, %v5925_v51  ;;  %v2628_v36 = vsub.f32 %v5742_v44, %v5933_v6 }
 0x72e   :  { %3903 = vrsqrt.f32 %v2650_v46  ;;  %v2651_v1 = vadd.f32 1e-05, %v2603_v52  ;;  %v5951_v8 = vmul.f32 0.00390625, %v2453_v20  ;;  %v2797_v9 = vpack.c.bf16 %v2771_v30, %v2769_v31 }
 0x72f   :  { %v2546_v40 = vpop.xlane.xlu0 %2545  ;;  %v2588_v18 = vmul.f32 %v5944_v12, %v5944_v12  ;;  %v2796_v27 = vpack.c.bf16 %v2770_v38, %v2768_v53  ;;  %v2629_v51 = vsub.f32 %v5747_v21, %v5933_v6 }
 0x730   :  { %v3900_v3 = vpop.eup %3899  ;;  %3905 = vrsqrt.f32 %v2651_v1  ;;  %v2572_v2 = vmul.f32 0.00390625, %v2546_v40  ;;  %v2589_v58 = vmul.f32 %v5951_v8, %v5951_v8  ;;  %2991 = vmatprep.mubr.bf16.mxu0 %v2797_v9 }
 0x731   :  { %v2549_v25 = vpop.xlane.xlu1 %2548  ;;  %v2687_v23 = vmul.f32 %v3900_v3, %v2623_v33  ;;  %v2686_v10 = vmul.f32 %v3900_v3, %v2622_v54  ;;  %2992 = vmatmul.mubr.bf16.gmra.mrb[48].mxu0 %v2796_v27 }
 0x732   :  { %v3902_v28 = vpop.eup %3901  ;;  %v2604_v17 = vsub.f32 %v2572_v2, %v2588_v18  ;;  %v2573_v22 = vmul.f32 0.00390625, %v2549_v25 }
 0x733   :  { %v2456_v39 = vpop.xlane.xlu0 %2455  ;;  %v2689_v15 = vmul.f32 %v3902_v28, %v2625_v47  ;;  %v2688_v32 = vmul.f32 %v3902_v28, %v2624_v37  ;;  %v2730_v56 = vmul.f32 %v5876_v62, %v2687_v23  ;;  %v2729_v19 = vmul.f32 %v5873_v42, %v2686_v10 }
 0x734   :  { %v2652_v55 = vadd.f32 1e-05, %v2604_v17  ;;  %v2605_v50 = vsub.f32 %v2573_v22, %v2589_v58  ;;  %v5965_v5 = vmul.f32 0.00390625, %v2456_v39  ;;  %v2630_v10 = vsub.f32 %v5768_v16, %v5944_v12 }
 0x735   :  { %v2459_v14 = vpop.xlane.xlu1 %2458  ;;  %v2732_v34 = vmul.f32 %v5876_v62, %v2689_v15  ;;  %v2731_v24 = vmul.f32 %v5873_v42, %v2688_v32  ;;  %v2773_v31 = vadd.f32 %v5886_v26, %v2730_v56  ;;  %v2772_v29 = vadd.f32 %v5880_v4, %v2729_v19 }
 0x736   :  { %3907 = vrsqrt.f32 %v2652_v55  ;;  %v2653_v35 = vadd.f32 1e-05, %v2605_v50  ;;  %v5975_v46 = vmul.f32 0.00390625, %v2459_v14  ;;  %v2590_v52 = vmul.f32 %v5965_v5, %v5965_v5 }
 0x737   :  { %v2552_v20 = vpop.xlane.xlu0 %2551  ;;  %v2775_v30 = vadd.f32 %v5886_v26, %v2732_v34  ;;  %v2774_v1 = vadd.f32 %v5880_v4, %v2731_v24  ;;  %v2631_v39 = vsub.f32 %v5772_v0, %v5944_v12  ;;  %v2632_v0 = vsub.f32 %v5776_v49, %v5951_v8 }
 0x738   :  { %v3904_v61 = vpop.eup %3903  ;;  %3909 = vrsqrt.f32 %v2653_v35  ;;  %v2574_v54 = vmul.f32 0.00390625, %v2552_v20  ;;  %v2591_v40 = vmul.f32 %v5975_v46, %v5975_v46  ;;  %v2633_v12 = vsub.f32 %v5779_v11, %v5951_v8 }
 0x739   :  { %v2555_v9 = vpop.xlane.xlu1 %2554  ;;  %v2799_v53 = vpack.c.bf16 %v2775_v30, %v2773_v31  ;;  %v2798_v18 = vpack.c.bf16 %v2774_v1, %v2772_v29  ;;  %v2691_v2 = vmul.f32 %v3904_v61, %v2627_v45  ;;  %v2690_v58 = vmul.f32 %v3904_v61, %v2626_v57 }
 0x73a   :  { %v3906_v38 = vpop.eup %3905  ;;  %v2606_v3 = vsub.f32 %v2574_v54, %v2590_v52  ;;  %v2575_v33 = vmul.f32 0.00390625, %v2555_v9  ;;  %v2634_v9 = vsub.f32 %v5802_v13, %v5965_v5  ;;  %v2637_v13 = vsub.f32 %v5813_v63, %v5975_v46 }
 0x73b   :  { %v2462_v37 = vpop.xlane.xlu0 %2461  ;;  %2999 = vmatprep.mubr.bf16.mxu0 %v2799_v53  ;;  %v2693_v47 = vmul.f32 %v3906_v38, %v2629_v51  ;;  %v2692_v25 = vmul.f32 %v3906_v38, %v2628_v36  ;;  %v2734_v21 = vmul.f32 %v5876_v62, %v2691_v2  ;;  %v2733_v22 = vmul.f32 %v5873_v42, %v2690_v58 }
 0x73c   :  { %v2654_v27 = vadd.f32 1e-05, %v2606_v3  ;;  %v2607_v44 = vsub.f32 %v2575_v33, %v2591_v40  ;;  %v5989_v28 = vmul.f32 0.00390625, %v2462_v37  ;;  %3000 = vmatmul.mubr.bf16.gmra.mrb[52].mxu0 %v2798_v18  ;;  %v2635_v53 = vsub.f32 %v5806_v60, %v5965_v5 }
 0x73d   :  { %v2465_v6 = vpop.xlane.xlu1 %2464  ;;  %v2736_v17 = vmul.f32 %v5876_v62, %v2693_v47  ;;  %v2735_v23 = vmul.f32 %v5873_v42, %v2692_v25  ;;  %v2777_v56 = vadd.f32 %v5886_v26, %v2734_v21  ;;  %v2776_v16 = vadd.f32 %v5880_v4, %v2733_v22 }
 0x73e   :  { %3911 = vrsqrt.f32 %v2654_v27  ;;  %v2655_v15 = vadd.f32 1e-05, %v2607_v44  ;;  %v5999_v32 = vmul.f32 0.00390625, %v2465_v6  ;;  %v2592_v55 = vmul.f32 %v5989_v28, %v5989_v28 }
 0x73f   :  { %v2558_v50 = vpop.xlane.xlu0 %2557  ;;  %v2779_v14 = vadd.f32 %v5886_v26, %v2736_v17  ;;  %v2778_v24 = vadd.f32 %v5880_v4, %v2735_v23  ;;  %v2636_v47 = vsub.f32 %v5810_v43, %v5975_v46  ;;  %v2638_v63 = vsub.f32 %v5830_v41, %v5989_v28 }
 0x740   :  { %v3908_v34 = vpop.eup %3907  ;;  %3913 = vrsqrt.f32 %v2655_v15  ;;  %v2576_v19 = vmul.f32 0.00390625, %v2558_v50  ;;  %v2593_v57 = vmul.f32 %v5999_v32, %v5999_v32  ;;  %v2639_v46 = vsub.f32 %v5834_v48, %v5989_v28 }
 0x741   :  { %v2561_v45 = vpop.xlane.xlu1 %2560  ;;  %v2801_v35 = vpack.c.bf16 %v2779_v14, %v2777_v56  ;;  %v2800_v30 = vpack.c.bf16 %v2778_v24, %v2776_v16  ;;  %v2695_v61 = vmul.f32 %v3908_v34, %v2631_v39  ;;  %v2694_v29 = vmul.f32 %v3908_v34, %v2630_v10 }
 0x742   :  { %v3910_v52 = vpop.eup %3909  ;;  %v2608_v20 = vsub.f32 %v2576_v19, %v2592_v55  ;;  %v2577_v31 = vmul.f32 0.00390625, %v2561_v45  ;;  %v2640_v50 = vsub.f32 %v5838_v7, %v5999_v32  ;;  %v2641_v56 = vsub.f32 %v5841_v59, %v5999_v32 }
 0x743   :  { %3007 = vmatprep.mubr.bf16.mxu0 %v2801_v35  ;;  %v2697_v54 = vmul.f32 %v3910_v52, %v2633_v12  ;;  %v2696_v1 = vmul.f32 %v3910_v52, %v2632_v0  ;;  %v2738_v49 = vmul.f32 %v5876_v62, %v2695_v61  ;;  %v2737_v8 = vmul.f32 %v5873_v42, %v2694_v29 }
 0x744   :  { %v2656_v36 = vadd.f32 1e-05, %v2608_v20  ;;  %v2609_v51 = vsub.f32 %v2577_v31, %v2593_v57  ;;  %3008 = vmatmul.mubr.bf16.gmra.mrb[56].mxu0 %v2800_v30  ;;  %v6056_v31 = vld [vmem:[%s6102_s16] ss:$0 sm:$0xff]  ;;  %s3959_s16 = smov [#allocation2]  }
 0x745   :  { %v2740_v11 = vmul.f32 %v5876_v62, %v2697_v54  ;;  %v2739_v40 = vmul.f32 %v5873_v42, %v2696_v1  ;;  %v2781_v3 = vadd.f32 %v5886_v26, %v2738_v49  ;;  %v2780_v18 = vadd.f32 %v5880_v4, %v2737_v8  ;;  %s3061_s8 = sshll.u32 %s3959_s16, 4  ;;  %s3062_s8 = int_to_ptr.vmem [resolvable:$true] %s3061_s8 }
 0x746   :  { %3915 = vrsqrt.f32 %v2656_v36  ;;  %v2657_v38 = vadd.f32 1e-05, %v2609_v51  ;;  %s3935_s4 = scalar_lea.vmem %s3062_s8, 2048  ;;  %p3940_p1 = scmp.lt.s32.totalorder %s3062_s8, %s3062_s8 }
 0x747   :  { %v2783_v33 = vadd.f32 %v5886_v26, %v2740_v11  ;;  %v2782_v2 = vadd.f32 %v5880_v4, %v2739_v40  ;;  %p3936_p0 = scmp.ne.s32.totalorder %s3062_s8, %s3935_s4  ;;  %p3941_p2 = scmp.lt.s32.totalorder %s3935_s4, %s3935_s4 }
 0x748   :  { %v3912_v37 = vpop.eup %3911  ;;  %3917 = vrsqrt.f32 %v2657_v38 }
 0x749   :  { %v2803_v58 = vpack.c.bf16 %v2783_v33, %v2781_v3  ;;  %v2802_v60 = vpack.c.bf16 %v2782_v2, %v2780_v18  ;;  %v2699_v5 = vmul.f32 %v3912_v37, %v2635_v53  ;;  %v2698_v25 = vmul.f32 %v3912_v37, %v2634_v9  ;;  %p3942_p3 = por %p3941_p2, %p3940_p1 }
 0x74a   :  { %v3914_v27 = vpop.eup %3913 }
 0x74b   :  { %3015 = vmatprep.mubr.bf16.mxu0 %v2803_v58  ;;  %v2701_v44 = vmul.f32 %v3914_v27, %v2637_v13  ;;  %v2742_v21 = vmul.f32 %v5876_v62, %v2699_v5  ;;  %v2700_v6 = vmul.f32 %v3914_v27, %v2636_v47  ;;  %v2741_v17 = vmul.f32 %v5873_v42, %v2698_v25  ;;  %p3943_p4 = pnand %p3942_p3, %p3936_p0 }
 0x74c   :  { %3016 = vmatmul.mubr.bf16.gmra.mrb[60].mxu0 %v2802_v60 }
 0x74d   :  { %v2744_v22 = vmul.f32 %v5876_v62, %v2701_v44  ;;  %v2743_v43 = vmul.f32 %v5873_v42, %v2700_v6  ;;  %v2785_v23 = vadd.f32 %v5886_v26, %v2742_v21  ;;  %v2784_v39 = vadd.f32 %v5880_v4, %v2741_v17 }
 0x74f   :  { %v2787_v10 = vadd.f32 %v5886_v26, %v2744_v22  ;;  %v2786_v15 = vadd.f32 %v5880_v4, %v2743_v43 }
 0x750   :  { %v3916_v55 = vpop.eup %3915 }
 0x751   :  { %v2805_v14 = vpack.c.bf16 %v2787_v10, %v2785_v23  ;;  %v2804_v41 = vpack.c.bf16 %v2786_v15, %v2784_v39  ;;  %v2703_v34 = vmul.f32 %v3916_v55, %v2639_v46  ;;  %v2702_v19 = vmul.f32 %v3916_v55, %v2638_v63 }
 0x752   :  { %v3918_v48 = vpop.eup %3917 }
 0x753   :  { %3023 = vmatprep.mubr.bf16.mxu0 %v2805_v14  ;;  %v2705_v28 = vmul.f32 %v3918_v48, %v2641_v56  ;;  %v2746_v16 = vmul.f32 %v5876_v62, %v2703_v34  ;;  %v2704_v24 = vmul.f32 %v3918_v48, %v2640_v50  ;;  %v2745_v0 = vmul.f32 %v5873_v42, %v2702_v19 }
 0x754   :  { %3024 = vmatmul.mubr.bf16.gmra.mrb[64].mxu0 %v2804_v41 }
 0x755   :  { %v2748_v12 = vmul.f32 %v5876_v62, %v2705_v28  ;;  %v2789_v7 = vadd.f32 %v5886_v26, %v2746_v16  ;;  %v2747_v57 = vmul.f32 %v5873_v42, %v2704_v24  ;;  %v2788_v59 = vadd.f32 %v5880_v4, %v2745_v0 }
 0x757   :  { %v2791_v32 = vadd.f32 %v5886_v26, %v2748_v12  ;;  %v2790_v45 = vadd.f32 %v5880_v4, %v2747_v57 }
 0x759   :  { %v2807_v35 = vpack.c.bf16 %v2791_v32, %v2789_v7  ;;  %v2806_v52 = vpack.c.bf16 %v2790_v45, %v2788_v59 }
 0x75b   :  { %3031 = vmatprep.mubr.bf16.mxu0 %v2807_v35 }
 0x75c   :  { %3032 = vmatmul.mubr.bf16.gmra.mrb[68].mxu0 %v2806_v52 }
 0x7ef   :  { %v3292_v20 = vpop.f32.mrb[40].mxu0 }
 0x7f0   :  { %v3293_v62 = vpop.f32.mrb[41].mxu0 }
 0x7f1   :  { %v3294_v30 = vadd.f32 %v3293_v62, %v3292_v20  ;;  %v3295_v61 = vpop.f32.mrb[42].mxu0 }
 0x7f2   :  { %v3296_v42 = vpop.f32.mrb[43].mxu0 }
 0x7f3   :  { %v2978_v54 = vadd.f32 %v3294_v30, %v6056_v31  ;;  %v3297_v29 = vadd.f32 %v3296_v42, %v3295_v61 }
 0x7f5   :  { %3040 = vst [vmem:[#allocation2] sm:$0xff] %v2978_v54  ;;  %v2981_v4 = vadd.f32 %v3297_v29, %v6056_v31 }
 0x7f7   :  { %3041 = vst [vmem:[#allocation2 + $0x8] sm:$0xff] %v2981_v4 }
 0x7fb   :  { %v3298_v26 = vpop.f32.mrb[44].mxu0 }
 0x7fc   :  { %v3299_v1 = vpop.f32.mrb[45].mxu0 }
 0x7fd   :  { %v3300_v36 = vadd.f32 %v3299_v1, %v3298_v26  ;;  %v3301_v51 = vpop.f32.mrb[46].mxu0 }
 0x7fe   :  { %v3302_v49 = vpop.f32.mrb[47].mxu0 }
 0x7ff   :  { %v2986_v11 = vadd.f32 %v3300_v36, %v6056_v31  ;;  %v3303_v8 = vadd.f32 %v3302_v49, %v3301_v51 }
 0x801   :  { %3042 = vst [vmem:[#allocation2 + $0x10] sm:$0xff] %v2986_v11  ;;  %v2989_v40 = vadd.f32 %v3303_v8, %v6056_v31 }
 0x803   :  { %3043 = vst [vmem:[#allocation2 + $0x18] sm:$0xff] %v2989_v40 }
 0x804   :  { %v3304_v9 = vpop.f32.mrb[48].mxu0 }
 0x805   :  { %v3305_v53 = vpop.f32.mrb[49].mxu0 }
 0x806   :  { %v3306_v38 = vadd.f32 %v3305_v53, %v3304_v9  ;;  %v3307_v3 = vpop.f32.mrb[50].mxu0 }
 0x807   :  { %v3308_v33 = vpop.f32.mrb[51].mxu0 }
 0x808   :  { %v2994_v18 = vadd.f32 %v3306_v38, %v6056_v31  ;;  %v3309_v2 = vadd.f32 %v3308_v33, %v3307_v3 }
 0x80a   :  { %3044 = vst [vmem:[#allocation2 + $0x20] sm:$0xff] %v2994_v18  ;;  %v2997_v37 = vadd.f32 %v3309_v2, %v6056_v31 }
 0x80c   :  { %3045 = vst [vmem:[#allocation2 + $0x28] sm:$0xff] %v2997_v37 }
 0x80f   :  { %v3310_v47 = vpop.f32.mrb[52].mxu0 }
 0x810   :  { %v3311_v13 = vpop.f32.mrb[53].mxu0 }
 0x811   :  { %v3312_v58 = vadd.f32 %v3311_v13, %v3310_v47  ;;  %v3313_v60 = vpop.f32.mrb[54].mxu0 }
 0x812   :  { %v3314_v5 = vpop.f32.mrb[55].mxu0 }
 0x813   :  { %v3002_v25 = vadd.f32 %v3312_v58, %v6056_v31  ;;  %v3315_v27 = vadd.f32 %v3314_v5, %v3313_v60 }
 0x815   :  { %3046 = vst [vmem:[#allocation2 + $0x30] sm:$0xff] %v3002_v25  ;;  %v3005_v44 = vadd.f32 %v3315_v27, %v6056_v31 }
 0x817   :  { %3047 = vst [vmem:[#allocation2 + $0x38] sm:$0xff] %v3005_v44  ;;  %v3316_v21 = vpop.f32.mrb[56].mxu0 }
 0x818   :  { %v3317_v6 = vpop.f32.mrb[57].mxu0 }
 0x819   :  { %v3318_v17 = vadd.f32 %v3317_v6, %v3316_v21  ;;  %v3319_v22 = vpop.f32.mrb[58].mxu0 }
 0x81a   :  { %v3320_v43 = vpop.f32.mrb[59].mxu0 }
 0x81b   :  { %v3010_v63 = vadd.f32 %v3318_v17, %v6056_v31  ;;  %v3321_v46 = vadd.f32 %v3320_v43, %v3319_v22 }
 0x81d   :  { %3048 = vst [vmem:[#allocation2 + $0x40] sm:$0xff] %v3010_v63  ;;  %v3013_v23 = vadd.f32 %v3321_v46, %v6056_v31 }
 0x81f   :  { %3049 = vst [vmem:[#allocation2 + $0x48] sm:$0xff] %v3013_v23  ;;  %v3322_v10 = vpop.f32.mrb[60].mxu0 }
 0x820   :  { %v3323_v39 = vpop.f32.mrb[61].mxu0 }
 0x821   :  { %v3324_v15 = vadd.f32 %v3323_v39, %v3322_v10  ;;  %v3325_v55 = vpop.f32.mrb[62].mxu0 }
 0x822   :  { %v3326_v50 = vpop.f32.mrb[63].mxu0 }
 0x823   :  { %v3018_v56 = vadd.f32 %v3324_v15, %v6056_v31  ;;  %v3327_v14 = vadd.f32 %v3326_v50, %v3325_v55 }
 0x825   :  { %3050 = vst [vmem:[#allocation2 + $0x50] sm:$0xff] %v3018_v56  ;;  %v3021_v41 = vadd.f32 %v3327_v14, %v6056_v31 }
 0x827   :  { %3051 = vst [vmem:[#allocation2 + $0x58] sm:$0xff] %v3021_v41  ;;  %v3328_v34 = vpop.f32.mrb[64].mxu0 }
 0x828   :  { %v3329_v19 = vpop.f32.mrb[65].mxu0 }
 0x829   :  { %v3330_v48 = vadd.f32 %v3329_v19, %v3328_v34  ;;  %v3331_v28 = vpop.f32.mrb[66].mxu0 }
 0x82a   :  { %v3332_v16 = vpop.f32.mrb[67].mxu0 }
 0x82b   :  { %v3026_v24 = vadd.f32 %v3330_v48, %v6056_v31  ;;  %v3333_v0 = vadd.f32 %v3332_v16, %v3331_v28 }
 0x82d   :  { %3052 = vst [vmem:[#allocation2 + $0x60] sm:$0xff] %v3026_v24  ;;  %v3029_v12 = vadd.f32 %v3333_v0, %v6056_v31 }
 0x82f   :  { %3053 = vst [vmem:[#allocation2 + $0x68] sm:$0xff] %v3029_v12  ;;  %v3334_v7 = vpop.f32.mrb[68].mxu0 }
 0x830   :  { %v3335_v57 = vpop.f32.mrb[69].mxu0 }
 0x831   :  { %v3336_v59 = vadd.f32 %v3335_v57, %v3334_v7  ;;  %v3337_v32 = vpop.f32.mrb[70].mxu0 }
 0x832   :  { %v3338_v45 = vpop.f32.mrb[71].mxu0 }
 0x833   :  { %v3034_v35 = vadd.f32 %v3336_v59, %v6056_v31  ;;  %v3339_v52 = vadd.f32 %v3338_v45, %v3337_v32 }
 0x835   :  { %3054 = vst [vmem:[#allocation2 + $0x70] sm:$0xff] %v3034_v35  ;;  %v3037_v20 = vadd.f32 %v3339_v52, %v6056_v31 }
 0x837   :  { %3055 = vst [vmem:[#allocation2 + $0x78] sm:$0xff] %v3037_v20 }
 0x838   :  { %3946 = shalt.err (!%p3943_p4)
}
 0x839   :  { %s3947_s28 = scalar_lea.hbm %s6103_s17, 2048 }
 0x83a   :  { %p3948_p5 = scmp.ne.s32.totalorder %s6103_s17, %s3947_s28  ;;  %p3951_p6 = scmp.lt.u32.totalorder %s3947_s28, %s6103_s17 }
 0x83c   :  { %p3953_p7 = pnand %p3951_p6, %p3948_p5 }
 0x83e   :  { %3956 = shalt.err (!%p3953_p7)
}
 0x83f   :  { %s3960_s12 = smov 128   ;;  %s3961_s18 = smov 8  }
 0x840   :  { %3067 = dma.vmem_to_hbm [thread:$0]  %s3062_s8, 2048, %s6103_s17, [#allocation3], %s3960_s12, %s3960_s12, %s3961_s18  }
 0x841   :  { %3957 = dma.done.wait [#allocation3], 2048  }
 0x842   :  { %3958 = vsyncadd [#allocation3], 4294965248 }
 0x843   :  { %3071 = vsyncpa [#allocation3], 1 }

</bundles_post_ra>
